<compile_context>
chip_gen: v7x
topology: tpu7x:2x2x1
jax: 0.10.0
libtpu: 0.0.40
codegen_flags: <defaults>
</compile_context>

<pallas_src>
import functools

import jax
import jax.numpy as jnp
from jax import lax
from jax.experimental import pallas as pl
from jax.experimental.pallas import tpu as pltpu


def _num_tensorcores():
    """2 on v7x (dual TensorCore per chip), else 1 (v5e / v6e)."""
    try:
        kind = jax.devices()[0].device_kind.lower()
    except Exception:
        return 1
    return 2 if "v7" in kind else 1


def mamba_ssm_kernel(x_ref, wa_ref, wb_ref, bias_ref, wc_ref, bc_ref,
                     out_ref, state_ref, u_ref, s_ref, *, split_rows, unroll):
    """One (batch-chunk, time-chunk) grid step of the SSM recurrence.

    x_ref:     (Tt, Bb, D_in)  time-major input chunk (VMEM)
    wa_ref:    (S, S)          state_transition weight (transposed)
    wb_ref:    (D_in, S)       input_transform weight (transposed)
    bias_ref:  (1, S)          folded bias: input_transform.b + state_transition.b
    wc_ref:    (S, Op)         output_layer weight (transposed, lane-padded)
    bc_ref:    (1, Op)         output_layer bias (lane-padded)
    out_ref:   (Tt, Bb, Op)    time-major output chunk (VMEM)
    state_ref: (Bb, S)   f32   recurrent state, persists across time chunks
    u_ref:     (Tt, Bb, S) f32 pre-projected inputs for this chunk
    s_ref:     (Tt, Bb, S) f32 per-step states for this chunk
    """
    # Time (grid axis 1) is the inner sequential axis; reset the recurrent
    # state only on the first time chunk of each batch chunk.
    @pl.when(pl.program_id(1) == 0)
    def _():
        state_ref[...] = jnp.zeros_like(state_ref)

    Tt, Bb, D_in = x_ref.shape
    S = wa_ref.shape[0]
    Op = wc_ref.shape[1]

    # ---- Hoisted input projection: one large MXU matmul, biases pre-folded --
    x_flat = x_ref[...].reshape(Tt * Bb, D_in)
    u_ref[...] = (
        jnp.dot(x_flat, wb_ref[...], preferred_element_type=jnp.float32)
        + bias_ref[...]
    ).reshape(Tt, Bb, S)

    wa = wa_ref[...]                      # hoist weight load out of the loop

    # ---- Serial recurrence: state lives in the loop carry (vregs); the VMEM
    # ---- scratch is only touched once before / once after the loop.
    if split_rows:
        half = Bb // 2
        state0 = state_ref[...]

        def step(t, carry):
            s_lo, s_hi = carry
            u_t = u_ref[t]
            # Two independent batch-row sub-chains: chain hi's MXU push
            # overlaps chain lo's result drain + EUP tanh.
            n_lo = jnp.tanh(
                jnp.dot(s_lo, wa, preferred_element_type=jnp.float32)
                + u_t[:half])
            n_hi = jnp.tanh(
                jnp.dot(s_hi, wa, preferred_element_type=jnp.float32)
                + u_t[half:])
            s_ref[t] = jnp.concatenate([n_lo, n_hi], axis=0)
            return (n_lo, n_hi)

        fin_lo, fin_hi = lax.fori_loop(
            0, Tt, step, (state0[:half], state0[half:]), unroll=unroll)
        state_ref[...] = jnp.concatenate([fin_lo, fin_hi], axis=0)
    else:
        def step(t, state):
            s = jnp.tanh(
                jnp.dot(state, wa, preferred_element_type=jnp.float32)
                + u_ref[t])
            s_ref[t] = s
            return s

        state_ref[...] = lax.fori_loop(0, Tt, step, state_ref[...],
                                       unroll=unroll)

    # ---- Hoisted output projection + single lane-dense bulk store ----------
    s_flat = s_ref[...].reshape(Tt * Bb, S)
    y = (jnp.dot(s_flat, wc_ref[...], preferred_element_type=jnp.float32)
         + bc_ref[...])
    out_ref[...] = y.reshape(Tt, Bb, Op).astype(out_ref.dtype)


def mamba_ssm_forward(x, params, *, time_block=None):
    """x: (B, T, D_in) float32 -> (B, T, D_out) float32 (PyTorch layout)."""
    wa, ba, wb, bb, wc, bc = params
    B, T, D_in = x.shape
    S = wa.shape[0]
    O = wc.shape[1]

    # Lane-dense output: pad output projection columns to a multiple of 128 so
    # the in-kernel bulk store and write-back DMA use full unmasked rows.
    Op = max(128, -(-O // 128) * 128)
    wc_p = jnp.pad(wc, ((0, 0), (0, Op - O))) if Op != O else wc
    bc_p = jnp.pad(bc, ((0, Op - O),)) if Op != O else bc

    # Batch chunking: split across the two TensorCores only where they exist
    # (v7x). On single-TC v5e/v6e a split just doubles the serial chain.
    num_tc = _num_tensorcores()
    Bb = B // 2 if (num_tc >= 2 and B % 16 == 0) else B
    nb = B // Bb

    # Interleave two independent batch-row sub-chains inside the serial loop
    # when each half stays 8-sublane aligned.
    split_rows = (Bb >= 16) and (Bb % 16 == 0)

    # Time chunking (inner, sequential grid axis). Prefer a single big chunk
    # so the hoisted projections get a large M and grid overhead is amortized;
    # cap it with an explicit VMEM budget that is safe for v7x's 64 MiB.
    if time_block is not None:
        Tt = max(1, min(time_block, T))
    else:
        budget = 40 * 1024 * 1024
        # per-time-step VMEM: u+s scratch + double-buffered x/out blocks (f32)
        bytes_per_t = 4 * Bb * (2 * S + 2 * (D_in + Op))
        Tt = max(1, min(T, max(8, budget // max(bytes_per_t, 1)), 512))
    n_t = -(-T // Tt)
    T_pad = n_t * Tt

    # Full unroll for small chunks; partial unroll (8) keeps LLO scheduling
    # visibility (needed for the interleaved chains) without stream bloat.
    unroll = Tt if Tt <= 32 else 8

    x_tm = jnp.transpose(x, (1, 0, 2))                    # (T, B, D_in)
    if T_pad != T:
        x_tm = jnp.pad(x_tm, ((0, T_pad - T), (0, 0), (0, 0)))
    # NOTE: D_in=64 only half-fills the MXU contraction width; padding x/wb to
    # 128 is possible but the input projection is far off the critical path.

    bias_ab = (ba + bb).reshape(1, S)                     # fold the two biases
    bc2 = bc_p.reshape(1, Op)

    kernel = functools.partial(mamba_ssm_kernel,
                               split_rows=split_rows, unroll=unroll)

    out_tm = pl.pallas_call(
        kernel,
        out_shape=jax.ShapeDtypeStruct((T_pad, B, Op), jnp.float32),
        grid=(nb, n_t),
        in_specs=[
            pl.BlockSpec((Tt, Bb, D_in), lambda b, t: (t, b, 0)),   # x chunk
            pl.BlockSpec((S, S), lambda b, t: (0, 0)),              # wa
            pl.BlockSpec((D_in, S), lambda b, t: (0, 0)),           # wb
            pl.BlockSpec((1, S), lambda b, t: (0, 0)),              # ba + bb
            pl.BlockSpec((S, Op), lambda b, t: (0, 0)),             # wc (padded)
            pl.BlockSpec((1, Op), lambda b, t: (0, 0)),             # bc (padded)
        ],
        out_specs=pl.BlockSpec((Tt, Bb, Op), lambda b, t: (t, b, 0)),
        scratch_shapes=[
            pltpu.VMEM((Bb, S), jnp.float32),        # recurrent state
            pltpu.VMEM((Tt, Bb, S), jnp.float32),    # pre-projected inputs u
            pltpu.VMEM((Tt, Bb, S), jnp.float32),    # per-step states
        ],
        compiler_params=pltpu.CompilerParams(
            dimension_semantics=("parallel", "arbitrary"),
            vmem_limit_bytes=48 * 1024 * 1024,
        ),
    )(x_tm, wa, wb, bias_ab, wc_p, bc2)

    out_tm = out_tm[:T, :, :O]                            # drop time/lane pad
    return jnp.transpose(out_tm, (1, 0, 2))               # (B, T, O)
    # TODO(synk): bf16 cast of wa / state carry for the recurrent dot (f32
    # accumulation) once a tolerance looser than 1e-4 is acceptable.


def init_params(key, state_dim, input_dim, output_dim):
    """Deterministic synthetic parameters (shapes match the nn.Linear layers).

    nn.Linear(in, out) stores W of shape (out, in); we keep the transposed
    (in, out) layout so the kernel right-multiplies directly on the MXU.
    """
    k = jax.random.split(key, 6)
    scale = 0.05
    wa = scale * jax.random.normal(k[0], (state_dim, state_dim), jnp.float32)
    ba = scale * jax.random.normal(k[1], (state_dim,), jnp.float32)
    wb = scale * jax.random.normal(k[2], (input_dim, state_dim), jnp.float32)
    bb = scale * jax.random.normal(k[3], (state_dim,), jnp.float32)
    wc = scale * jax.random.normal(k[4], (state_dim, output_dim), jnp.float32)
    bc = scale * jax.random.normal(k[5], (output_dim,), jnp.float32)
    return wa, ba, wb, bb, wc, bc


def mamba_ssm_ref(x, params):
    """Pure-JAX reference matching the PyTorch forward."""
    wa, ba, wb, bb, wc, bc = params
    B, T, _ = x.shape
    S = wa.shape[0]

    def step(state, x_t):
        u = x_t @ wb + bb
        state = jnp.tanh(state @ wa + ba + u)
        y = state @ wc + bc
        return state, y

    state0 = jnp.zeros((B, S), jnp.float32)
    _, ys = lax.scan(step, state0, jnp.transpose(x, (1, 0, 2)))
    return jnp.transpose(ys, (1, 0, 2))


if __name__ == "__main__":
    # Small shapes consistent with the module (scaled down from
    # batch=32, seq=100, input=64, state=128, output=32).
    batch_size = 16
    seq_len = 20
    input_dim = 64
    state_dim = 128
    output_dim = 32

    key = jax.random.PRNGKey(0)
    kx, kp = jax.random.split(key)
    x = jax.random.normal(kx, (batch_size, seq_len, input_dim), jnp.float32)
    params = init_params(kp, state_dim, input_dim, output_dim)

    ref = jax.block_until_ready(mamba_ssm_ref(x, params))

    # Default path: single large time chunk (few grid steps).
    out = jax.block_until_ready(mamba_ssm_forward(x, params))
    assert out.shape == (batch_size, seq_len, output_dim), out.shape
    err = float(jnp.max(jnp.abs(out - ref)))
    assert err < 1e-4, err

    # Chunked path: exercises time padding + state carry across time chunks.
    out2 = jax.block_until_ready(mamba_ssm_forward(x, params, time_block=8))
    err2 = float(jnp.max(jnp.abs(out2 - ref)))
    assert err2 < 1e-4, err2

    print("KERNEL_OK")
</pallas_src>

<mosaic_0001>
module attributes {stable_mosaic.version = 11 : i64} {
  func.func @mamba_ssm_kernel(%arg0: i32, %arg1: i32, %arg2: memref<20x16x64xf32, #tpu.memory_space<vmem>>, %arg3: memref<128x128xf32, #tpu.memory_space<vmem>>, %arg4: memref<64x128xf32, #tpu.memory_space<vmem>>, %arg5: memref<1x128xf32, #tpu.memory_space<vmem>>, %arg6: memref<128x128xf32, #tpu.memory_space<vmem>>, %arg7: memref<1x128xf32, #tpu.memory_space<vmem>>, %arg8: memref<20x16x128xf32, #tpu.memory_space<vmem>>, %arg9: memref<16x128xf32, #tpu.memory_space<vmem>>, %arg10: memref<20x16x128xf32, #tpu.memory_space<vmem>>, %arg11: memref<20x16x128xf32, #tpu.memory_space<vmem>>) attributes {dimension_semantics = [#tpu.dimension_semantics<parallel>, #tpu.dimension_semantics<arbitrary>], iteration_bounds = array<i64: 1, 1>, scalar_prefetch = 0 : i64, scratch_operands = 3 : i64, tpu.core_type = #tpu.core_type<tc>, window_params = [{transform_indices = @transform_0, window_bounds = array<i64: 20, 16, 64>}, {pipeline_mode = #tpu.pipeline_mode<synchronous>, transform_indices = @transform_1, window_bounds = array<i64: 128, 128>}, {pipeline_mode = #tpu.pipeline_mode<synchronous>, transform_indices = @transform_2, window_bounds = array<i64: 64, 128>}, {pipeline_mode = #tpu.pipeline_mode<synchronous>, transform_indices = @transform_3, window_bounds = array<i64: 1, 128>}, {pipeline_mode = #tpu.pipeline_mode<synchronous>, transform_indices = @transform_4, window_bounds = array<i64: 128, 128>}, {pipeline_mode = #tpu.pipeline_mode<synchronous>, transform_indices = @transform_5, window_bounds = array<i64: 1, 128>}, {transform_indices = @transform_6, window_bounds = array<i64: 20, 16, 128>}]} {
    %c0_i32 = arith.constant 0 : i32
    %0 = arith.cmpi eq, %arg1, %c0_i32 : i32
    %1 = arith.extui %0 : i1 to i32
    %c0_i32_0 = arith.constant 0 : i32
    %2 = arith.cmpi ne, %1, %c0_i32_0 : i32
    scf.if %2 {
      %cst_148 = arith.constant 0.000000e+00 : f32
      %347 = vector.broadcast %cst_148 : f32 to vector<16x128xf32>
      %c0_149 = arith.constant 0 : index
      %c0_150 = arith.constant 0 : index
      %348 = vector.load %arg9[%c0_149, %c0_150] : memref<16x128xf32, #tpu.memory_space<vmem>>, vector<16x128xf32>
      tpu.vector_store %arg9[%c0_149, %c0_150], %347 {strides = array<i32>} : memref<16x128xf32, #tpu.memory_space<vmem>>, vector<16x128xf32>,
    } else {
    }
    %c0 = arith.constant 0 : index
    %c0_1 = arith.constant 0 : index
    %c0_2 = arith.constant 0 : index
    %3 = vector.load %arg2[%c0, %c0_1, %c0_2] : memref<20x16x64xf32, #tpu.memory_space<vmem>>, vector<20x16x64xf32>
    %4 = vector.shape_cast %3 : vector<20x16x64xf32> to vector<320x64xf32>
    %c0_3 = arith.constant 0 : index
    %c0_4 = arith.constant 0 : index
    %5 = vector.load %arg4[%c0_3, %c0_4] : memref<64x128xf32, #tpu.memory_space<vmem>>, vector<64x128xf32>
    %cst = arith.constant dense<0.000000e+00> : vector<320x128xf32>
    %6 = tpu.matmul %4, %5, %cst {dimension_numbers = #tpu.dot_dimension_numbers<[1], [0], [0], [1], [0, 0, 1, 1], [], []>} : vector<320x64xf32>, vector<64x128xf32>, vector<320x128xf32> -> vector<320x128xf32>
    %c0_5 = arith.constant 0 : index
    %c0_6 = arith.constant 0 : index
    %7 = vector.load %arg5[%c0_5, %c0_6] : memref<1x128xf32, #tpu.memory_space<vmem>>, vector<1x128xf32>
    %8 = vector.broadcast %7 : vector<1x128xf32> to vector<320x128xf32>
    %9 = arith.addf %6, %8 : vector<320x128xf32>
    %10 = vector.shape_cast %9 : vector<320x128xf32> to vector<20x16x128xf32>
    %c0_7 = arith.constant 0 : index
    %c0_8 = arith.constant 0 : index
    %c0_9 = arith.constant 0 : index
    %11 = vector.load %arg10[%c0_7, %c0_8, %c0_9] : memref<20x16x128xf32, #tpu.memory_space<vmem>>, vector<20x16x128xf32>
    tpu.vector_store %arg10[%c0_7, %c0_8, %c0_9], %10 {strides = array<i32>} : memref<20x16x128xf32, #tpu.memory_space<vmem>>, vector<20x16x128xf32>,
    %c0_10 = arith.constant 0 : index
    %c0_11 = arith.constant 0 : index
    %12 = vector.load %arg3[%c0_10, %c0_11] : memref<128x128xf32, #tpu.memory_space<vmem>>, vector<128x128xf32>
    %c0_12 = arith.constant 0 : index
    %c0_13 = arith.constant 0 : index
    %13 = vector.load %arg9[%c0_12, %c0_13] : memref<16x128xf32, #tpu.memory_space<vmem>>, vector<16x128xf32>
    %14 = vector.extract_strided_slice %13 {offsets = [0, 0], sizes = [8, 128], strides = [1, 1]} : vector<16x128xf32> to vector<8x128xf32>
    %15 = vector.extract_strided_slice %13 {offsets = [8, 0], sizes = [8, 128], strides = [1, 1]} : vector<16x128xf32> to vector<8x128xf32>
    %c0_i32_14 = arith.constant 0 : i32
    %16 = arith.index_cast %c0_i32_14 : i32 to index
    %c0_15 = arith.constant 0 : index
    %c0_16 = arith.constant 0 : index
    %17 = vector.load %arg10[%16, %c0_15, %c0_16] : memref<20x16x128xf32, #tpu.memory_space<vmem>>, vector<1x16x128xf32>
    %18 = vector.shape_cast %17 : vector<1x16x128xf32> to vector<16x128xf32>
    %cst_17 = arith.constant dense<0.000000e+00> : vector<8x128xf32>
    %19 = tpu.matmul %14, %12, %cst_17 {dimension_numbers = #tpu.dot_dimension_numbers<[1], [0], [0], [1], [0, 0, 1, 1], [], []>} : vector<8x128xf32>, vector<128x128xf32>, vector<8x128xf32> -> vector<8x128xf32>
    %20 = vector.extract_strided_slice %18 {offsets = [0, 0], sizes = [8, 128], strides = [1, 1]} : vector<16x128xf32> to vector<8x128xf32>
    %21 = arith.addf %19, %20 : vector<8x128xf32>
    %22 = math.tanh %21 : vector<8x128xf32>
    %cst_18 = arith.constant dense<0.000000e+00> : vector<8x128xf32>
    %23 = tpu.matmul %15, %12, %cst_18 {dimension_numbers = #tpu.dot_dimension_numbers<[1], [0], [0], [1], [0, 0, 1, 1], [], []>} : vector<8x128xf32>, vector<128x128xf32>, vector<8x128xf32> -> vector<8x128xf32>
    %24 = vector.extract_strided_slice %18 {offsets = [8, 0], sizes = [8, 128], strides = [1, 1]} : vector<16x128xf32> to vector<8x128xf32>
    %25 = arith.addf %23, %24 : vector<8x128xf32>
    %26 = math.tanh %25 : vector<8x128xf32>
    %27 = tpu.concatenate %22, %26 in 0 : vector<8x128xf32>, vector<8x128xf32> -> vector<16x128xf32>
    %28 = arith.index_cast %c0_i32_14 : i32 to index
    %c0_19 = arith.constant 0 : index
    %c0_20 = arith.constant 0 : index
    %29 = vector.load %arg11[%28, %c0_19, %c0_20] : memref<20x16x128xf32, #tpu.memory_space<vmem>>, vector<1x16x128xf32>
    %30 = vector.shape_cast %29 : vector<1x16x128xf32> to vector<16x128xf32>
    %31 = vector.shape_cast %27 : vector<16x128xf32> to vector<1x16x128xf32>
    tpu.vector_store %arg11[%28, %c0_19, %c0_20], %31 {strides = array<i32>} : memref<20x16x128xf32, #tpu.memory_space<vmem>>, vector<1x16x128xf32>,
    %c1_i32 = arith.constant 1 : i32
    %32 = arith.index_cast %c1_i32 : i32 to index
    %c0_21 = arith.constant 0 : index
    %c0_22 = arith.constant 0 : index
    %33 = vector.load %arg10[%32, %c0_21, %c0_22] : memref<20x16x128xf32, #tpu.memory_space<vmem>>, vector<1x16x128xf32>
    %34 = vector.shape_cast %33 : vector<1x16x128xf32> to vector<16x128xf32>
    %cst_23 = arith.constant dense<0.000000e+00> : vector<8x128xf32>
    %35 = tpu.matmul %22, %12, %cst_23 {dimension_numbers = #tpu.dot_dimension_numbers<[1], [0], [0], [1], [0, 0, 1, 1], [], []>} : vector<8x128xf32>, vector<128x128xf32>, vector<8x128xf32> -> vector<8x128xf32>
    %36 = vector.extract_strided_slice %34 {offsets = [0, 0], sizes = [8, 128], strides = [1, 1]} : vector<16x128xf32> to vector<8x128xf32>
    %37 = arith.addf %35, %36 : vector<8x128xf32>
    %38 = math.tanh %37 : vector<8x128xf32>
    %cst_24 = arith.constant dense<0.000000e+00> : vector<8x128xf32>
    %39 = tpu.matmul %26, %12, %cst_24 {dimension_numbers = #tpu.dot_dimension_numbers<[1], [0], [0], [1], [0, 0, 1, 1], [], []>} : vector<8x128xf32>, vector<128x128xf32>, vector<8x128xf32> -> vector<8x128xf32>
    %40 = vector.extract_strided_slice %34 {offsets = [8, 0], sizes = [8, 128], strides = [1, 1]} : vector<16x128xf32> to vector<8x128xf32>
    %41 = arith.addf %39, %40 : vector<8x128xf32>
    %42 = math.tanh %41 : vector<8x128xf32>
    %43 = tpu.concatenate %38, %42 in 0 : vector<8x128xf32>, vector<8x128xf32> -> vector<16x128xf32>
    %44 = arith.index_cast %c1_i32 : i32 to index
    %c0_25 = arith.constant 0 : index
    %c0_26 = arith.constant 0 : index
    %45 = vector.load %arg11[%44, %c0_25, %c0_26] : memref<20x16x128xf32, #tpu.memory_space<vmem>>, vector<1x16x128xf32>
    %46 = vector.shape_cast %45 : vector<1x16x128xf32> to vector<16x128xf32>
    %47 = vector.shape_cast %43 : vector<16x128xf32> to vector<1x16x128xf32>
    tpu.vector_store %arg11[%44, %c0_25, %c0_26], %47 {strides = array<i32>} : memref<20x16x128xf32, #tpu.memory_space<vmem>>, vector<1x16x128xf32>,
    %c2_i32 = arith.constant 2 : i32
    %48 = arith.index_cast %c2_i32 : i32 to index
    %c0_27 = arith.constant 0 : index
    %c0_28 = arith.constant 0 : index
    %49 = vector.load %arg10[%48, %c0_27, %c0_28] : memref<20x16x128xf32, #tpu.memory_space<vmem>>, vector<1x16x128xf32>
    %50 = vector.shape_cast %49 : vector<1x16x128xf32> to vector<16x128xf32>
    %cst_29 = arith.constant dense<0.000000e+00> : vector<8x128xf32>
    %51 = tpu.matmul %38, %12, %cst_29 {dimension_numbers = #tpu.dot_dimension_numbers<[1], [0], [0], [1], [0, 0, 1, 1], [], []>} : vector<8x128xf32>, vector<128x128xf32>, vector<8x128xf32> -> vector<8x128xf32>
    %52 = vector.extract_strided_slice %50 {offsets = [0, 0], sizes = [8, 128], strides = [1, 1]} : vector<16x128xf32> to vector<8x128xf32>
    %53 = arith.addf %51, %52 : vector<8x128xf32>
    %54 = math.tanh %53 : vector<8x128xf32>
    %cst_30 = arith.constant dense<0.000000e+00> : vector<8x128xf32>
    %55 = tpu.matmul %42, %12, %cst_30 {dimension_numbers = #tpu.dot_dimension_numbers<[1], [0], [0], [1], [0, 0, 1, 1], [], []>} : vector<8x128xf32>, vector<128x128xf32>, vector<8x128xf32> -> vector<8x128xf32>
    %56 = vector.extract_strided_slice %50 {offsets = [8, 0], sizes = [8, 128], strides = [1, 1]} : vector<16x128xf32> to vector<8x128xf32>
    %57 = arith.addf %55, %56 : vector<8x128xf32>
    %58 = math.tanh %57 : vector<8x128xf32>
    %59 = tpu.concatenate %54, %58 in 0 : vector<8x128xf32>, vector<8x128xf32> -> vector<16x128xf32>
    %60 = arith.index_cast %c2_i32 : i32 to index
    %c0_31 = arith.constant 0 : index
    %c0_32 = arith.constant 0 : index
    %61 = vector.load %arg11[%60, %c0_31, %c0_32] : memref<20x16x128xf32, #tpu.memory_space<vmem>>, vector<1x16x128xf32>
    %62 = vector.shape_cast %61 : vector<1x16x128xf32> to vector<16x128xf32>
    %63 = vector.shape_cast %59 : vector<16x128xf32> to vector<1x16x128xf32>
    tpu.vector_store %arg11[%60, %c0_31, %c0_32], %63 {strides = array<i32>} : memref<20x16x128xf32, #tpu.memory_space<vmem>>, vector<1x16x128xf32>,
    %c3_i32 = arith.constant 3 : i32
    %64 = arith.index_cast %c3_i32 : i32 to index
    %c0_33 = arith.constant 0 : index
    %c0_34 = arith.constant 0 : index
    %65 = vector.load %arg10[%64, %c0_33, %c0_34] : memref<20x16x128xf32, #tpu.memory_space<vmem>>, vector<1x16x128xf32>
    %66 = vector.shape_cast %65 : vector<1x16x128xf32> to vector<16x128xf32>
    %cst_35 = arith.constant dense<0.000000e+00> : vector<8x128xf32>
    %67 = tpu.matmul %54, %12, %cst_35 {dimension_numbers = #tpu.dot_dimension_numbers<[1], [0], [0], [1], [0, 0, 1, 1], [], []>} : vector<8x128xf32>, vector<128x128xf32>, vector<8x128xf32> -> vector<8x128xf32>
    %68 = vector.extract_strided_slice %66 {offsets = [0, 0], sizes = [8, 128], strides = [1, 1]} : vector<16x128xf32> to vector<8x128xf32>
    %69 = arith.addf %67, %68 : vector<8x128xf32>
    %70 = math.tanh %69 : vector<8x128xf32>
    %cst_36 = arith.constant dense<0.000000e+00> : vector<8x128xf32>
    %71 = tpu.matmul %58, %12, %cst_36 {dimension_numbers = #tpu.dot_dimension_numbers<[1], [0], [0], [1], [0, 0, 1, 1], [], []>} : vector<8x128xf32>, vector<128x128xf32>, vector<8x128xf32> -> vector<8x128xf32>
    %72 = vector.extract_strided_slice %66 {offsets = [8, 0], sizes = [8, 128], strides = [1, 1]} : vector<16x128xf32> to vector<8x128xf32>
    %73 = arith.addf %71, %72 : vector<8x128xf32>
    %74 = math.tanh %73 : vector<8x128xf32>
    %75 = tpu.concatenate %70, %74 in 0 : vector<8x128xf32>, vector<8x128xf32> -> vector<16x128xf32>
    %76 = arith.index_cast %c3_i32 : i32 to index
    %c0_37 = arith.constant 0 : index
    %c0_38 = arith.constant 0 : index
    %77 = vector.load %arg11[%76, %c0_37, %c0_38] : memref<20x16x128xf32, #tpu.memory_space<vmem>>, vector<1x16x128xf32>
    %78 = vector.shape_cast %77 : vector<1x16x128xf32> to vector<16x128xf32>
    %79 = vector.shape_cast %75 : vector<16x128xf32> to vector<1x16x128xf32>
    tpu.vector_store %arg11[%76, %c0_37, %c0_38], %79 {strides = array<i32>} : memref<20x16x128xf32, #tpu.memory_space<vmem>>, vector<1x16x128xf32>,
    %c4_i32 = arith.constant 4 : i32
    %80 = arith.index_cast %c4_i32 : i32 to index
    %c0_39 = arith.constant 0 : index
    %c0_40 = arith.constant 0 : index
    %81 = vector.load %arg10[%80, %c0_39, %c0_40] : memref<20x16x128xf32, #tpu.memory_space<vmem>>, vector<1x16x128xf32>
    %82 = vector.shape_cast %81 : vector<1x16x128xf32> to vector<16x128xf32>
    %cst_41 = arith.constant dense<0.000000e+00> : vector<8x128xf32>
    %83 = tpu.matmul %70, %12, %cst_41 {dimension_numbers = #tpu.dot_dimension_numbers<[1], [0], [0], [1], [0, 0, 1, 1], [], []>} : vector<8x128xf32>, vector<128x128xf32>, vector<8x128xf32> -> vector<8x128xf32>
    %84 = vector.extract_strided_slice %82 {offsets = [0, 0], sizes = [8, 128], strides = [1, 1]} : vector<16x128xf32> to vector<8x128xf32>
    %85 = arith.addf %83, %84 : vector<8x128xf32>
    %86 = math.tanh %85 : vector<8x128xf32>
    %cst_42 = arith.constant dense<0.000000e+00> : vector<8x128xf32>
    %87 = tpu.matmul %74, %12, %cst_42 {dimension_numbers = #tpu.dot_dimension_numbers<[1], [0], [0], [1], [0, 0, 1, 1], [], []>} : vector<8x128xf32>, vector<128x128xf32>, vector<8x128xf32> -> vector<8x128xf32>
    %88 = vector.extract_strided_slice %82 {offsets = [8, 0], sizes = [8, 128], strides = [1, 1]} : vector<16x128xf32> to vector<8x128xf32>
    %89 = arith.addf %87, %88 : vector<8x128xf32>
    %90 = math.tanh %89 : vector<8x128xf32>
    %91 = tpu.concatenate %86, %90 in 0 : vector<8x128xf32>, vector<8x128xf32> -> vector<16x128xf32>
    %92 = arith.index_cast %c4_i32 : i32 to index
    %c0_43 = arith.constant 0 : index
    %c0_44 = arith.constant 0 : index
    %93 = vector.load %arg11[%92, %c0_43, %c0_44] : memref<20x16x128xf32, #tpu.memory_space<vmem>>, vector<1x16x128xf32>
    %94 = vector.shape_cast %93 : vector<1x16x128xf32> to vector<16x128xf32>
    %95 = vector.shape_cast %91 : vector<16x128xf32> to vector<1x16x128xf32>
    tpu.vector_store %arg11[%92, %c0_43, %c0_44], %95 {strides = array<i32>} : memref<20x16x128xf32, #tpu.memory_space<vmem>>, vector<1x16x128xf32>,
    %c5_i32 = arith.constant 5 : i32
    %96 = arith.index_cast %c5_i32 : i32 to index
    %c0_45 = arith.constant 0 : index
    %c0_46 = arith.constant 0 : index
    %97 = vector.load %arg10[%96, %c0_45, %c0_46] : memref<20x16x128xf32, #tpu.memory_space<vmem>>, vector<1x16x128xf32>
    %98 = vector.shape_cast %97 : vector<1x16x128xf32> to vector<16x128xf32>
    %cst_47 = arith.constant dense<0.000000e+00> : vector<8x128xf32>
    %99 = tpu.matmul %86, %12, %cst_47 {dimension_numbers = #tpu.dot_dimension_numbers<[1], [0], [0], [1], [0, 0, 1, 1], [], []>} : vector<8x128xf32>, vector<128x128xf32>, vector<8x128xf32> -> vector<8x128xf32>
    %100 = vector.extract_strided_slice %98 {offsets = [0, 0], sizes = [8, 128], strides = [1, 1]} : vector<16x128xf32> to vector<8x128xf32>
    %101 = arith.addf %99, %100 : vector<8x128xf32>
    %102 = math.tanh %101 : vector<8x128xf32>
    %cst_48 = arith.constant dense<0.000000e+00> : vector<8x128xf32>
    %103 = tpu.matmul %90, %12, %cst_48 {dimension_numbers = #tpu.dot_dimension_numbers<[1], [0], [0], [1], [0, 0, 1, 1], [], []>} : vector<8x128xf32>, vector<128x128xf32>, vector<8x128xf32> -> vector<8x128xf32>
    %104 = vector.extract_strided_slice %98 {offsets = [8, 0], sizes = [8, 128], strides = [1, 1]} : vector<16x128xf32> to vector<8x128xf32>
    %105 = arith.addf %103, %104 : vector<8x128xf32>
    %106 = math.tanh %105 : vector<8x128xf32>
    %107 = tpu.concatenate %102, %106 in 0 : vector<8x128xf32>, vector<8x128xf32> -> vector<16x128xf32>
    %108 = arith.index_cast %c5_i32 : i32 to index
    %c0_49 = arith.constant 0 : index
    %c0_50 = arith.constant 0 : index
    %109 = vector.load %arg11[%108, %c0_49, %c0_50] : memref<20x16x128xf32, #tpu.memory_space<vmem>>, vector<1x16x128xf32>
    %110 = vector.shape_cast %109 : vector<1x16x128xf32> to vector<16x128xf32>
    %111 = vector.shape_cast %107 : vector<16x128xf32> to vector<1x16x128xf32>
    tpu.vector_store %arg11[%108, %c0_49, %c0_50], %111 {strides = array<i32>} : memref<20x16x128xf32, #tpu.memory_space<vmem>>, vector<1x16x128xf32>,
    %c6_i32 = arith.constant 6 : i32
    %112 = arith.index_cast %c6_i32 : i32 to index
    %c0_51 = arith.constant 0 : index
    %c0_52 = arith.constant 0 : index
    %113 = vector.load %arg10[%112, %c0_51, %c0_52] : memref<20x16x128xf32, #tpu.memory_space<vmem>>, vector<1x16x128xf32>
    %114 = vector.shape_cast %113 : vector<1x16x128xf32> to vector<16x128xf32>
    %cst_53 = arith.constant dense<0.000000e+00> : vector<8x128xf32>
    %115 = tpu.matmul %102, %12, %cst_53 {dimension_numbers = #tpu.dot_dimension_numbers<[1], [0], [0], [1], [0, 0, 1, 1], [], []>} : vector<8x128xf32>, vector<128x128xf32>, vector<8x128xf32> -> vector<8x128xf32>
    %116 = vector.extract_strided_slice %114 {offsets = [0, 0], sizes = [8, 128], strides = [1, 1]} : vector<16x128xf32> to vector<8x128xf32>
    %117 = arith.addf %115, %116 : vector<8x128xf32>
    %118 = math.tanh %117 : vector<8x128xf32>
    %cst_54 = arith.constant dense<0.000000e+00> : vector<8x128xf32>
    %119 = tpu.matmul %106, %12, %cst_54 {dimension_numbers = #tpu.dot_dimension_numbers<[1], [0], [0], [1], [0, 0, 1, 1], [], []>} : vector<8x128xf32>, vector<128x128xf32>, vector<8x128xf32> -> vector<8x128xf32>
    %120 = vector.extract_strided_slice %114 {offsets = [8, 0], sizes = [8, 128], strides = [1, 1]} : vector<16x128xf32> to vector<8x128xf32>
    %121 = arith.addf %119, %120 : vector<8x128xf32>
    %122 = math.tanh %121 : vector<8x128xf32>
    %123 = tpu.concatenate %118, %122 in 0 : vector<8x128xf32>, vector<8x128xf32> -> vector<16x128xf32>
    %124 = arith.index_cast %c6_i32 : i32 to index
    %c0_55 = arith.constant 0 : index
    %c0_56 = arith.constant 0 : index
    %125 = vector.load %arg11[%124, %c0_55, %c0_56] : memref<20x16x128xf32, #tpu.memory_space<vmem>>, vector<1x16x128xf32>
    %126 = vector.shape_cast %125 : vector<1x16x128xf32> to vector<16x128xf32>
    %127 = vector.shape_cast %123 : vector<16x128xf32> to vector<1x16x128xf32>
    tpu.vector_store %arg11[%124, %c0_55, %c0_56], %127 {strides = array<i32>} : memref<20x16x128xf32, #tpu.memory_space<vmem>>, vector<1x16x128xf32>,
    %c7_i32 = arith.constant 7 : i32
    %128 = arith.index_cast %c7_i32 : i32 to index
    %c0_57 = arith.constant 0 : index
    %c0_58 = arith.constant 0 : index
    %129 = vector.load %arg10[%128, %c0_57, %c0_58] : memref<20x16x128xf32, #tpu.memory_space<vmem>>, vector<1x16x128xf32>
    %130 = vector.shape_cast %129 : vector<1x16x128xf32> to vector<16x128xf32>
    %cst_59 = arith.constant dense<0.000000e+00> : vector<8x128xf32>
    %131 = tpu.matmul %118, %12, %cst_59 {dimension_numbers = #tpu.dot_dimension_numbers<[1], [0], [0], [1], [0, 0, 1, 1], [], []>} : vector<8x128xf32>, vector<128x128xf32>, vector<8x128xf32> -> vector<8x128xf32>
    %132 = vector.extract_strided_slice %130 {offsets = [0, 0], sizes = [8, 128], strides = [1, 1]} : vector<16x128xf32> to vector<8x128xf32>
    %133 = arith.addf %131, %132 : vector<8x128xf32>
    %134 = math.tanh %133 : vector<8x128xf32>
    %cst_60 = arith.constant dense<0.000000e+00> : vector<8x128xf32>
    %135 = tpu.matmul %122, %12, %cst_60 {dimension_numbers = #tpu.dot_dimension_numbers<[1], [0], [0], [1], [0, 0, 1, 1], [], []>} : vector<8x128xf32>, vector<128x128xf32>, vector<8x128xf32> -> vector<8x128xf32>
    %136 = vector.extract_strided_slice %130 {offsets = [8, 0], sizes = [8, 128], strides = [1, 1]} : vector<16x128xf32> to vector<8x128xf32>
    %137 = arith.addf %135, %136 : vector<8x128xf32>
    %138 = math.tanh %137 : vector<8x128xf32>
    %139 = tpu.concatenate %134, %138 in 0 : vector<8x128xf32>, vector<8x128xf32> -> vector<16x128xf32>
    %140 = arith.index_cast %c7_i32 : i32 to index
    %c0_61 = arith.constant 0 : index
    %c0_62 = arith.constant 0 : index
    %141 = vector.load %arg11[%140, %c0_61, %c0_62] : memref<20x16x128xf32, #tpu.memory_space<vmem>>, vector<1x16x128xf32>
    %142 = vector.shape_cast %141 : vector<1x16x128xf32> to vector<16x128xf32>
    %143 = vector.shape_cast %139 : vector<16x128xf32> to vector<1x16x128xf32>
    tpu.vector_store %arg11[%140, %c0_61, %c0_62], %143 {strides = array<i32>} : memref<20x16x128xf32, #tpu.memory_space<vmem>>, vector<1x16x128xf32>,
    %c8_i32 = arith.constant 8 : i32
    %144 = arith.index_cast %c8_i32 : i32 to index
    %c0_63 = arith.constant 0 : index
    %c0_64 = arith.constant 0 : index
    %145 = vector.load %arg10[%144, %c0_63, %c0_64] : memref<20x16x128xf32, #tpu.memory_space<vmem>>, vector<1x16x128xf32>
    %146 = vector.shape_cast %145 : vector<1x16x128xf32> to vector<16x128xf32>
    %cst_65 = arith.constant dense<0.000000e+00> : vector<8x128xf32>
    %147 = tpu.matmul %134, %12, %cst_65 {dimension_numbers = #tpu.dot_dimension_numbers<[1], [0], [0], [1], [0, 0, 1, 1], [], []>} : vector<8x128xf32>, vector<128x128xf32>, vector<8x128xf32> -> vector<8x128xf32>
    %148 = vector.extract_strided_slice %146 {offsets = [0, 0], sizes = [8, 128], strides = [1, 1]} : vector<16x128xf32> to vector<8x128xf32>
    %149 = arith.addf %147, %148 : vector<8x128xf32>
    %150 = math.tanh %149 : vector<8x128xf32>
    %cst_66 = arith.constant dense<0.000000e+00> : vector<8x128xf32>
    %151 = tpu.matmul %138, %12, %cst_66 {dimension_numbers = #tpu.dot_dimension_numbers<[1], [0], [0], [1], [0, 0, 1, 1], [], []>} : vector<8x128xf32>, vector<128x128xf32>, vector<8x128xf32> -> vector<8x128xf32>
    %152 = vector.extract_strided_slice %146 {offsets = [8, 0], sizes = [8, 128], strides = [1, 1]} : vector<16x128xf32> to vector<8x128xf32>
    %153 = arith.addf %151, %152 : vector<8x128xf32>
    %154 = math.tanh %153 : vector<8x128xf32>
    %155 = tpu.concatenate %150, %154 in 0 : vector<8x128xf32>, vector<8x128xf32> -> vector<16x128xf32>
    %156 = arith.index_cast %c8_i32 : i32 to index
    %c0_67 = arith.constant 0 : index
    %c0_68 = arith.constant 0 : index
    %157 = vector.load %arg11[%156, %c0_67, %c0_68] : memref<20x16x128xf32, #tpu.memory_space<vmem>>, vector<1x16x128xf32>
    %158 = vector.shape_cast %157 : vector<1x16x128xf32> to vector<16x128xf32>
    %159 = vector.shape_cast %155 : vector<16x128xf32> to vector<1x16x128xf32>
    tpu.vector_store %arg11[%156, %c0_67, %c0_68], %159 {strides = array<i32>} : memref<20x16x128xf32, #tpu.memory_space<vmem>>, vector<1x16x128xf32>,
    %c9_i32 = arith.constant 9 : i32
    %160 = arith.index_cast %c9_i32 : i32 to index
    %c0_69 = arith.constant 0 : index
    %c0_70 = arith.constant 0 : index
    %161 = vector.load %arg10[%160, %c0_69, %c0_70] : memref<20x16x128xf32, #tpu.memory_space<vmem>>, vector<1x16x128xf32>
    %162 = vector.shape_cast %161 : vector<1x16x128xf32> to vector<16x128xf32>
    %cst_71 = arith.constant dense<0.000000e+00> : vector<8x128xf32>
    %163 = tpu.matmul %150, %12, %cst_71 {dimension_numbers = #tpu.dot_dimension_numbers<[1], [0], [0], [1], [0, 0, 1, 1], [], []>} : vector<8x128xf32>, vector<128x128xf32>, vector<8x128xf32> -> vector<8x128xf32>
    %164 = vector.extract_strided_slice %162 {offsets = [0, 0], sizes = [8, 128], strides = [1, 1]} : vector<16x128xf32> to vector<8x128xf32>
    %165 = arith.addf %163, %164 : vector<8x128xf32>
    %166 = math.tanh %165 : vector<8x128xf32>
    %cst_72 = arith.constant dense<0.000000e+00> : vector<8x128xf32>
    %167 = tpu.matmul %154, %12, %cst_72 {dimension_numbers = #tpu.dot_dimension_numbers<[1], [0], [0], [1], [0, 0, 1, 1], [], []>} : vector<8x128xf32>, vector<128x128xf32>, vector<8x128xf32> -> vector<8x128xf32>
    %168 = vector.extract_strided_slice %162 {offsets = [8, 0], sizes = [8, 128], strides = [1, 1]} : vector<16x128xf32> to vector<8x128xf32>
    %169 = arith.addf %167, %168 : vector<8x128xf32>
    %170 = math.tanh %169 : vector<8x128xf32>
    %171 = tpu.concatenate %166, %170 in 0 : vector<8x128xf32>, vector<8x128xf32> -> vector<16x128xf32>
    %172 = arith.index_cast %c9_i32 : i32 to index
    %c0_73 = arith.constant 0 : index
    %c0_74 = arith.constant 0 : index
    %173 = vector.load %arg11[%172, %c0_73, %c0_74] : memref<20x16x128xf32, #tpu.memory_space<vmem>>, vector<1x16x128xf32>
    %174 = vector.shape_cast %173 : vector<1x16x128xf32> to vector<16x128xf32>
    %175 = vector.shape_cast %171 : vector<16x128xf32> to vector<1x16x128xf32>
    tpu.vector_store %arg11[%172, %c0_73, %c0_74], %175 {strides = array<i32>} : memref<20x16x128xf32, #tpu.memory_space<vmem>>, vector<1x16x128xf32>,
    %c10_i32 = arith.constant 10 : i32
    %176 = arith.index_cast %c10_i32 : i32 to index
    %c0_75 = arith.constant 0 : index
    %c0_76 = arith.constant 0 : index
    %177 = vector.load %arg10[%176, %c0_75, %c0_76] : memref<20x16x128xf32, #tpu.memory_space<vmem>>, vector<1x16x128xf32>
    %178 = vector.shape_cast %177 : vector<1x16x128xf32> to vector<16x128xf32>
    %cst_77 = arith.constant dense<0.000000e+00> : vector<8x128xf32>
    %179 = tpu.matmul %166, %12, %cst_77 {dimension_numbers = #tpu.dot_dimension_numbers<[1], [0], [0], [1], [0, 0, 1, 1], [], []>} : vector<8x128xf32>, vector<128x128xf32>, vector<8x128xf32> -> vector<8x128xf32>
    %180 = vector.extract_strided_slice %178 {offsets = [0, 0], sizes = [8, 128], strides = [1, 1]} : vector<16x128xf32> to vector<8x128xf32>
    %181 = arith.addf %179, %180 : vector<8x128xf32>
    %182 = math.tanh %181 : vector<8x128xf32>
    %cst_78 = arith.constant dense<0.000000e+00> : vector<8x128xf32>
    %183 = tpu.matmul %170, %12, %cst_78 {dimension_numbers = #tpu.dot_dimension_numbers<[1], [0], [0], [1], [0, 0, 1, 1], [], []>} : vector<8x128xf32>, vector<128x128xf32>, vector<8x128xf32> -> vector<8x128xf32>
    %184 = vector.extract_strided_slice %178 {offsets = [8, 0], sizes = [8, 128], strides = [1, 1]} : vector<16x128xf32> to vector<8x128xf32>
    %185 = arith.addf %183, %184 : vector<8x128xf32>
    %186 = math.tanh %185 : vector<8x128xf32>
    %187 = tpu.concatenate %182, %186 in 0 : vector<8x128xf32>, vector<8x128xf32> -> vector<16x128xf32>
    %188 = arith.index_cast %c10_i32 : i32 to index
    %c0_79 = arith.constant 0 : index
    %c0_80 = arith.constant 0 : index
    %189 = vector.load %arg11[%188, %c0_79, %c0_80] : memref<20x16x128xf32, #tpu.memory_space<vmem>>, vector<1x16x128xf32>
    %190 = vector.shape_cast %189 : vector<1x16x128xf32> to vector<16x128xf32>
    %191 = vector.shape_cast %187 : vector<16x128xf32> to vector<1x16x128xf32>
    tpu.vector_store %arg11[%188, %c0_79, %c0_80], %191 {strides = array<i32>} : memref<20x16x128xf32, #tpu.memory_space<vmem>>, vector<1x16x128xf32>,
    %c11_i32 = arith.constant 11 : i32
    %192 = arith.index_cast %c11_i32 : i32 to index
    %c0_81 = arith.constant 0 : index
    %c0_82 = arith.constant 0 : index
    %193 = vector.load %arg10[%192, %c0_81, %c0_82] : memref<20x16x128xf32, #tpu.memory_space<vmem>>, vector<1x16x128xf32>
    %194 = vector.shape_cast %193 : vector<1x16x128xf32> to vector<16x128xf32>
    %cst_83 = arith.constant dense<0.000000e+00> : vector<8x128xf32>
    %195 = tpu.matmul %182, %12, %cst_83 {dimension_numbers = #tpu.dot_dimension_numbers<[1], [0], [0], [1], [0, 0, 1, 1], [], []>} : vector<8x128xf32>, vector<128x128xf32>, vector<8x128xf32> -> vector<8x128xf32>
    %196 = vector.extract_strided_slice %194 {offsets = [0, 0], sizes = [8, 128], strides = [1, 1]} : vector<16x128xf32> to vector<8x128xf32>
    %197 = arith.addf %195, %196 : vector<8x128xf32>
    %198 = math.tanh %197 : vector<8x128xf32>
    %cst_84 = arith.constant dense<0.000000e+00> : vector<8x128xf32>
    %199 = tpu.matmul %186, %12, %cst_84 {dimension_numbers = #tpu.dot_dimension_numbers<[1], [0], [0], [1], [0, 0, 1, 1], [], []>} : vector<8x128xf32>, vector<128x128xf32>, vector<8x128xf32> -> vector<8x128xf32>
    %200 = vector.extract_strided_slice %194 {offsets = [8, 0], sizes = [8, 128], strides = [1, 1]} : vector<16x128xf32> to vector<8x128xf32>
    %201 = arith.addf %199, %200 : vector<8x128xf32>
    %202 = math.tanh %201 : vector<8x128xf32>
    %203 = tpu.concatenate %198, %202 in 0 : vector<8x128xf32>, vector<8x128xf32> -> vector<16x128xf32>
    %204 = arith.index_cast %c11_i32 : i32 to index
    %c0_85 = arith.constant 0 : index
    %c0_86 = arith.constant 0 : index
    %205 = vector.load %arg11[%204, %c0_85, %c0_86] : memref<20x16x128xf32, #tpu.memory_space<vmem>>, vector<1x16x128xf32>
    %206 = vector.shape_cast %205 : vector<1x16x128xf32> to vector<16x128xf32>
    %207 = vector.shape_cast %203 : vector<16x128xf32> to vector<1x16x128xf32>
    tpu.vector_store %arg11[%204, %c0_85, %c0_86], %207 {strides = array<i32>} : memref<20x16x128xf32, #tpu.memory_space<vmem>>, vector<1x16x128xf32>,
    %c12_i32 = arith.constant 12 : i32
    %208 = arith.index_cast %c12_i32 : i32 to index
    %c0_87 = arith.constant 0 : index
    %c0_88 = arith.constant 0 : index
    %209 = vector.load %arg10[%208, %c0_87, %c0_88] : memref<20x16x128xf32, #tpu.memory_space<vmem>>, vector<1x16x128xf32>
    %210 = vector.shape_cast %209 : vector<1x16x128xf32> to vector<16x128xf32>
    %cst_89 = arith.constant dense<0.000000e+00> : vector<8x128xf32>
    %211 = tpu.matmul %198, %12, %cst_89 {dimension_numbers = #tpu.dot_dimension_numbers<[1], [0], [0], [1], [0, 0, 1, 1], [], []>} : vector<8x128xf32>, vector<128x128xf32>, vector<8x128xf32> -> vector<8x128xf32>
    %212 = vector.extract_strided_slice %210 {offsets = [0, 0], sizes = [8, 128], strides = [1, 1]} : vector<16x128xf32> to vector<8x128xf32>
    %213 = arith.addf %211, %212 : vector<8x128xf32>
    %214 = math.tanh %213 : vector<8x128xf32>
    %cst_90 = arith.constant dense<0.000000e+00> : vector<8x128xf32>
    %215 = tpu.matmul %202, %12, %cst_90 {dimension_numbers = #tpu.dot_dimension_numbers<[1], [0], [0], [1], [0, 0, 1, 1], [], []>} : vector<8x128xf32>, vector<128x128xf32>, vector<8x128xf32> -> vector<8x128xf32>
    %216 = vector.extract_strided_slice %210 {offsets = [8, 0], sizes = [8, 128], strides = [1, 1]} : vector<16x128xf32> to vector<8x128xf32>
    %217 = arith.addf %215, %216 : vector<8x128xf32>
    %218 = math.tanh %217 : vector<8x128xf32>
    %219 = tpu.concatenate %214, %218 in 0 : vector<8x128xf32>, vector<8x128xf32> -> vector<16x128xf32>
    %220 = arith.index_cast %c12_i32 : i32 to index
    %c0_91 = arith.constant 0 : index
    %c0_92 = arith.constant 0 : index
    %221 = vector.load %arg11[%220, %c0_91, %c0_92] : memref<20x16x128xf32, #tpu.memory_space<vmem>>, vector<1x16x128xf32>
    %222 = vector.shape_cast %221 : vector<1x16x128xf32> to vector<16x128xf32>
    %223 = vector.shape_cast %219 : vector<16x128xf32> to vector<1x16x128xf32>
    tpu.vector_store %arg11[%220, %c0_91, %c0_92], %223 {strides = array<i32>} : memref<20x16x128xf32, #tpu.memory_space<vmem>>, vector<1x16x128xf32>,
    %c13_i32 = arith.constant 13 : i32
    %224 = arith.index_cast %c13_i32 : i32 to index
    %c0_93 = arith.constant 0 : index
    %c0_94 = arith.constant 0 : index
    %225 = vector.load %arg10[%224, %c0_93, %c0_94] : memref<20x16x128xf32, #tpu.memory_space<vmem>>, vector<1x16x128xf32>
    %226 = vector.shape_cast %225 : vector<1x16x128xf32> to vector<16x128xf32>
    %cst_95 = arith.constant dense<0.000000e+00> : vector<8x128xf32>
    %227 = tpu.matmul %214, %12, %cst_95 {dimension_numbers = #tpu.dot_dimension_numbers<[1], [0], [0], [1], [0, 0, 1, 1], [], []>} : vector<8x128xf32>, vector<128x128xf32>, vector<8x128xf32> -> vector<8x128xf32>
    %228 = vector.extract_strided_slice %226 {offsets = [0, 0], sizes = [8, 128], strides = [1, 1]} : vector<16x128xf32> to vector<8x128xf32>
    %229 = arith.addf %227, %228 : vector<8x128xf32>
    %230 = math.tanh %229 : vector<8x128xf32>
    %cst_96 = arith.constant dense<0.000000e+00> : vector<8x128xf32>
    %231 = tpu.matmul %218, %12, %cst_96 {dimension_numbers = #tpu.dot_dimension_numbers<[1], [0], [0], [1], [0, 0, 1, 1], [], []>} : vector<8x128xf32>, vector<128x128xf32>, vector<8x128xf32> -> vector<8x128xf32>
    %232 = vector.extract_strided_slice %226 {offsets = [8, 0], sizes = [8, 128], strides = [1, 1]} : vector<16x128xf32> to vector<8x128xf32>
    %233 = arith.addf %231, %232 : vector<8x128xf32>
    %234 = math.tanh %233 : vector<8x128xf32>
    %235 = tpu.concatenate %230, %234 in 0 : vector<8x128xf32>, vector<8x128xf32> -> vector<16x128xf32>
    %236 = arith.index_cast %c13_i32 : i32 to index
    %c0_97 = arith.constant 0 : index
    %c0_98 = arith.constant 0 : index
    %237 = vector.load %arg11[%236, %c0_97, %c0_98] : memref<20x16x128xf32, #tpu.memory_space<vmem>>, vector<1x16x128xf32>
    %238 = vector.shape_cast %237 : vector<1x16x128xf32> to vector<16x128xf32>
    %239 = vector.shape_cast %235 : vector<16x128xf32> to vector<1x16x128xf32>
    tpu.vector_store %arg11[%236, %c0_97, %c0_98], %239 {strides = array<i32>} : memref<20x16x128xf32, #tpu.memory_space<vmem>>, vector<1x16x128xf32>,
    %c14_i32 = arith.constant 14 : i32
    %240 = arith.index_cast %c14_i32 : i32 to index
    %c0_99 = arith.constant 0 : index
    %c0_100 = arith.constant 0 : index
    %241 = vector.load %arg10[%240, %c0_99, %c0_100] : memref<20x16x128xf32, #tpu.memory_space<vmem>>, vector<1x16x128xf32>
    %242 = vector.shape_cast %241 : vector<1x16x128xf32> to vector<16x128xf32>
    %cst_101 = arith.constant dense<0.000000e+00> : vector<8x128xf32>
    %243 = tpu.matmul %230, %12, %cst_101 {dimension_numbers = #tpu.dot_dimension_numbers<[1], [0], [0], [1], [0, 0, 1, 1], [], []>} : vector<8x128xf32>, vector<128x128xf32>, vector<8x128xf32> -> vector<8x128xf32>
    %244 = vector.extract_strided_slice %242 {offsets = [0, 0], sizes = [8, 128], strides = [1, 1]} : vector<16x128xf32> to vector<8x128xf32>
    %245 = arith.addf %243, %244 : vector<8x128xf32>
    %246 = math.tanh %245 : vector<8x128xf32>
    %cst_102 = arith.constant dense<0.000000e+00> : vector<8x128xf32>
    %247 = tpu.matmul %234, %12, %cst_102 {dimension_numbers = #tpu.dot_dimension_numbers<[1], [0], [0], [1], [0, 0, 1, 1], [], []>} : vector<8x128xf32>, vector<128x128xf32>, vector<8x128xf32> -> vector<8x128xf32>
    %248 = vector.extract_strided_slice %242 {offsets = [8, 0], sizes = [8, 128], strides = [1, 1]} : vector<16x128xf32> to vector<8x128xf32>
    %249 = arith.addf %247, %248 : vector<8x128xf32>
    %250 = math.tanh %249 : vector<8x128xf32>
    %251 = tpu.concatenate %246, %250 in 0 : vector<8x128xf32>, vector<8x128xf32> -> vector<16x128xf32>
    %252 = arith.index_cast %c14_i32 : i32 to index
    %c0_103 = arith.constant 0 : index
    %c0_104 = arith.constant 0 : index
    %253 = vector.load %arg11[%252, %c0_103, %c0_104] : memref<20x16x128xf32, #tpu.memory_space<vmem>>, vector<1x16x128xf32>
    %254 = vector.shape_cast %253 : vector<1x16x128xf32> to vector<16x128xf32>
    %255 = vector.shape_cast %251 : vector<16x128xf32> to vector<1x16x128xf32>
    tpu.vector_store %arg11[%252, %c0_103, %c0_104], %255 {strides = array<i32>} : memref<20x16x128xf32, #tpu.memory_space<vmem>>, vector<1x16x128xf32>,
    %c15_i32 = arith.constant 15 : i32
    %256 = arith.index_cast %c15_i32 : i32 to index
    %c0_105 = arith.constant 0 : index
    %c0_106 = arith.constant 0 : index
    %257 = vector.load %arg10[%256, %c0_105, %c0_106] : memref<20x16x128xf32, #tpu.memory_space<vmem>>, vector<1x16x128xf32>
    %258 = vector.shape_cast %257 : vector<1x16x128xf32> to vector<16x128xf32>
    %cst_107 = arith.constant dense<0.000000e+00> : vector<8x128xf32>
    %259 = tpu.matmul %246, %12, %cst_107 {dimension_numbers = #tpu.dot_dimension_numbers<[1], [0], [0], [1], [0, 0, 1, 1], [], []>} : vector<8x128xf32>, vector<128x128xf32>, vector<8x128xf32> -> vector<8x128xf32>
    %260 = vector.extract_strided_slice %258 {offsets = [0, 0], sizes = [8, 128], strides = [1, 1]} : vector<16x128xf32> to vector<8x128xf32>
    %261 = arith.addf %259, %260 : vector<8x128xf32>
    %262 = math.tanh %261 : vector<8x128xf32>
    %cst_108 = arith.constant dense<0.000000e+00> : vector<8x128xf32>
    %263 = tpu.matmul %250, %12, %cst_108 {dimension_numbers = #tpu.dot_dimension_numbers<[1], [0], [0], [1], [0, 0, 1, 1], [], []>} : vector<8x128xf32>, vector<128x128xf32>, vector<8x128xf32> -> vector<8x128xf32>
    %264 = vector.extract_strided_slice %258 {offsets = [8, 0], sizes = [8, 128], strides = [1, 1]} : vector<16x128xf32> to vector<8x128xf32>
    %265 = arith.addf %263, %264 : vector<8x128xf32>
    %266 = math.tanh %265 : vector<8x128xf32>
    %267 = tpu.concatenate %262, %266 in 0 : vector<8x128xf32>, vector<8x128xf32> -> vector<16x128xf32>
    %268 = arith.index_cast %c15_i32 : i32 to index
    %c0_109 = arith.constant 0 : index
    %c0_110 = arith.constant 0 : index
    %269 = vector.load %arg11[%268, %c0_109, %c0_110] : memref<20x16x128xf32, #tpu.memory_space<vmem>>, vector<1x16x128xf32>
    %270 = vector.shape_cast %269 : vector<1x16x128xf32> to vector<16x128xf32>
    %271 = vector.shape_cast %267 : vector<16x128xf32> to vector<1x16x128xf32>
    tpu.vector_store %arg11[%268, %c0_109, %c0_110], %271 {strides = array<i32>} : memref<20x16x128xf32, #tpu.memory_space<vmem>>, vector<1x16x128xf32>,
    %c16_i32 = arith.constant 16 : i32
    %272 = arith.index_cast %c16_i32 : i32 to index
    %c0_111 = arith.constant 0 : index
    %c0_112 = arith.constant 0 : index
    %273 = vector.load %arg10[%272, %c0_111, %c0_112] : memref<20x16x128xf32, #tpu.memory_space<vmem>>, vector<1x16x128xf32>
    %274 = vector.shape_cast %273 : vector<1x16x128xf32> to vector<16x128xf32>
    %cst_113 = arith.constant dense<0.000000e+00> : vector<8x128xf32>
    %275 = tpu.matmul %262, %12, %cst_113 {dimension_numbers = #tpu.dot_dimension_numbers<[1], [0], [0], [1], [0, 0, 1, 1], [], []>} : vector<8x128xf32>, vector<128x128xf32>, vector<8x128xf32> -> vector<8x128xf32>
    %276 = vector.extract_strided_slice %274 {offsets = [0, 0], sizes = [8, 128], strides = [1, 1]} : vector<16x128xf32> to vector<8x128xf32>
    %277 = arith.addf %275, %276 : vector<8x128xf32>
    %278 = math.tanh %277 : vector<8x128xf32>
    %cst_114 = arith.constant dense<0.000000e+00> : vector<8x128xf32>
    %279 = tpu.matmul %266, %12, %cst_114 {dimension_numbers = #tpu.dot_dimension_numbers<[1], [0], [0], [1], [0, 0, 1, 1], [], []>} : vector<8x128xf32>, vector<128x128xf32>, vector<8x128xf32> -> vector<8x128xf32>
    %280 = vector.extract_strided_slice %274 {offsets = [8, 0], sizes = [8, 128], strides = [1, 1]} : vector<16x128xf32> to vector<8x128xf32>
    %281 = arith.addf %279, %280 : vector<8x128xf32>
    %282 = math.tanh %281 : vector<8x128xf32>
    %283 = tpu.concatenate %278, %282 in 0 : vector<8x128xf32>, vector<8x128xf32> -> vector<16x128xf32>
    %284 = arith.index_cast %c16_i32 : i32 to index
    %c0_115 = arith.constant 0 : index
    %c0_116 = arith.constant 0 : index
    %285 = vector.load %arg11[%284, %c0_115, %c0_116] : memref<20x16x128xf32, #tpu.memory_space<vmem>>, vector<1x16x128xf32>
    %286 = vector.shape_cast %285 : vector<1x16x128xf32> to vector<16x128xf32>
    %287 = vector.shape_cast %283 : vector<16x128xf32> to vector<1x16x128xf32>
    tpu.vector_store %arg11[%284, %c0_115, %c0_116], %287 {strides = array<i32>} : memref<20x16x128xf32, #tpu.memory_space<vmem>>, vector<1x16x128xf32>,
    %c17_i32 = arith.constant 17 : i32
    %288 = arith.index_cast %c17_i32 : i32 to index
    %c0_117 = arith.constant 0 : index
    %c0_118 = arith.constant 0 : index
    %289 = vector.load %arg10[%288, %c0_117, %c0_118] : memref<20x16x128xf32, #tpu.memory_space<vmem>>, vector<1x16x128xf32>
    %290 = vector.shape_cast %289 : vector<1x16x128xf32> to vector<16x128xf32>
    %cst_119 = arith.constant dense<0.000000e+00> : vector<8x128xf32>
    %291 = tpu.matmul %278, %12, %cst_119 {dimension_numbers = #tpu.dot_dimension_numbers<[1], [0], [0], [1], [0, 0, 1, 1], [], []>} : vector<8x128xf32>, vector<128x128xf32>, vector<8x128xf32> -> vector<8x128xf32>
    %292 = vector.extract_strided_slice %290 {offsets = [0, 0], sizes = [8, 128], strides = [1, 1]} : vector<16x128xf32> to vector<8x128xf32>
    %293 = arith.addf %291, %292 : vector<8x128xf32>
    %294 = math.tanh %293 : vector<8x128xf32>
    %cst_120 = arith.constant dense<0.000000e+00> : vector<8x128xf32>
    %295 = tpu.matmul %282, %12, %cst_120 {dimension_numbers = #tpu.dot_dimension_numbers<[1], [0], [0], [1], [0, 0, 1, 1], [], []>} : vector<8x128xf32>, vector<128x128xf32>, vector<8x128xf32> -> vector<8x128xf32>
    %296 = vector.extract_strided_slice %290 {offsets = [8, 0], sizes = [8, 128], strides = [1, 1]} : vector<16x128xf32> to vector<8x128xf32>
    %297 = arith.addf %295, %296 : vector<8x128xf32>
    %298 = math.tanh %297 : vector<8x128xf32>
    %299 = tpu.concatenate %294, %298 in 0 : vector<8x128xf32>, vector<8x128xf32> -> vector<16x128xf32>
    %300 = arith.index_cast %c17_i32 : i32 to index
    %c0_121 = arith.constant 0 : index
    %c0_122 = arith.constant 0 : index
    %301 = vector.load %arg11[%300, %c0_121, %c0_122] : memref<20x16x128xf32, #tpu.memory_space<vmem>>, vector<1x16x128xf32>
    %302 = vector.shape_cast %301 : vector<1x16x128xf32> to vector<16x128xf32>
    %303 = vector.shape_cast %299 : vector<16x128xf32> to vector<1x16x128xf32>
    tpu.vector_store %arg11[%300, %c0_121, %c0_122], %303 {strides = array<i32>} : memref<20x16x128xf32, #tpu.memory_space<vmem>>, vector<1x16x128xf32>,
    %c18_i32 = arith.constant 18 : i32
    %304 = arith.index_cast %c18_i32 : i32 to index
    %c0_123 = arith.constant 0 : index
    %c0_124 = arith.constant 0 : index
    %305 = vector.load %arg10[%304, %c0_123, %c0_124] : memref<20x16x128xf32, #tpu.memory_space<vmem>>, vector<1x16x128xf32>
    %306 = vector.shape_cast %305 : vector<1x16x128xf32> to vector<16x128xf32>
    %cst_125 = arith.constant dense<0.000000e+00> : vector<8x128xf32>
    %307 = tpu.matmul %294, %12, %cst_125 {dimension_numbers = #tpu.dot_dimension_numbers<[1], [0], [0], [1], [0, 0, 1, 1], [], []>} : vector<8x128xf32>, vector<128x128xf32>, vector<8x128xf32> -> vector<8x128xf32>
    %308 = vector.extract_strided_slice %306 {offsets = [0, 0], sizes = [8, 128], strides = [1, 1]} : vector<16x128xf32> to vector<8x128xf32>
    %309 = arith.addf %307, %308 : vector<8x128xf32>
    %310 = math.tanh %309 : vector<8x128xf32>
    %cst_126 = arith.constant dense<0.000000e+00> : vector<8x128xf32>
    %311 = tpu.matmul %298, %12, %cst_126 {dimension_numbers = #tpu.dot_dimension_numbers<[1], [0], [0], [1], [0, 0, 1, 1], [], []>} : vector<8x128xf32>, vector<128x128xf32>, vector<8x128xf32> -> vector<8x128xf32>
    %312 = vector.extract_strided_slice %306 {offsets = [8, 0], sizes = [8, 128], strides = [1, 1]} : vector<16x128xf32> to vector<8x128xf32>
    %313 = arith.addf %311, %312 : vector<8x128xf32>
    %314 = math.tanh %313 : vector<8x128xf32>
    %315 = tpu.concatenate %310, %314 in 0 : vector<8x128xf32>, vector<8x128xf32> -> vector<16x128xf32>
    %316 = arith.index_cast %c18_i32 : i32 to index
    %c0_127 = arith.constant 0 : index
    %c0_128 = arith.constant 0 : index
    %317 = vector.load %arg11[%316, %c0_127, %c0_128] : memref<20x16x128xf32, #tpu.memory_space<vmem>>, vector<1x16x128xf32>
    %318 = vector.shape_cast %317 : vector<1x16x128xf32> to vector<16x128xf32>
    %319 = vector.shape_cast %315 : vector<16x128xf32> to vector<1x16x128xf32>
    tpu.vector_store %arg11[%316, %c0_127, %c0_128], %319 {strides = array<i32>} : memref<20x16x128xf32, #tpu.memory_space<vmem>>, vector<1x16x128xf32>,
    %c19_i32 = arith.constant 19 : i32
    %320 = arith.index_cast %c19_i32 : i32 to index
    %c0_129 = arith.constant 0 : index
    %c0_130 = arith.constant 0 : index
    %321 = vector.load %arg10[%320, %c0_129, %c0_130] : memref<20x16x128xf32, #tpu.memory_space<vmem>>, vector<1x16x128xf32>
    %322 = vector.shape_cast %321 : vector<1x16x128xf32> to vector<16x128xf32>
    %cst_131 = arith.constant dense<0.000000e+00> : vector<8x128xf32>
    %323 = tpu.matmul %310, %12, %cst_131 {dimension_numbers = #tpu.dot_dimension_numbers<[1], [0], [0], [1], [0, 0, 1, 1], [], []>} : vector<8x128xf32>, vector<128x128xf32>, vector<8x128xf32> -> vector<8x128xf32>
    %324 = vector.extract_strided_slice %322 {offsets = [0, 0], sizes = [8, 128], strides = [1, 1]} : vector<16x128xf32> to vector<8x128xf32>
    %325 = arith.addf %323, %324 : vector<8x128xf32>
    %326 = math.tanh %325 : vector<8x128xf32>
    %cst_132 = arith.constant dense<0.000000e+00> : vector<8x128xf32>
    %327 = tpu.matmul %314, %12, %cst_132 {dimension_numbers = #tpu.dot_dimension_numbers<[1], [0], [0], [1], [0, 0, 1, 1], [], []>} : vector<8x128xf32>, vector<128x128xf32>, vector<8x128xf32> -> vector<8x128xf32>
    %328 = vector.extract_strided_slice %322 {offsets = [8, 0], sizes = [8, 128], strides = [1, 1]} : vector<16x128xf32> to vector<8x128xf32>
    %329 = arith.addf %327, %328 : vector<8x128xf32>
    %330 = math.tanh %329 : vector<8x128xf32>
    %331 = tpu.concatenate %326, %330 in 0 : vector<8x128xf32>, vector<8x128xf32> -> vector<16x128xf32>
    %332 = arith.index_cast %c19_i32 : i32 to index
    %c0_133 = arith.constant 0 : index
    %c0_134 = arith.constant 0 : index
    %333 = vector.load %arg11[%332, %c0_133, %c0_134] : memref<20x16x128xf32, #tpu.memory_space<vmem>>, vector<1x16x128xf32>
    %334 = vector.shape_cast %333 : vector<1x16x128xf32> to vector<16x128xf32>
    %335 = vector.shape_cast %331 : vector<16x128xf32> to vector<1x16x128xf32>
    tpu.vector_store %arg11[%332, %c0_133, %c0_134], %335 {strides = array<i32>} : memref<20x16x128xf32, #tpu.memory_space<vmem>>, vector<1x16x128xf32>,
    %c20_i32 = arith.constant 20 : i32
    %336 = tpu.concatenate %326, %330 in 0 : vector<8x128xf32>, vector<8x128xf32> -> vector<16x128xf32>
    %c0_135 = arith.constant 0 : index
    %c0_136 = arith.constant 0 : index
    %337 = vector.load %arg9[%c0_135, %c0_136] : memref<16x128xf32, #tpu.memory_space<vmem>>, vector<16x128xf32>
    tpu.vector_store %arg9[%c0_135, %c0_136], %336 {strides = array<i32>} : memref<16x128xf32, #tpu.memory_space<vmem>>, vector<16x128xf32>,
    %c0_137 = arith.constant 0 : index
    %c0_138 = arith.constant 0 : index
    %c0_139 = arith.constant 0 : index
    %338 = vector.load %arg11[%c0_137, %c0_138, %c0_139] : memref<20x16x128xf32, #tpu.memory_space<vmem>>, vector<20x16x128xf32>
    %339 = vector.shape_cast %338 : vector<20x16x128xf32> to vector<320x128xf32>
    %c0_140 = arith.constant 0 : index
    %c0_141 = arith.constant 0 : index
    %340 = vector.load %arg6[%c0_140, %c0_141] : memref<128x128xf32, #tpu.memory_space<vmem>>, vector<128x128xf32>
    %cst_142 = arith.constant dense<0.000000e+00> : vector<320x128xf32>
    %341 = tpu.matmul %339, %340, %cst_142 {dimension_numbers = #tpu.dot_dimension_numbers<[1], [0], [0], [1], [0, 0, 1, 1], [], []>} : vector<320x128xf32>, vector<128x128xf32>, vector<320x128xf32> -> vector<320x128xf32>
    %c0_143 = arith.constant 0 : index
    %c0_144 = arith.constant 0 : index
    %342 = vector.load %arg7[%c0_143, %c0_144] : memref<1x128xf32, #tpu.memory_space<vmem>>, vector<1x128xf32>
    %343 = vector.broadcast %342 : vector<1x128xf32> to vector<320x128xf32>
    %344 = arith.addf %341, %343 : vector<320x128xf32>
    %345 = vector.shape_cast %344 : vector<320x128xf32> to vector<20x16x128xf32>
    %c0_145 = arith.constant 0 : index
    %c0_146 = arith.constant 0 : index
    %c0_147 = arith.constant 0 : index
    %346 = vector.load %arg8[%c0_145, %c0_146, %c0_147] : memref<20x16x128xf32, #tpu.memory_space<vmem>>, vector<20x16x128xf32>
    tpu.vector_store %arg8[%c0_145, %c0_146, %c0_147], %345 {strides = array<i32>} : memref<20x16x128xf32, #tpu.memory_space<vmem>>, vector<20x16x128xf32>,
    return
  }
  func.func @transform_0(%arg0: i32, %arg1: i32) -> (i32, i32, i32) {
    %c0_i32 = arith.constant 0 : i32
    %c0_i32_0 = arith.constant 0 : i32
    return %arg1, %arg0, %c0_i32 : i32, i32, i32
  }
  func.func @transform_1(%arg0: i32, %arg1: i32) -> (i32, i32) {
    %c0_i32 = arith.constant 0 : i32
    %c0_i32_0 = arith.constant 0 : i32
    %c0_i32_1 = arith.constant 0 : i32
    return %c0_i32, %c0_i32_0 : i32, i32
  }
  func.func @transform_2(%arg0: i32, %arg1: i32) -> (i32, i32) {
    %c0_i32 = arith.constant 0 : i32
    %c0_i32_0 = arith.constant 0 : i32
    %c0_i32_1 = arith.constant 0 : i32
    return %c0_i32, %c0_i32_0 : i32, i32
  }
  func.func @transform_3(%arg0: i32, %arg1: i32) -> (i32, i32) {
    %c0_i32 = arith.constant 0 : i32
    %c0_i32_0 = arith.constant 0 : i32
    %c0_i32_1 = arith.constant 0 : i32
    return %c0_i32, %c0_i32_0 : i32, i32
  }
  func.func @transform_4(%arg0: i32, %arg1: i32) -> (i32, i32) {
    %c0_i32 = arith.constant 0 : i32
    %c0_i32_0 = arith.constant 0 : i32
    %c0_i32_1 = arith.constant 0 : i32
    return %c0_i32, %c0_i32_0 : i32, i32
  }
  func.func @transform_5(%arg0: i32, %arg1: i32) -> (i32, i32) {
    %c0_i32 = arith.constant 0 : i32
    %c0_i32_0 = arith.constant 0 : i32
    %c0_i32_1 = arith.constant 0 : i32
    return %c0_i32, %c0_i32_0 : i32, i32
  }
  func.func @transform_6(%arg0: i32, %arg1: i32) -> (i32, i32, i32) {
    %c0_i32 = arith.constant 0 : i32
    %c0_i32_0 = arith.constant 0 : i32
    return %arg1, %arg0, %c0_i32 : i32, i32, i32
  }
}

</mosaic_0001>

<bundles_post_ra>
// kernel: tpu_custom_call.1
= control target key start
LH: loop header
LB: loop body
LE: loop exit
PB: predicated region body
PF: predicated region fallthrough
CT: control target
= control target key end

     0   :  { %11 = vsyncpa [#allocation6], 0  ;;  %s8810_s0 = inlined_call_operand.hbm [shape: f32[20,16,64], index: 0, kind: input, shape index: {}]   ;;  %s8811_s1 = inlined_call_operand.hbm [shape: f32[128,128], index: 1, kind: input, shape index: {}]   ;;  %s8812_s2 = inlined_call_operand.hbm [shape: f32[64,128], index: 2, kind: input, shape index: {}]   ;;  %s8813_s3 = inlined_call_operand.vmem [shape: f32[1,128], index: 3, kind: input, shape index: {}]   ;;  %s8814_s4 = inlined_call_operand.hbm [shape: f32[128,128], index: 4, kind: input, shape index: {}]   ;;  %s8815_s5 = inlined_call_operand.vmem [shape: f32[1,128], index: 5, kind: input, shape index: {}]   ;;  %s8816_s6 = inlined_call_operand.hbm [shape: f32[20,16,128], index: 6, kind: output, shape index: {}]  }
   0x1   :  { %12 = vsyncpa [#allocation9], 0 }
   0x2   :  { %13 = vsyncpa [#allocation12], 0 }
   0x3   :  { %14 = vsyncpa [#allocation7], 0  ;;  %s7550_s21 = smov [#allocation8]   ;;  %s7551_s23 = smov [#allocation5]  }
   0x4   :  { %s32_s22 = sshll.u32 %s7550_s21, 4  ;;  %s20_s24 = sshll.u32 %s7551_s23, 4  ;;  %s33_s22 = int_to_ptr.vmem [resolvable:$true] %s32_s22  ;;  %s7595_s24 = int_to_ptr.vmem [resolvable:$true] %s20_s24 }
   0x5   :  { %s7432_s27 = scalar_lea.hbm %s8811_s1, 2048 }
   0x6   :  { %p7433_p0 = scmp.ne.s32.totalorder %s8811_s1, %s7432_s27  ;;  %p7436_p1 = scmp.lt.u32.totalorder %s7432_s27, %s8811_s1 }
   0x8   :  { %p7438_p2 = pnand %p7436_p1, %p7433_p0 }
   0xa   :  { %7441 = shalt.err (!%p7438_p2)
}
   0xb   :  { %s7442_s8 = scalar_lea.vmem %s33_s22, 2048  ;;  %p7447_p4 = scmp.lt.s32.totalorder %s33_s22, %s33_s22 }
   0xc   :  { %p7443_p3 = scmp.ne.s32.totalorder %s33_s22, %s7442_s8  ;;  %p7448_p5 = scmp.lt.s32.totalorder %s7442_s8, %s7442_s8 }
   0xe   :  { %p7449_p6 = por %p7448_p5, %p7447_p4 }
  0x10   :  { %p7450_p7 = pnand %p7449_p6, %p7443_p3 }
  0x12   :  { %7453 = shalt.err (!%p7450_p7)
}
  0x13   :  { %s7552_s9 = smov 128   ;;  %s7553_s10 = smov 8  }
  0x14   :  { %38 = dma.hbm_to_vmem [thread:$0]  %s8811_s1, 2048, %s33_s22, [#allocation9], %s7552_s9, %s7552_s9, %s7553_s10  }
  0x15   :  { %s7454_s15 = scalar_lea.hbm %s8810_s0, 5120 }
  0x16   :  { %p7455_p8 = scmp.ne.s32.totalorder %s8810_s0, %s7454_s15  ;;  %p7458_p9 = scmp.lt.u32.totalorder %s7454_s15, %s8810_s0 }
  0x18   :  { %p7460_p10 = pnand %p7458_p9, %p7455_p8 }
  0x1a   :  { %7463 = shalt.err (!%p7460_p10)
}
  0x1b   :  { %s7464_s20 = scalar_lea.vmem %s7595_s24, 5120  ;;  %p7469_p12 = scmp.lt.s32.totalorder %s7595_s24, %s7595_s24 }
  0x1c   :  { %p7465_p11 = scmp.ne.s32.totalorder %s7595_s24, %s7464_s20  ;;  %p7470_p13 = scmp.lt.s32.totalorder %s7464_s20, %s7464_s20 }
  0x1e   :  { %p7471_p0 = por %p7470_p13, %p7469_p12 }
  0x20   :  { %p7472_p1 = pnand %p7471_p0, %p7465_p11 }
  0x22   :  { %7475 = shalt.err (!%p7472_p1)
}
  0x23   :  { %26 = dma.hbm_to_vmem [thread:$0]  %s8810_s0, 5120, %s7595_s24, [#allocation6], %s7552_s9, %s7552_s9, %s7553_s10  }
  0x24   :  { %s7554_s22 = smov [#allocation10]   ;;  %s7555_s25 = smov [#allocation11]  }
  0x25   :  { %s44_s23 = sshll.u32 %s7554_s22, 4  ;;  %s58_s26 = sshll.u32 %s7555_s25, 4  ;;  %s45_s23 = int_to_ptr.vmem [resolvable:$true] %s44_s23  ;;  %s7632_s26 = int_to_ptr.vmem [resolvable:$true] %s58_s26 }
  0x26   :  { %s7476_s29 = scalar_lea.hbm %s8812_s2, 1024 }
  0x27   :  { %p7477_p2 = scmp.ne.s32.totalorder %s8812_s2, %s7476_s29  ;;  %p7480_p3 = scmp.lt.u32.totalorder %s7476_s29, %s8812_s2 }
  0x29   :  { %p7482_p4 = pnand %p7480_p3, %p7477_p2 }
  0x2b   :  { %7485 = shalt.err (!%p7482_p4)
}
  0x2c   :  { %s7486_s0 = scalar_lea.vmem %s45_s23, 1024  ;;  %p7491_p6 = scmp.lt.s32.totalorder %s45_s23, %s45_s23 }
  0x2d   :  { %p7487_p5 = scmp.ne.s32.totalorder %s45_s23, %s7486_s0  ;;  %p7492_p7 = scmp.lt.s32.totalorder %s7486_s0, %s7486_s0 }
  0x2f   :  { %p7493_p8 = por %p7492_p7, %p7491_p6 }
  0x31   :  { %p7494_p9 = pnand %p7493_p8, %p7487_p5 }
  0x33   :  { %7497 = shalt.err (!%p7494_p9)
}
  0x34   :  { %50 = dma.hbm_to_vmem [thread:$0]  %s8812_s2, 1024, %s45_s23, [#allocation9], %s7552_s9, %s7552_s9, %s7553_s10  }
  0x35   :  { %s7498_s15 = scalar_lea.hbm %s8814_s4, 2048 }
  0x36   :  { %p7499_p10 = scmp.ne.s32.totalorder %s8814_s4, %s7498_s15  ;;  %p7502_p11 = scmp.lt.u32.totalorder %s7498_s15, %s8814_s4 }
  0x38   :  { %p7504_p12 = pnand %p7502_p11, %p7499_p10 }
  0x3a   :  { %7507 = shalt.err (!%p7504_p12)
}
  0x3b   :  { %s7508_s20 = scalar_lea.vmem %s7632_s26, 2048  ;;  %p7513_p0 = scmp.lt.s32.totalorder %s7632_s26, %s7632_s26 }
  0x3c   :  { %p7509_p13 = scmp.ne.s32.totalorder %s7632_s26, %s7508_s20  ;;  %p7514_p1 = scmp.lt.s32.totalorder %s7508_s20, %s7508_s20 }
  0x3e   :  { %p7515_p2 = por %p7514_p1, %p7513_p0 }
  0x40   :  { %p7516_p3 = pnand %p7515_p2, %p7509_p13 }
  0x42   :  { %7519 = shalt.err (!%p7516_p3)
}
  0x43   :  { %64 = dma.hbm_to_vmem [thread:$0]  %s8814_s4, 2048, %s7632_s26, [#allocation12], %s7552_s9, %s7552_s9, %s7553_s10  }
  0x44   :  { %7542 = dma.done.wait [#allocation6], 5120  }
  0x45   :  { %7543 = vsyncadd [#allocation6], 4294962176 }
  0x46   :  { %7544 = dma.done.wait [#allocation9], 3072  }
  0x47   :  { %7545 = vsyncadd [#allocation9], 4294964224 }
  0x48   :  { %7546 = dma.done.wait [#allocation12], 2048  }
  0x49   :  { %7547 = vsyncadd [#allocation12], 4294965248  ;;  %v125_v0 = vld [vmem:[#allocation10] sm:$0xff]  ;;  %v126_v1 = vld [vmem:[#allocation10 + $0x8] sm:$0xff]  ;;  %vm140_vm0 = vcmask 523264   ;;  %v7556_v18 = vmov 0.0|0.0  }
  0x4a   :  { %v127_v2 = vld [vmem:[#allocation10 + $0x10] sm:$0xff]  ;;  %v6325_v3 = vpack.c.bf16 %v126_v1, %v125_v0  ;;  %v128_v4 = vld [vmem:[#allocation10 + $0x18] sm:$0xff]  ;;  %v129_v6 = vld [vmem:[#allocation10 + $0x20] sm:$0xff]  ;;  %vm7557_vm1 = vmmov 0   ;;  %v7558_v63 = vmov 0.0  }
  0x4b   :  { %v6329_v5 = vpack.c.bf16 %v128_v4, %v127_v2  ;;  %v130_v7 = vld [vmem:[#allocation10 + $0x28] sm:$0xff]  ;;  %v101_v8 = vld [vmem:[#allocation5 + $0x80] sm:$0xff]  ;;  %v131_v10 = vld [vmem:[#allocation10 + $0x30] sm:$0xff] }
  0x4c   :  { %7333 = vmatprep.subr.bf16.mxu1 %v6325_v3  ;;  %4797 = vmatprep.mubr.msk.f32.mxu1 %vm140_vm0, %v101_v8  ;;  %v6333_v9 = vpack.c.bf16 %v130_v7, %v129_v6  ;;  %v132_v11 = vld [vmem:[#allocation10 + $0x38] sm:$0xff]  ;;  %v566_v13 = vld [vmem:[#allocation8] sm:$0xff]  ;;  %v567_v14 = vld [vmem:[#allocation8 + $0x8] sm:$0xff] }
  0x4d   :  { %7337 = vmatpush3.bf16.msra.mxu1 %v6325_v3  ;;  %6326 = vmatprep.subr.bf16.mxu0 %v6325_v3  ;;  %v6337_v12 = vpack.c.bf16 %v132_v11, %v131_v10  ;;  %v85_v15 = vld [vmem:[#allocation5] sm:$0xff]  ;;  %v102_v16 = vld [vmem:[#allocation5 + $0x88] sm:$0xff]  ;;  %v7670_v17 = vpack.c.bf16 %v567_v14, %v566_v13  ;;  %v103_v19 = vld [vmem:[#allocation5 + $0x90] sm:$0xff] }
  0x4e   :  { %7334 = vmatprep.subr.bf16.mxu1 %v6329_v5  ;;  %6328 = vmatpush3.bf16.msra.mxu0 %v6325_v3  ;;  %v568_v20 = vld [vmem:[#allocation8 + $0x10] sm:$0xff]  ;;  %v569_v21 = vld [vmem:[#allocation8 + $0x18] sm:$0xff]  ;;  %v86_v22 = vld [vmem:[#allocation5 + $0x8] sm:$0xff] }
  0x4f   :  { %6330 = vmatprep.subr.bf16.mxu0 %v6329_v5  ;;  %4773 = vmatprep.mubr.msk.f32.mxu0 %vm140_vm0, %v85_v15  ;;  %v104_v23 = vld [vmem:[#allocation5 + $0x98] sm:$0xff]  ;;  %v7678_v24 = vpack.c.bf16 %v569_v21, %v568_v20  ;;  %v105_v25 = vld [vmem:[#allocation5 + $0xa0] sm:$0xff]  ;;  %v571_v27 = vld [vmem:[#allocation8 + $0x28] sm:$0xff] }
  0x50   :  { %v570_v26 = vld [vmem:[#allocation8 + $0x20] sm:$0xff]  ;;  %v106_v28 = vld [vmem:[#allocation5 + $0xa8] sm:$0xff]  ;;  %v107_v30 = vld [vmem:[#allocation5 + $0xb0] sm:$0xff] }
  0x51   :  { %7338 = vmatpush3.bf16.msra.mxu1 %v6329_v5  ;;  %v7687_v29 = vpack.c.bf16 %v571_v27, %v570_v26  ;;  %v572_v31 = vld [vmem:[#allocation8 + $0x30] sm:$0xff]  ;;  %v573_v32 = vld [vmem:[#allocation8 + $0x38] sm:$0xff]  ;;  %v109_v35 = vld [vmem:[#allocation5 + $0xc0] sm:$0xff] }
  0x52   :  { %7335 = vmatprep.subr.bf16.mxu1 %v6333_v9  ;;  %6332 = vmatpush3.bf16.msra.mxu0 %v6329_v5  ;;  %v108_v33 = vld [vmem:[#allocation5 + $0xb8] sm:$0xff]  ;;  %v7695_v34 = vpack.c.bf16 %v573_v32, %v572_v31  ;;  %v574_v36 = vld [vmem:[#allocation8 + $0x40] sm:$0xff]  ;;  %v575_v37 = vld [vmem:[#allocation8 + $0x48] sm:$0xff] }
  0x53   :  { %6334 = vmatprep.subr.bf16.mxu0 %v6333_v9  ;;  %v110_v38 = vld [vmem:[#allocation5 + $0xc8] sm:$0xff]  ;;  %v7703_v39 = vpack.c.bf16 %v575_v37, %v574_v36  ;;  %v111_v40 = vld [vmem:[#allocation5 + $0xd0] sm:$0xff]  ;;  %v577_v42 = vld [vmem:[#allocation8 + $0x58] sm:$0xff] }
  0x54   :  { %v576_v41 = vld [vmem:[#allocation8 + $0x50] sm:$0xff]  ;;  %v112_v43 = vld [vmem:[#allocation5 + $0xd8] sm:$0xff]  ;;  %v113_v45 = vld [vmem:[#allocation5 + $0xe0] sm:$0xff] }
  0x55   :  { %7339 = vmatpush3.bf16.msra.mxu1 %v6333_v9  ;;  %v7711_v44 = vpack.c.bf16 %v577_v42, %v576_v41  ;;  %v578_v46 = vld [vmem:[#allocation8 + $0x60] sm:$0xff]  ;;  %v579_v47 = vld [vmem:[#allocation8 + $0x68] sm:$0xff]  ;;  %v115_v50 = vld [vmem:[#allocation5 + $0xf0] sm:$0xff] }
  0x56   :  { %7336 = vmatprep.subr.bf16.mxu1 %v6337_v12  ;;  %6336 = vmatpush3.bf16.msra.mxu0 %v6333_v9  ;;  %v114_v48 = vld [vmem:[#allocation5 + $0xe8] sm:$0xff]  ;;  %v7719_v49 = vpack.c.bf16 %v579_v47, %v578_v46  ;;  %v580_v51 = vld [vmem:[#allocation8 + $0x70] sm:$0xff]  ;;  %v581_v52 = vld [vmem:[#allocation8 + $0x78] sm:$0xff] }
  0x57   :  { %6338 = vmatprep.subr.bf16.mxu0 %v6337_v12  ;;  %v116_v53 = vld [vmem:[#allocation5 + $0xf8] sm:$0xff]  ;;  %v7727_v54 = vpack.c.bf16 %v581_v52, %v580_v51  ;;  %v117_v55 = vld [vmem:[#allocation5 + $0x100] sm:$0xff]  ;;  %v118_v56 = vld [vmem:[#allocation5 + $0x108] sm:$0xff] }
  0x58   :  { %v119_v57 = vld [vmem:[#allocation5 + $0x110] sm:$0xff]  ;;  %v120_v58 = vld [vmem:[#allocation5 + $0x118] sm:$0xff]  ;;  %v121_v59 = vld [vmem:[#allocation5 + $0x120] sm:$0xff] }
  0x59   :  { %7340 = vmatpush3.bf16.msra.mxu1 %v6337_v12  ;;  %v122_v60 = vld [vmem:[#allocation5 + $0x128] sm:$0xff]  ;;  %v123_v61 = vld [vmem:[#allocation5 + $0x130] sm:$0xff]  ;;  %v124_v62 = vld [vmem:[#allocation5 + $0x138] sm:$0xff] }
  0x5a   :  { %6341 = vmatprep.subr.bf16.mxu1 %v7556_v18  ;;  %6340 = vmatpush3.bf16.msra.mxu0 %v6337_v12  ;;  %v87_v0 = vld [vmem:[#allocation5 + $0x10] sm:$0xff]  ;;  %v88_v1 = vld [vmem:[#allocation5 + $0x18] sm:$0xff]  ;;  %v89_v2 = vld [vmem:[#allocation5 + $0x20] sm:$0xff] }
  0x5b   :  { %6389 = vmatprep.subr.bf16.mxu0 %v7556_v18  ;;  %v90_v3 = vld [vmem:[#allocation5 + $0x28] sm:$0xff]  ;;  %v91_v4 = vld [vmem:[#allocation5 + $0x30] sm:$0xff]  ;;  %v92_v5 = vld [vmem:[#allocation5 + $0x38] sm:$0xff] }
  0x5c   :  { %4798 = vmatmul.mubr.msk.f32.vlgmr.msra.gmra.mrb[0].mxu1 %vm140_vm0, %v102_v16  ;;  %v93_v6 = vld [vmem:[#allocation5 + $0x40] sm:$0xff]  ;;  %v94_v7 = vld [vmem:[#allocation5 + $0x48] sm:$0xff]  ;;  %v95_v8 = vld [vmem:[#allocation5 + $0x50] sm:$0xff] }
  0x5d   :  { %6343 = vmatpush3.bf16.msra.mxu1 %v7670_v17  ;;  %4800 = vmatprep.mubr.msk.f32.mxu1 %vm140_vm0, %v103_v19  ;;  %v96_v9 = vld [vmem:[#allocation5 + $0x58] sm:$0xff]  ;;  %v97_v10 = vld [vmem:[#allocation5 + $0x60] sm:$0xff]  ;;  %v98_v11 = vld [vmem:[#allocation5 + $0x68] sm:$0xff] }
  0x5e   :  { %6344 = vmatprep.subr.bf16.mxu1 %v7556_v18  ;;  %4774 = vmatmul.mubr.msk.f32.vlgmr.msra.gmra.mrb[0].mxu0 %vm140_vm0, %v86_v22  ;;  %v99_v12 = vld [vmem:[#allocation5 + $0x70] sm:$0xff]  ;;  %v100_v13 = vld [vmem:[#allocation5 + $0x78] sm:$0xff] }
  0x5f   :  { %6391 = vmatpush3.bf16.msra.mxu0 %v7670_v17  ;;  %4776 = vmatprep.mubr.msk.f32.mxu0 %vm140_vm0, %v87_v0 }
  0x60   :  { %4801 = vmatmul.mubr.msk.f32.gmra.mrb[2].mxu1 %vm140_vm0, %v104_v23  ;;  %6392 = vmatprep.subr.bf16.mxu0 %v7556_v18 }
  0x61   :  { %4803 = vmatprep.mubr.msk.f32.mxu1 %vm140_vm0, %v105_v25  ;;  %6346 = vmatpush3.bf16.msra.mxu1 %v7678_v24 }
  0x62   :  { %6347 = vmatprep.subr.bf16.mxu1 %v7556_v18  ;;  %4777 = vmatmul.mubr.msk.f32.gmra.mrb[2].mxu0 %vm140_vm0, %v88_v1 }
  0x63   :  { %6394 = vmatpush3.bf16.msra.mxu0 %v7678_v24  ;;  %4779 = vmatprep.mubr.msk.f32.mxu0 %vm140_vm0, %v89_v2 }
  0x64   :  { %4804 = vmatmul.mubr.msk.f32.gmra.mrb[4].mxu1 %vm140_vm0, %v106_v28  ;;  %6395 = vmatprep.subr.bf16.mxu0 %v7556_v18 }
  0x65   :  { %4806 = vmatprep.mubr.msk.f32.mxu1 %vm140_vm0, %v107_v30  ;;  %6349 = vmatpush3.bf16.msra.mxu1 %v7687_v29 }
  0x66   :  { %6350 = vmatprep.subr.bf16.mxu1 %v7556_v18  ;;  %4780 = vmatmul.mubr.msk.f32.gmra.mrb[4].mxu0 %vm140_vm0, %v90_v3 }
  0x67   :  { %6397 = vmatpush3.bf16.msra.mxu0 %v7687_v29  ;;  %4782 = vmatprep.mubr.msk.f32.mxu0 %vm140_vm0, %v91_v4 }
  0x68   :  { %4807 = vmatmul.mubr.msk.f32.gmra.mrb[6].mxu1 %vm140_vm0, %v108_v33  ;;  %6398 = vmatprep.subr.bf16.mxu0 %v7556_v18 }
  0x69   :  { %4809 = vmatprep.mubr.msk.f32.mxu1 %vm140_vm0, %v109_v35  ;;  %6352 = vmatpush3.bf16.msra.mxu1 %v7695_v34 }
  0x6a   :  { %6353 = vmatprep.subr.bf16.mxu1 %v7556_v18  ;;  %4783 = vmatmul.mubr.msk.f32.gmra.mrb[6].mxu0 %vm140_vm0, %v92_v5 }
  0x6b   :  { %6400 = vmatpush3.bf16.msra.mxu0 %v7695_v34  ;;  %4785 = vmatprep.mubr.msk.f32.mxu0 %vm140_vm0, %v93_v6 }
  0x6c   :  { %4810 = vmatmul.mubr.msk.f32.gmra.mrb[8].mxu1 %vm140_vm0, %v110_v38  ;;  %6401 = vmatprep.subr.bf16.mxu0 %v7556_v18 }
  0x6d   :  { %4812 = vmatprep.mubr.msk.f32.mxu1 %vm140_vm0, %v111_v40  ;;  %6355 = vmatpush3.bf16.msra.mxu1 %v7703_v39 }
  0x6e   :  { %6356 = vmatprep.subr.bf16.mxu1 %v7556_v18  ;;  %4786 = vmatmul.mubr.msk.f32.gmra.mrb[8].mxu0 %vm140_vm0, %v94_v7 }
  0x6f   :  { %6403 = vmatpush3.bf16.msra.mxu0 %v7703_v39  ;;  %4788 = vmatprep.mubr.msk.f32.mxu0 %vm140_vm0, %v95_v8 }
  0x70   :  { %4813 = vmatmul.mubr.msk.f32.gmra.mrb[10].mxu1 %vm140_vm0, %v112_v43  ;;  %6404 = vmatprep.subr.bf16.mxu0 %v7556_v18 }
  0x71   :  { %4815 = vmatprep.mubr.msk.f32.mxu1 %vm140_vm0, %v113_v45  ;;  %6358 = vmatpush3.bf16.msra.mxu1 %v7711_v44  ;;  %v7848_v45 = vld [vmem:[%s8813_s3] ss:$0 sm:$0xff] }
  0x72   :  { %6359 = vmatprep.subr.bf16.mxu1 %v7556_v18  ;;  %4789 = vmatmul.mubr.msk.f32.gmra.mrb[10].mxu0 %vm140_vm0, %v96_v9 }
  0x73   :  { %6406 = vmatpush3.bf16.msra.mxu0 %v7711_v44  ;;  %4791 = vmatprep.mubr.msk.f32.mxu0 %vm140_vm0, %v97_v10 }
  0x74   :  { %4816 = vmatmul.mubr.msk.f32.gmra.mrb[12].mxu1 %vm140_vm0, %v114_v48  ;;  %6407 = vmatprep.subr.bf16.mxu0 %v7556_v18 }
  0x75   :  { %4818 = vmatprep.mubr.msk.f32.mxu1 %vm140_vm0, %v115_v50  ;;  %6361 = vmatpush3.bf16.msra.mxu1 %v7719_v49 }
  0x76   :  { %6362 = vmatprep.subr.bf16.mxu1 %v7556_v18  ;;  %4792 = vmatmul.mubr.msk.f32.gmra.mrb[12].mxu0 %vm140_vm0, %v98_v11 }
  0x77   :  { %6409 = vmatpush3.bf16.msra.mxu0 %v7719_v49  ;;  %4794 = vmatprep.mubr.msk.f32.mxu0 %vm140_vm0, %v99_v12 }
  0x78   :  { %4819 = vmatmul.mubr.msk.f32.gmra.mrb[14].mxu1 %vm140_vm0, %v116_v53  ;;  %6410 = vmatprep.subr.bf16.mxu0 %v7556_v18 }
  0x79   :  { %4821 = vmatprep.mubr.msk.f32.mxu1 %vm140_vm0, %v117_v55  ;;  %6364 = vmatpush3.bf16.msra.mxu1 %v7727_v54 }
  0x7a   :  { %6365 = vmatprep.subr.bf16.mxu1 %v7556_v18  ;;  %4795 = vmatmul.mubr.msk.f32.gmra.mrb[14].mxu0 %vm140_vm0, %v100_v13 }
  0x7b   :  { %6412 = vmatpush3.bf16.msra.mxu0 %v7727_v54  ;;  %4935 = vmatprep.mubr.msk.f32.mxu0 %vm7557_vm1, %v7558_v63 }
  0x7c   :  { %4822 = vmatmul.mubr.msk.f32.gmra.mrb[16].mxu1 %vm140_vm0, %v118_v56  ;;  %6437 = vmatprep.subr.bf16.mxu0 %v7556_v18 }
  0x7d   :  { %4824 = vmatprep.mubr.msk.f32.mxu1 %vm140_vm0, %v119_v57 }
  0x80   :  { %4825 = vmatmul.mubr.msk.f32.gmra.mrb[18].mxu1 %vm140_vm0, %v120_v58 }
  0x81   :  { %4827 = vmatprep.mubr.msk.f32.mxu1 %vm140_vm0, %v121_v59 }
  0x84   :  { %4828 = vmatmul.mubr.msk.f32.gmra.mrb[20].mxu1 %vm140_vm0, %v122_v60 }
  0x85   :  { %4830 = vmatprep.mubr.msk.f32.mxu1 %vm140_vm0, %v123_v61 }
  0x88   :  { %4831 = vmatmul.mubr.msk.f32.gmra.mrb[22].mxu1 %vm140_vm0, %v124_v62 }
  0x89   :  { %4865 = vmatprep.mubr.msk.f32.mxu1 %vm7557_vm1, %v7558_v63 }
  0x8c   :  { %4866 = vmatmul.mubr.f32.vlgmr.msra.gmra.mrb[24].mxu1 %v7558_v63 }
  0x8d   :  { %6367 = vmatpush3.bf16.msra.mxu1 %v7670_v17  ;;  %4900 = vmatprep.mubr.msk.f32.mxu1 %vm7557_vm1, %v7558_v63 }
  0x8e   :  { %6368 = vmatprep.subr.bf16.mxu1 %v7556_v18 }
  0x91   :  { %6370 = vmatpush3.bf16.msra.mxu1 %v7678_v24 }
  0x92   :  { %6371 = vmatprep.subr.bf16.mxu1 %v7556_v18 }
  0x95   :  { %6373 = vmatpush3.bf16.msra.mxu1 %v7687_v29 }
  0x96   :  { %6374 = vmatprep.subr.bf16.mxu1 %v7556_v18 }
  0x99   :  { %6376 = vmatpush3.bf16.msra.mxu1 %v7695_v34 }
  0x9a   :  { %6377 = vmatprep.subr.bf16.mxu1 %v7556_v18 }
  0x9d   :  { %6379 = vmatpush3.bf16.msra.mxu1 %v7703_v39 }
  0x9e   :  { %6380 = vmatprep.subr.bf16.mxu1 %v7556_v18 }
  0xa1   :  { %6382 = vmatpush3.bf16.msra.mxu1 %v7711_v44 }
  0xa2   :  { %6383 = vmatprep.subr.bf16.mxu1 %v7556_v18 }
  0xa5   :  { %6385 = vmatpush3.bf16.msra.mxu1 %v7719_v49 }
  0xa6   :  { %6386 = vmatprep.subr.bf16.mxu1 %v7556_v18 }
  0xa9   :  { %6388 = vmatpush3.bf16.msra.mxu1 %v7727_v54 }
  0xaa   :  { %6413 = vmatprep.subr.bf16.mxu1 %v7556_v18 }
  0xac   :  { %4901 = vmatmul.mubr.f32.vlgmr.msra.gmra.mrb[26].mxu1 %v7558_v63 }
  0xad   :  { %6415 = vmatpush3.bf16.msra.mxu1 %v7670_v17  ;;  %4970 = vmatprep.mubr.msk.f32.mxu1 %vm7557_vm1, %v7558_v63 }
  0xae   :  { %6416 = vmatprep.subr.bf16.mxu1 %v7556_v18 }
  0xb1   :  { %6418 = vmatpush3.bf16.msra.mxu1 %v7678_v24 }
  0xb2   :  { %6419 = vmatprep.subr.bf16.mxu1 %v7556_v18 }
  0xb5   :  { %6421 = vmatpush3.bf16.msra.mxu1 %v7687_v29 }
  0xb6   :  { %6422 = vmatprep.subr.bf16.mxu1 %v7556_v18 }
  0xb9   :  { %6424 = vmatpush3.bf16.msra.mxu1 %v7695_v34 }
  0xba   :  { %6425 = vmatprep.subr.bf16.mxu1 %v7556_v18 }
  0xbd   :  { %6427 = vmatpush3.bf16.msra.mxu1 %v7703_v39 }
  0xbe   :  { %6428 = vmatprep.subr.bf16.mxu1 %v7556_v18 }
  0xc1   :  { %6430 = vmatpush3.bf16.msra.mxu1 %v7711_v44 }
  0xc2   :  { %6431 = vmatprep.subr.bf16.mxu1 %v7556_v18 }
  0xc5   :  { %6433 = vmatpush3.bf16.msra.mxu1 %v7719_v49 }
  0xc6   :  { %6434 = vmatprep.subr.bf16.mxu1 %v7556_v18 }
  0xc9   :  { %6436 = vmatpush3.bf16.msra.mxu1 %v7727_v54 }
  0xca   :  { %6461 = vmatprep.subr.bf16.mxu1 %v7556_v18 }
 0x12f   :  { %v7801_v14 = vpop.f32.mrb[0].mxu1 }
 0x130   :  { %v7803_v15 = vpop.f32.mrb[1].mxu1 }
 0x131   :  { %v4775_v16 = vpop.f32.mrb[0].mxu0 }
 0x132   :  { %v327_v19 = vpop.f32.mrb[1].mxu0  ;;  %v333_v55 = vadd.f32 %v4775_v16, %v7848_v45 }
 0x133   :  { %v7805_v20 = vpop.f32.mrb[2].mxu1  ;;  %v328_v48 = vadd.f32 %v7848_v45, %v327_v19 }
 0x134   :  { %v7807_v21 = vpop.f32.mrb[3].mxu1 }
 0x135   :  { %v4778_v60 = vpop.f32.mrb[2].mxu0 }
 0x136   :  { %v337_v61 = vpop.f32.mrb[3].mxu0 }
 0x137   :  { %v7809_v22 = vpop.f32.mrb[4].mxu1  ;;  %v338_v11 = vadd.f32 %v7848_v45, %v337_v61 }
 0x138   :  { %v7811_v23 = vpop.f32.mrb[5].mxu1 }
 0x139   :  { %v7896_v62 = vpop.f32.mrb[4].mxu0 }
 0x13a   :  { %v347_v0 = vpop.f32.mrb[5].mxu0 }
 0x13b   :  { %v7813_v25 = vpop.f32.mrb[6].mxu1 }
 0x13c   :  { %v7815_v26 = vpop.f32.mrb[7].mxu1 }
 0x13d   :  { %v7900_v1 = vpop.f32.mrb[6].mxu0 }
 0x13e   :  { %v7902_v2 = vpop.f32.mrb[7].mxu0 }
 0x13f   :  { %v7817_v27 = vpop.f32.mrb[8].mxu1 }
 0x140   :  { %v7819_v28 = vpop.f32.mrb[9].mxu1 }
 0x141   :  { %v7904_v3 = vpop.f32.mrb[8].mxu0 }
 0x142   :  { %v7906_v4 = vpop.f32.mrb[9].mxu0 }
 0x143   :  { %v7821_v30 = vpop.f32.mrb[10].mxu1 }
 0x144   :  { %v7823_v31 = vpop.f32.mrb[11].mxu1 }
 0x145   :  { %v7908_v5 = vpop.f32.mrb[10].mxu0 }
 0x146   :  { %v7910_v6 = vpop.f32.mrb[11].mxu0 }
 0x147   :  { %v7825_v32 = vpop.f32.mrb[12].mxu1 }
 0x148   :  { %v7827_v33 = vpop.f32.mrb[13].mxu1 }
 0x149   :  { %v7912_v7 = vpop.f32.mrb[12].mxu0 }
 0x14a   :  { %v7914_v8 = vpop.f32.mrb[13].mxu0 }
 0x14b   :  { %v7829_v35 = vpop.f32.mrb[14].mxu1 }
 0x14c   :  { %v7831_v36 = vpop.f32.mrb[15].mxu1 }
 0x14d   :  { %v7916_v9 = vpop.f32.mrb[14].mxu0 }
 0x14e   :  { %v7918_v10 = vpop.f32.mrb[15].mxu0 }
 0x14f   :  { %v7833_v37 = vpop.f32.mrb[16].mxu1 }
 0x150   :  { %v7835_v38 = vpop.f32.mrb[17].mxu1 }
 0x153   :  { %v7837_v40 = vpop.f32.mrb[18].mxu1 }
 0x154   :  { %v7839_v41 = vpop.f32.mrb[19].mxu1 }
 0x157   :  { %v7841_v42 = vpop.f32.mrb[20].mxu1 }
 0x158   :  { %v7843_v43 = vpop.f32.mrb[21].mxu1 }
 0x15b   :  { %v7850_v46 = vpop.f32.mrb[22].mxu1 }
 0x15c   :  { %v7852_v47 = vpop.f32.mrb[23].mxu1 }
 0x15f   :  { %v652_v50 = vpop.f32.mrb[24].mxu1 }
 0x160   :  { %v653_v51 = vadd.f32 %v652_v50, %v328_v48  ;;  %v4867_v52 = vpop.f32.mrb[25].mxu1  ;;  %v343_v48 = vadd.f32 %v4778_v60, %v7848_v45 }
 0x162   :  { %7351 = vtanh.f32 %v653_v51 }
 0x16c   :  { %v7855_v53 = vpop.eup %7351 }
 0x16d   :  { %4936 = vmatmul.mubr.f32.vlgmr.msra.gmra.mrb[16].mxu0 %v7855_v53 }
 0x16e   :  { %6439 = vmatpush3.bf16.msra.mxu0 %v7670_v17  ;;  %5005 = vmatprep.mubr.msk.f32.mxu0 %vm7557_vm1, %v7558_v63 }
 0x16f   :  { %6440 = vmatprep.subr.bf16.mxu0 %v7556_v18 }
 0x172   :  { %6442 = vmatpush3.bf16.msra.mxu0 %v7678_v24 }
 0x173   :  { %6443 = vmatprep.subr.bf16.mxu0 %v7556_v18 }
 0x176   :  { %6445 = vmatpush3.bf16.msra.mxu0 %v7687_v29 }
 0x177   :  { %6446 = vmatprep.subr.bf16.mxu0 %v7556_v18 }
 0x17a   :  { %6448 = vmatpush3.bf16.msra.mxu0 %v7695_v34 }
 0x17b   :  { %6449 = vmatprep.subr.bf16.mxu0 %v7556_v18 }
 0x17e   :  { %6451 = vmatpush3.bf16.msra.mxu0 %v7703_v39 }
 0x17f   :  { %v723_v56 = vpop.f32.mrb[26].mxu1  ;;  %6452 = vmatprep.subr.bf16.mxu0 %v7556_v18 }
 0x180   :  { %v724_v57 = vadd.f32 %v723_v56, %v333_v55  ;;  %v4902_v58 = vpop.f32.mrb[27].mxu1  ;;  %v348_v56 = vadd.f32 %v7848_v45, %v347_v0  ;;  %v353_v0 = vadd.f32 %v7896_v62, %v7848_v45 }
 0x182   :  { %7353 = vtanh.f32 %v724_v57  ;;  %6454 = vmatpush3.bf16.msra.mxu0 %v7711_v44 }
 0x183   :  { %6455 = vmatprep.subr.bf16.mxu0 %v7556_v18 }
 0x186   :  { %6457 = vmatpush3.bf16.msra.mxu0 %v7719_v49 }
 0x187   :  { %6458 = vmatprep.subr.bf16.mxu0 %v7556_v18 }
 0x18a   :  { %6460 = vmatpush3.bf16.msra.mxu0 %v7727_v54 }
 0x18b   :  { %6485 = vmatprep.subr.bf16.mxu0 %v7556_v18 }
 0x18c   :  { %v7877_v59 = vpop.eup %7353 }
 0x18d   :  { %4971 = vmatmul.mubr.f32.vlgmr.msra.gmra.mrb[28].mxu1 %v7877_v59 }
 0x18e   :  { %6463 = vmatpush3.bf16.msra.mxu1 %v7670_v17  ;;  %5040 = vmatprep.mubr.msk.f32.mxu1 %vm7557_vm1, %v7558_v63 }
 0x18f   :  { %6464 = vmatprep.subr.bf16.mxu1 %v7556_v18 }
 0x192   :  { %6466 = vmatpush3.bf16.msra.mxu1 %v7678_v24 }
 0x193   :  { %6467 = vmatprep.subr.bf16.mxu1 %v7556_v18 }
 0x196   :  { %6469 = vmatpush3.bf16.msra.mxu1 %v7687_v29 }
 0x197   :  { %6470 = vmatprep.subr.bf16.mxu1 %v7556_v18 }
 0x19a   :  { %6472 = vmatpush3.bf16.msra.mxu1 %v7695_v34 }
 0x19b   :  { %6473 = vmatprep.subr.bf16.mxu1 %v7556_v18 }
 0x19e   :  { %6475 = vmatpush3.bf16.msra.mxu1 %v7703_v39 }
 0x19f   :  { %6476 = vmatprep.subr.bf16.mxu1 %v7556_v18 }
 0x1a2   :  { %6478 = vmatpush3.bf16.msra.mxu1 %v7711_v44 }
 0x1a3   :  { %6479 = vmatprep.subr.bf16.mxu1 %v7556_v18 }
 0x1a6   :  { %6481 = vmatpush3.bf16.msra.mxu1 %v7719_v49 }
 0x1a7   :  { %6482 = vmatprep.subr.bf16.mxu1 %v7556_v18 }
 0x1aa   :  { %6484 = vmatpush3.bf16.msra.mxu1 %v7727_v54 }
 0x1ab   :  { %6509 = vmatprep.subr.bf16.mxu1 %v7556_v18 }
 0x240   :  { %v799_v12 = vpop.f32.mrb[16].mxu0 }
 0x241   :  { %v800_v13 = vadd.f32 %v799_v12, %v338_v11  ;;  %v4937_v16 = vpop.f32.mrb[17].mxu0 }
 0x242   :  { %v358_v16 = vadd.f32 %v7848_v45, %v7902_v2  ;;  %v363_v2 = vadd.f32 %v7900_v1, %v7848_v45 }
 0x243   :  { %7355 = vtanh.f32 %v800_v13 }
 0x24d   :  { %v7921_v19 = vpop.eup %7355 }
 0x24e   :  { %5006 = vmatmul.mubr.f32.vlgmr.msra.gmra.mrb[18].mxu0 %v7921_v19 }
 0x24f   :  { %6487 = vmatpush3.bf16.msra.mxu0 %v7670_v17  ;;  %5075 = vmatprep.mubr.msk.f32.mxu0 %vm7557_vm1, %v7558_v63 }
 0x250   :  { %6488 = vmatprep.subr.bf16.mxu0 %v7556_v18 }
 0x253   :  { %6490 = vmatpush3.bf16.msra.mxu0 %v7678_v24 }
 0x254   :  { %6491 = vmatprep.subr.bf16.mxu0 %v7556_v18 }
 0x257   :  { %6493 = vmatpush3.bf16.msra.mxu0 %v7687_v29 }
 0x258   :  { %6494 = vmatprep.subr.bf16.mxu0 %v7556_v18 }
 0x25b   :  { %6496 = vmatpush3.bf16.msra.mxu0 %v7695_v34 }
 0x25c   :  { %6497 = vmatprep.subr.bf16.mxu0 %v7556_v18 }
 0x25f   :  { %6499 = vmatpush3.bf16.msra.mxu0 %v7703_v39 }
 0x260   :  { %v870_v50 = vpop.f32.mrb[28].mxu1  ;;  %6500 = vmatprep.subr.bf16.mxu0 %v7556_v18 }
 0x261   :  { %v871_v51 = vadd.f32 %v870_v50, %v343_v48  ;;  %v4972_v52 = vpop.f32.mrb[29].mxu1 }
 0x263   :  { %7357 = vtanh.f32 %v871_v51  ;;  %6502 = vmatpush3.bf16.msra.mxu0 %v7711_v44 }
 0x264   :  { %6503 = vmatprep.subr.bf16.mxu0 %v7556_v18 }
 0x267   :  { %6505 = vmatpush3.bf16.msra.mxu0 %v7719_v49 }
 0x268   :  { %6506 = vmatprep.subr.bf16.mxu0 %v7556_v18 }
 0x26b   :  { %6508 = vmatpush3.bf16.msra.mxu0 %v7727_v54 }
 0x26c   :  { %6533 = vmatprep.subr.bf16.mxu0 %v7556_v18 }
 0x26d   :  { %v7943_v55 = vpop.eup %7357 }
 0x26e   :  { %5041 = vmatmul.mubr.f32.vlgmr.msra.gmra.mrb[30].mxu1 %v7943_v55 }
 0x26f   :  { %6511 = vmatpush3.bf16.msra.mxu1 %v7670_v17  ;;  %5110 = vmatprep.mubr.msk.f32.mxu1 %vm7557_vm1, %v7558_v63 }
 0x270   :  { %6512 = vmatprep.subr.bf16.mxu1 %v7556_v18 }
 0x273   :  { %6514 = vmatpush3.bf16.msra.mxu1 %v7678_v24 }
 0x274   :  { %6515 = vmatprep.subr.bf16.mxu1 %v7556_v18 }
 0x277   :  { %6517 = vmatpush3.bf16.msra.mxu1 %v7687_v29 }
 0x278   :  { %6518 = vmatprep.subr.bf16.mxu1 %v7556_v18 }
 0x27b   :  { %6520 = vmatpush3.bf16.msra.mxu1 %v7695_v34 }
 0x27c   :  { %6521 = vmatprep.subr.bf16.mxu1 %v7556_v18 }
 0x27f   :  { %6523 = vmatpush3.bf16.msra.mxu1 %v7703_v39 }
 0x280   :  { %6524 = vmatprep.subr.bf16.mxu1 %v7556_v18 }
 0x283   :  { %6526 = vmatpush3.bf16.msra.mxu1 %v7711_v44 }
 0x284   :  { %6527 = vmatprep.subr.bf16.mxu1 %v7556_v18 }
 0x287   :  { %6529 = vmatpush3.bf16.msra.mxu1 %v7719_v49 }
 0x288   :  { %6530 = vmatprep.subr.bf16.mxu1 %v7556_v18 }
 0x28b   :  { %6532 = vmatpush3.bf16.msra.mxu1 %v7727_v54 }
 0x28c   :  { %6557 = vmatprep.subr.bf16.mxu1 %v7556_v18 }
 0x321   :  { %v947_v57 = vpop.f32.mrb[18].mxu0 }
 0x322   :  { %v948_v58 = vadd.f32 %v947_v57, %v348_v56  ;;  %v5007_v60 = vpop.f32.mrb[19].mxu0 }
 0x323   :  { %v368_v60 = vadd.f32 %v7848_v45, %v7906_v4  ;;  %v373_v4 = vadd.f32 %v7904_v3, %v7848_v45 }
 0x324   :  { %7359 = vtanh.f32 %v948_v58 }
 0x32e   :  { %v7965_v61 = vpop.eup %7359 }
 0x32f   :  { %5076 = vmatmul.mubr.f32.vlgmr.msra.gmra.mrb[20].mxu0 %v7965_v61 }
 0x330   :  { %6535 = vmatpush3.bf16.msra.mxu0 %v7670_v17  ;;  %5145 = vmatprep.mubr.msk.f32.mxu0 %vm7557_vm1, %v7558_v63 }
 0x331   :  { %6536 = vmatprep.subr.bf16.mxu0 %v7556_v18 }
 0x334   :  { %6538 = vmatpush3.bf16.msra.mxu0 %v7678_v24 }
 0x335   :  { %6539 = vmatprep.subr.bf16.mxu0 %v7556_v18 }
 0x338   :  { %6541 = vmatpush3.bf16.msra.mxu0 %v7687_v29 }
 0x339   :  { %6542 = vmatprep.subr.bf16.mxu0 %v7556_v18 }
 0x33c   :  { %6544 = vmatpush3.bf16.msra.mxu0 %v7695_v34 }
 0x33d   :  { %6545 = vmatprep.subr.bf16.mxu0 %v7556_v18 }
 0x340   :  { %6547 = vmatpush3.bf16.msra.mxu0 %v7703_v39 }
 0x341   :  { %v1018_v11 = vpop.f32.mrb[30].mxu1  ;;  %6548 = vmatprep.subr.bf16.mxu0 %v7556_v18 }
 0x342   :  { %v1019_v12 = vadd.f32 %v1018_v11, %v353_v0  ;;  %v5042_v13 = vpop.f32.mrb[31].mxu1 }
 0x344   :  { %7361 = vtanh.f32 %v1019_v12  ;;  %6550 = vmatpush3.bf16.msra.mxu0 %v7711_v44 }
 0x345   :  { %6551 = vmatprep.subr.bf16.mxu0 %v7556_v18 }
 0x348   :  { %6553 = vmatpush3.bf16.msra.mxu0 %v7719_v49 }
 0x349   :  { %6554 = vmatprep.subr.bf16.mxu0 %v7556_v18 }
 0x34c   :  { %6556 = vmatpush3.bf16.msra.mxu0 %v7727_v54 }
 0x34d   :  { %6581 = vmatprep.subr.bf16.mxu0 %v7556_v18 }
 0x34e   :  { %v7988_v62 = vpop.eup %7361 }
 0x34f   :  { %5111 = vmatmul.mubr.f32.vlgmr.msra.gmra.mrb[32].mxu1 %v7988_v62 }
 0x350   :  { %6559 = vmatpush3.bf16.msra.mxu1 %v7670_v17  ;;  %5180 = vmatprep.mubr.msk.f32.mxu1 %vm7557_vm1, %v7558_v63 }
 0x351   :  { %6560 = vmatprep.subr.bf16.mxu1 %v7556_v18 }
 0x354   :  { %6562 = vmatpush3.bf16.msra.mxu1 %v7678_v24 }
 0x355   :  { %6563 = vmatprep.subr.bf16.mxu1 %v7556_v18 }
 0x358   :  { %6565 = vmatpush3.bf16.msra.mxu1 %v7687_v29 }
 0x359   :  { %6566 = vmatprep.subr.bf16.mxu1 %v7556_v18 }
 0x35c   :  { %6568 = vmatpush3.bf16.msra.mxu1 %v7695_v34 }
 0x35d   :  { %6569 = vmatprep.subr.bf16.mxu1 %v7556_v18 }
 0x360   :  { %6571 = vmatpush3.bf16.msra.mxu1 %v7703_v39 }
 0x361   :  { %6572 = vmatprep.subr.bf16.mxu1 %v7556_v18 }
 0x364   :  { %6574 = vmatpush3.bf16.msra.mxu1 %v7711_v44 }
 0x365   :  { %6575 = vmatprep.subr.bf16.mxu1 %v7556_v18 }
 0x368   :  { %6577 = vmatpush3.bf16.msra.mxu1 %v7719_v49 }
 0x369   :  { %6578 = vmatprep.subr.bf16.mxu1 %v7556_v18 }
 0x36c   :  { %6580 = vmatpush3.bf16.msra.mxu1 %v7727_v54 }
 0x36d   :  { %6605 = vmatprep.subr.bf16.mxu1 %v7556_v18 }
 0x402   :  { %v1095_v48 = vpop.f32.mrb[20].mxu0 }
 0x403   :  { %v1096_v50 = vadd.f32 %v1095_v48, %v358_v16  ;;  %v5077_v51 = vpop.f32.mrb[21].mxu0 }
 0x404   :  { %v378_v51 = vadd.f32 %v7848_v45, %v7910_v6  ;;  %v383_v6 = vadd.f32 %v7908_v5, %v7848_v45 }
 0x405   :  { %7363 = vtanh.f32 %v1096_v50 }
 0x40f   :  { %v8011_v52 = vpop.eup %7363 }
 0x410   :  { %5146 = vmatmul.mubr.f32.vlgmr.msra.gmra.mrb[22].mxu0 %v8011_v52 }
 0x411   :  { %6583 = vmatpush3.bf16.msra.mxu0 %v7670_v17  ;;  %5215 = vmatprep.mubr.msk.f32.mxu0 %vm7557_vm1, %v7558_v63 }
 0x412   :  { %6584 = vmatprep.subr.bf16.mxu0 %v7556_v18 }
 0x415   :  { %6586 = vmatpush3.bf16.msra.mxu0 %v7678_v24 }
 0x416   :  { %6587 = vmatprep.subr.bf16.mxu0 %v7556_v18 }
 0x419   :  { %6589 = vmatpush3.bf16.msra.mxu0 %v7687_v29 }
 0x41a   :  { %6590 = vmatprep.subr.bf16.mxu0 %v7556_v18 }
 0x41d   :  { %6592 = vmatpush3.bf16.msra.mxu0 %v7695_v34 }
 0x41e   :  { %6593 = vmatprep.subr.bf16.mxu0 %v7556_v18 }
 0x421   :  { %6595 = vmatpush3.bf16.msra.mxu0 %v7703_v39 }
 0x422   :  { %v1166_v56 = vpop.f32.mrb[32].mxu1  ;;  %6596 = vmatprep.subr.bf16.mxu0 %v7556_v18 }
 0x423   :  { %v1167_v57 = vadd.f32 %v1166_v56, %v363_v2  ;;  %v5112_v58 = vpop.f32.mrb[33].mxu1 }
 0x425   :  { %7365 = vtanh.f32 %v1167_v57  ;;  %6598 = vmatpush3.bf16.msra.mxu0 %v7711_v44 }
 0x426   :  { %6599 = vmatprep.subr.bf16.mxu0 %v7556_v18 }
 0x429   :  { %6601 = vmatpush3.bf16.msra.mxu0 %v7719_v49 }
 0x42a   :  { %6602 = vmatprep.subr.bf16.mxu0 %v7556_v18 }
 0x42d   :  { %6604 = vmatpush3.bf16.msra.mxu0 %v7727_v54 }
 0x42e   :  { %6629 = vmatprep.subr.bf16.mxu0 %v7556_v18 }
 0x42f   :  { %v8034_v1 = vpop.eup %7365 }
 0x430   :  { %5181 = vmatmul.mubr.f32.vlgmr.msra.gmra.mrb[34].mxu1 %v8034_v1 }
 0x431   :  { %6607 = vmatpush3.bf16.msra.mxu1 %v7670_v17  ;;  %5250 = vmatprep.mubr.msk.f32.mxu1 %vm7557_vm1, %v7558_v63 }
 0x432   :  { %6608 = vmatprep.subr.bf16.mxu1 %v7556_v18 }
 0x435   :  { %6610 = vmatpush3.bf16.msra.mxu1 %v7678_v24 }
 0x436   :  { %6611 = vmatprep.subr.bf16.mxu1 %v7556_v18 }
 0x439   :  { %6613 = vmatpush3.bf16.msra.mxu1 %v7687_v29 }
 0x43a   :  { %6614 = vmatprep.subr.bf16.mxu1 %v7556_v18 }
 0x43d   :  { %6616 = vmatpush3.bf16.msra.mxu1 %v7695_v34 }
 0x43e   :  { %6617 = vmatprep.subr.bf16.mxu1 %v7556_v18 }
 0x441   :  { %6619 = vmatpush3.bf16.msra.mxu1 %v7703_v39 }
 0x442   :  { %6620 = vmatprep.subr.bf16.mxu1 %v7556_v18 }
 0x445   :  { %6622 = vmatpush3.bf16.msra.mxu1 %v7711_v44 }
 0x446   :  { %6623 = vmatprep.subr.bf16.mxu1 %v7556_v18 }
 0x449   :  { %6625 = vmatpush3.bf16.msra.mxu1 %v7719_v49 }
 0x44a   :  { %6626 = vmatprep.subr.bf16.mxu1 %v7556_v18 }
 0x44d   :  { %6628 = vmatpush3.bf16.msra.mxu1 %v7727_v54 }
 0x44e   :  { %6653 = vmatprep.subr.bf16.mxu1 %v7556_v18 }
 0x4e3   :  { %v1243_v0 = vpop.f32.mrb[22].mxu0 }
 0x4e4   :  { %v1244_v11 = vadd.f32 %v1243_v0, %v368_v60  ;;  %v5147_v12 = vpop.f32.mrb[23].mxu0 }
 0x4e5   :  { %v388_v12 = vadd.f32 %v7848_v45, %v7914_v8  ;;  %v393_v8 = vadd.f32 %v7912_v7, %v7848_v45 }
 0x4e6   :  { %7367 = vtanh.f32 %v1244_v11 }
 0x4f0   :  { %v8057_v13 = vpop.eup %7367 }
 0x4f1   :  { %5216 = vmatmul.mubr.f32.vlgmr.msra.gmra.mrb[24].mxu0 %v8057_v13 }
 0x4f2   :  { %6631 = vmatpush3.bf16.msra.mxu0 %v7670_v17  ;;  %5285 = vmatprep.mubr.msk.f32.mxu0 %vm7557_vm1, %v7558_v63 }
 0x4f3   :  { %6632 = vmatprep.subr.bf16.mxu0 %v7556_v18 }
 0x4f6   :  { %6634 = vmatpush3.bf16.msra.mxu0 %v7678_v24 }
 0x4f7   :  { %6635 = vmatprep.subr.bf16.mxu0 %v7556_v18 }
 0x4fa   :  { %6637 = vmatpush3.bf16.msra.mxu0 %v7687_v29 }
 0x4fb   :  { %6638 = vmatprep.subr.bf16.mxu0 %v7556_v18 }
 0x4fe   :  { %6640 = vmatpush3.bf16.msra.mxu0 %v7695_v34 }
 0x4ff   :  { %6641 = vmatprep.subr.bf16.mxu0 %v7556_v18 }
 0x502   :  { %6643 = vmatpush3.bf16.msra.mxu0 %v7703_v39 }
 0x503   :  { %v1314_v16 = vpop.f32.mrb[34].mxu1  ;;  %6644 = vmatprep.subr.bf16.mxu0 %v7556_v18 }
 0x504   :  { %v1315_v48 = vadd.f32 %v1314_v16, %v373_v4  ;;  %v5182_v50 = vpop.f32.mrb[35].mxu1 }
 0x506   :  { %7369 = vtanh.f32 %v1315_v48  ;;  %6646 = vmatpush3.bf16.msra.mxu0 %v7711_v44 }
 0x507   :  { %6647 = vmatprep.subr.bf16.mxu0 %v7556_v18 }
 0x50a   :  { %6649 = vmatpush3.bf16.msra.mxu0 %v7719_v49 }
 0x50b   :  { %6650 = vmatprep.subr.bf16.mxu0 %v7556_v18 }
 0x50e   :  { %6652 = vmatpush3.bf16.msra.mxu0 %v7727_v54 }
 0x50f   :  { %6677 = vmatprep.subr.bf16.mxu0 %v7556_v18 }
 0x510   :  { %v8080_v3 = vpop.eup %7369 }
 0x511   :  { %5251 = vmatmul.mubr.f32.vlgmr.msra.gmra.mrb[36].mxu1 %v8080_v3 }
 0x512   :  { %6655 = vmatpush3.bf16.msra.mxu1 %v7670_v17  ;;  %5320 = vmatprep.mubr.msk.f32.mxu1 %vm7557_vm1, %v7558_v63 }
 0x513   :  { %6656 = vmatprep.subr.bf16.mxu1 %v7556_v18 }
 0x516   :  { %6658 = vmatpush3.bf16.msra.mxu1 %v7678_v24 }
 0x517   :  { %6659 = vmatprep.subr.bf16.mxu1 %v7556_v18 }
 0x51a   :  { %6661 = vmatpush3.bf16.msra.mxu1 %v7687_v29 }
 0x51b   :  { %6662 = vmatprep.subr.bf16.mxu1 %v7556_v18 }
 0x51e   :  { %6664 = vmatpush3.bf16.msra.mxu1 %v7695_v34 }
 0x51f   :  { %6665 = vmatprep.subr.bf16.mxu1 %v7556_v18 }
 0x522   :  { %6667 = vmatpush3.bf16.msra.mxu1 %v7703_v39 }
 0x523   :  { %6668 = vmatprep.subr.bf16.mxu1 %v7556_v18 }
 0x526   :  { %6670 = vmatpush3.bf16.msra.mxu1 %v7711_v44 }
 0x527   :  { %6671 = vmatprep.subr.bf16.mxu1 %v7556_v18 }
 0x52a   :  { %6673 = vmatpush3.bf16.msra.mxu1 %v7719_v49 }
 0x52b   :  { %6674 = vmatprep.subr.bf16.mxu1 %v7556_v18 }
 0x52e   :  { %6676 = vmatpush3.bf16.msra.mxu1 %v7727_v54 }
 0x52f   :  { %6701 = vmatprep.subr.bf16.mxu1 %v7556_v18 }
 0x5c4   :  { %v1391_v2 = vpop.f32.mrb[24].mxu0 }
 0x5c5   :  { %v1392_v56 = vadd.f32 %v1391_v2, %v378_v51  ;;  %v5217_v57 = vpop.f32.mrb[25].mxu0 }
 0x5c6   :  { %v398_v57 = vadd.f32 %v7848_v45, %v7918_v10  ;;  %v403_v10 = vadd.f32 %v7916_v9, %v7848_v45 }
 0x5c7   :  { %7371 = vtanh.f32 %v1392_v56 }
 0x5d1   :  { %v8103_v58 = vpop.eup %7371 }
 0x5d2   :  { %5286 = vmatmul.mubr.f32.vlgmr.msra.gmra.mrb[26].mxu0 %v8103_v58 }
 0x5d3   :  { %6679 = vmatpush3.bf16.msra.mxu0 %v7670_v17  ;;  %5355 = vmatprep.mubr.msk.f32.mxu0 %vm7557_vm1, %v7558_v63 }
 0x5d4   :  { %6680 = vmatprep.subr.bf16.mxu0 %v7556_v18 }
 0x5d7   :  { %6682 = vmatpush3.bf16.msra.mxu0 %v7678_v24 }
 0x5d8   :  { %6683 = vmatprep.subr.bf16.mxu0 %v7556_v18 }
 0x5db   :  { %6685 = vmatpush3.bf16.msra.mxu0 %v7687_v29 }
 0x5dc   :  { %6686 = vmatprep.subr.bf16.mxu0 %v7556_v18 }
 0x5df   :  { %6688 = vmatpush3.bf16.msra.mxu0 %v7695_v34 }
 0x5e0   :  { %6689 = vmatprep.subr.bf16.mxu0 %v7556_v18 }
 0x5e3   :  { %6691 = vmatpush3.bf16.msra.mxu0 %v7703_v39 }
 0x5e4   :  { %v1462_v60 = vpop.f32.mrb[36].mxu1  ;;  %6692 = vmatprep.subr.bf16.mxu0 %v7556_v18 }
 0x5e5   :  { %v1463_v0 = vadd.f32 %v1462_v60, %v383_v6  ;;  %v5252_v11 = vpop.f32.mrb[37].mxu1 }
 0x5e7   :  { %7373 = vtanh.f32 %v1463_v0  ;;  %6694 = vmatpush3.bf16.msra.mxu0 %v7711_v44 }
 0x5e8   :  { %6695 = vmatprep.subr.bf16.mxu0 %v7556_v18 }
 0x5eb   :  { %6697 = vmatpush3.bf16.msra.mxu0 %v7719_v49 }
 0x5ec   :  { %6698 = vmatprep.subr.bf16.mxu0 %v7556_v18 }
 0x5ef   :  { %6700 = vmatpush3.bf16.msra.mxu0 %v7727_v54 }
 0x5f0   :  { %6725 = vmatprep.subr.bf16.mxu0 %v7556_v18 }
 0x5f1   :  { %v8126_v5 = vpop.eup %7373 }
 0x5f2   :  { %5321 = vmatmul.mubr.f32.vlgmr.msra.gmra.mrb[38].mxu1 %v8126_v5 }
 0x5f3   :  { %6703 = vmatpush3.bf16.msra.mxu1 %v7670_v17  ;;  %5390 = vmatprep.mubr.msk.f32.mxu1 %vm7557_vm1, %v7558_v63 }
 0x5f4   :  { %6704 = vmatprep.subr.bf16.mxu1 %v7556_v18 }
 0x5f7   :  { %6706 = vmatpush3.bf16.msra.mxu1 %v7678_v24 }
 0x5f8   :  { %6707 = vmatprep.subr.bf16.mxu1 %v7556_v18 }
 0x5fb   :  { %6709 = vmatpush3.bf16.msra.mxu1 %v7687_v29 }
 0x5fc   :  { %6710 = vmatprep.subr.bf16.mxu1 %v7556_v18 }
 0x5ff   :  { %6712 = vmatpush3.bf16.msra.mxu1 %v7695_v34 }
 0x600   :  { %6713 = vmatprep.subr.bf16.mxu1 %v7556_v18 }
 0x603   :  { %6715 = vmatpush3.bf16.msra.mxu1 %v7703_v39 }
 0x604   :  { %6716 = vmatprep.subr.bf16.mxu1 %v7556_v18 }
 0x607   :  { %6718 = vmatpush3.bf16.msra.mxu1 %v7711_v44 }
 0x608   :  { %6719 = vmatprep.subr.bf16.mxu1 %v7556_v18 }
 0x60b   :  { %6721 = vmatpush3.bf16.msra.mxu1 %v7719_v49 }
 0x60c   :  { %6722 = vmatprep.subr.bf16.mxu1 %v7556_v18 }
 0x60f   :  { %6724 = vmatpush3.bf16.msra.mxu1 %v7727_v54 }
 0x610   :  { %6749 = vmatprep.subr.bf16.mxu1 %v7556_v18 }
 0x6a5   :  { %v1539_v4 = vpop.f32.mrb[26].mxu0 }
 0x6a6   :  { %v1540_v16 = vadd.f32 %v1539_v4, %v388_v12  ;;  %v5287_v48 = vpop.f32.mrb[27].mxu0 }
 0x6a7   :  { %v408_v48 = vadd.f32 %v7848_v45, %v7803_v15  ;;  %v413_v15 = vadd.f32 %v7801_v14, %v7848_v45 }
 0x6a8   :  { %7375 = vtanh.f32 %v1540_v16 }
 0x6b2   :  { %v8149_v50 = vpop.eup %7375 }
 0x6b3   :  { %5356 = vmatmul.mubr.f32.vlgmr.msra.gmra.mrb[28].mxu0 %v8149_v50 }
 0x6b4   :  { %6727 = vmatpush3.bf16.msra.mxu0 %v7670_v17  ;;  %5425 = vmatprep.mubr.msk.f32.mxu0 %vm7557_vm1, %v7558_v63 }
 0x6b5   :  { %6728 = vmatprep.subr.bf16.mxu0 %v7556_v18 }
 0x6b8   :  { %6730 = vmatpush3.bf16.msra.mxu0 %v7678_v24 }
 0x6b9   :  { %6731 = vmatprep.subr.bf16.mxu0 %v7556_v18 }
 0x6bc   :  { %6733 = vmatpush3.bf16.msra.mxu0 %v7687_v29 }
 0x6bd   :  { %6734 = vmatprep.subr.bf16.mxu0 %v7556_v18 }
 0x6c0   :  { %6736 = vmatpush3.bf16.msra.mxu0 %v7695_v34 }
 0x6c1   :  { %6737 = vmatprep.subr.bf16.mxu0 %v7556_v18 }
 0x6c4   :  { %6739 = vmatpush3.bf16.msra.mxu0 %v7703_v39 }
 0x6c5   :  { %v1610_v51 = vpop.f32.mrb[38].mxu1  ;;  %6740 = vmatprep.subr.bf16.mxu0 %v7556_v18 }
 0x6c6   :  { %v1611_v2 = vadd.f32 %v1610_v51, %v393_v8  ;;  %v5322_v56 = vpop.f32.mrb[39].mxu1 }
 0x6c8   :  { %7377 = vtanh.f32 %v1611_v2  ;;  %6742 = vmatpush3.bf16.msra.mxu0 %v7711_v44 }
 0x6c9   :  { %6743 = vmatprep.subr.bf16.mxu0 %v7556_v18 }
 0x6cc   :  { %6745 = vmatpush3.bf16.msra.mxu0 %v7719_v49 }
 0x6cd   :  { %6746 = vmatprep.subr.bf16.mxu0 %v7556_v18 }
 0x6d0   :  { %6748 = vmatpush3.bf16.msra.mxu0 %v7727_v54 }
 0x6d1   :  { %6773 = vmatprep.subr.bf16.mxu0 %v7556_v18 }
 0x6d2   :  { %v8172_v7 = vpop.eup %7377 }
 0x6d3   :  { %5391 = vmatmul.mubr.f32.vlgmr.msra.gmra.mrb[40].mxu1 %v8172_v7 }
 0x6d4   :  { %6751 = vmatpush3.bf16.msra.mxu1 %v7670_v17  ;;  %5460 = vmatprep.mubr.msk.f32.mxu1 %vm7557_vm1, %v7558_v63 }
 0x6d5   :  { %6752 = vmatprep.subr.bf16.mxu1 %v7556_v18 }
 0x6d8   :  { %6754 = vmatpush3.bf16.msra.mxu1 %v7678_v24 }
 0x6d9   :  { %6755 = vmatprep.subr.bf16.mxu1 %v7556_v18 }
 0x6dc   :  { %6757 = vmatpush3.bf16.msra.mxu1 %v7687_v29 }
 0x6dd   :  { %6758 = vmatprep.subr.bf16.mxu1 %v7556_v18 }
 0x6e0   :  { %6760 = vmatpush3.bf16.msra.mxu1 %v7695_v34 }
 0x6e1   :  { %6761 = vmatprep.subr.bf16.mxu1 %v7556_v18 }
 0x6e4   :  { %6763 = vmatpush3.bf16.msra.mxu1 %v7703_v39 }
 0x6e5   :  { %6764 = vmatprep.subr.bf16.mxu1 %v7556_v18 }
 0x6e8   :  { %6766 = vmatpush3.bf16.msra.mxu1 %v7711_v44 }
 0x6e9   :  { %6767 = vmatprep.subr.bf16.mxu1 %v7556_v18 }
 0x6ec   :  { %6769 = vmatpush3.bf16.msra.mxu1 %v7719_v49 }
 0x6ed   :  { %6770 = vmatprep.subr.bf16.mxu1 %v7556_v18 }
 0x6f0   :  { %6772 = vmatpush3.bf16.msra.mxu1 %v7727_v54 }
 0x6f1   :  { %6797 = vmatprep.subr.bf16.mxu1 %v7556_v18 }
 0x786   :  { %v1687_v6 = vpop.f32.mrb[28].mxu0 }
 0x787   :  { %v1688_v60 = vadd.f32 %v1687_v6, %v398_v57  ;;  %v5357_v0 = vpop.f32.mrb[29].mxu0 }
 0x788   :  { %v418_v0 = vadd.f32 %v7848_v45, %v7807_v21  ;;  %v423_v21 = vadd.f32 %v7805_v20, %v7848_v45 }
 0x789   :  { %7379 = vtanh.f32 %v1688_v60 }
 0x793   :  { %v8195_v11 = vpop.eup %7379 }
 0x794   :  { %5426 = vmatmul.mubr.f32.vlgmr.msra.gmra.mrb[30].mxu0 %v8195_v11 }
 0x795   :  { %6775 = vmatpush3.bf16.msra.mxu0 %v7670_v17  ;;  %5495 = vmatprep.mubr.msk.f32.mxu0 %vm7557_vm1, %v7558_v63 }
 0x796   :  { %6776 = vmatprep.subr.bf16.mxu0 %v7556_v18 }
 0x799   :  { %6778 = vmatpush3.bf16.msra.mxu0 %v7678_v24 }
 0x79a   :  { %6779 = vmatprep.subr.bf16.mxu0 %v7556_v18 }
 0x79d   :  { %6781 = vmatpush3.bf16.msra.mxu0 %v7687_v29 }
 0x79e   :  { %6782 = vmatprep.subr.bf16.mxu0 %v7556_v18 }
 0x7a1   :  { %6784 = vmatpush3.bf16.msra.mxu0 %v7695_v34 }
 0x7a2   :  { %6785 = vmatprep.subr.bf16.mxu0 %v7556_v18 }
 0x7a5   :  { %6787 = vmatpush3.bf16.msra.mxu0 %v7703_v39 }
 0x7a6   :  { %v1758_v12 = vpop.f32.mrb[40].mxu1  ;;  %6788 = vmatprep.subr.bf16.mxu0 %v7556_v18 }
 0x7a7   :  { %v1759_v4 = vadd.f32 %v1758_v12, %v403_v10  ;;  %v5392_v16 = vpop.f32.mrb[41].mxu1 }
 0x7a9   :  { %7381 = vtanh.f32 %v1759_v4  ;;  %6790 = vmatpush3.bf16.msra.mxu0 %v7711_v44 }
 0x7aa   :  { %6791 = vmatprep.subr.bf16.mxu0 %v7556_v18 }
 0x7ad   :  { %6793 = vmatpush3.bf16.msra.mxu0 %v7719_v49 }
 0x7ae   :  { %6794 = vmatprep.subr.bf16.mxu0 %v7556_v18 }
 0x7b1   :  { %6796 = vmatpush3.bf16.msra.mxu0 %v7727_v54 }
 0x7b2   :  { %6821 = vmatprep.subr.bf16.mxu0 %v7556_v18 }
 0x7b3   :  { %v8218_v9 = vpop.eup %7381 }
 0x7b4   :  { %5461 = vmatmul.mubr.f32.vlgmr.msra.gmra.mrb[42].mxu1 %v8218_v9 }
 0x7b5   :  { %6799 = vmatpush3.bf16.msra.mxu1 %v7670_v17  ;;  %5530 = vmatprep.mubr.msk.f32.mxu1 %vm7557_vm1, %v7558_v63 }
 0x7b6   :  { %6800 = vmatprep.subr.bf16.mxu1 %v7556_v18 }
 0x7b9   :  { %6802 = vmatpush3.bf16.msra.mxu1 %v7678_v24 }
 0x7ba   :  { %6803 = vmatprep.subr.bf16.mxu1 %v7556_v18 }
 0x7bd   :  { %6805 = vmatpush3.bf16.msra.mxu1 %v7687_v29 }
 0x7be   :  { %6806 = vmatprep.subr.bf16.mxu1 %v7556_v18 }
 0x7c1   :  { %6808 = vmatpush3.bf16.msra.mxu1 %v7695_v34 }
 0x7c2   :  { %6809 = vmatprep.subr.bf16.mxu1 %v7556_v18 }
 0x7c5   :  { %6811 = vmatpush3.bf16.msra.mxu1 %v7703_v39 }
 0x7c6   :  { %6812 = vmatprep.subr.bf16.mxu1 %v7556_v18 }
 0x7c9   :  { %6814 = vmatpush3.bf16.msra.mxu1 %v7711_v44 }
 0x7ca   :  { %6815 = vmatprep.subr.bf16.mxu1 %v7556_v18 }
 0x7cd   :  { %6817 = vmatpush3.bf16.msra.mxu1 %v7719_v49 }
 0x7ce   :  { %6818 = vmatprep.subr.bf16.mxu1 %v7556_v18 }
 0x7d1   :  { %6820 = vmatpush3.bf16.msra.mxu1 %v7727_v54 }
 0x7d2   :  { %6845 = vmatprep.subr.bf16.mxu1 %v7556_v18 }
 0x867   :  { %v1835_v8 = vpop.f32.mrb[30].mxu0 }
 0x868   :  { %v1836_v51 = vadd.f32 %v1835_v8, %v408_v48  ;;  %v5427_v2 = vpop.f32.mrb[31].mxu0 }
 0x869   :  { %v428_v2 = vadd.f32 %v7848_v45, %v7811_v23  ;;  %v8349_v23 = vld [vmem:[%s8813_s3] ss:$0 sm:$0xff] }
 0x86a   :  { %7383 = vtanh.f32 %v1836_v51  ;;  %v433_v45 = vadd.f32 %v8349_v23, %v7809_v22 }
 0x874   :  { %v8241_v56 = vpop.eup %7383 }
 0x875   :  { %5496 = vmatmul.mubr.f32.vlgmr.msra.gmra.mrb[32].mxu0 %v8241_v56 }
 0x876   :  { %6823 = vmatpush3.bf16.msra.mxu0 %v7670_v17  ;;  %5565 = vmatprep.mubr.msk.f32.mxu0 %vm7557_vm1, %v7558_v63 }
 0x877   :  { %6824 = vmatprep.subr.bf16.mxu0 %v7556_v18 }
 0x87a   :  { %6826 = vmatpush3.bf16.msra.mxu0 %v7678_v24 }
 0x87b   :  { %6827 = vmatprep.subr.bf16.mxu0 %v7556_v18 }
 0x87e   :  { %6829 = vmatpush3.bf16.msra.mxu0 %v7687_v29 }
 0x87f   :  { %6830 = vmatprep.subr.bf16.mxu0 %v7556_v18 }
 0x882   :  { %6832 = vmatpush3.bf16.msra.mxu0 %v7695_v34 }
 0x883   :  { %6833 = vmatprep.subr.bf16.mxu0 %v7556_v18 }
 0x886   :  { %6835 = vmatpush3.bf16.msra.mxu0 %v7703_v39 }
 0x887   :  { %v1906_v57 = vpop.f32.mrb[42].mxu1  ;;  %6836 = vmatprep.subr.bf16.mxu0 %v7556_v18 }
 0x888   :  { %v1907_v6 = vadd.f32 %v1906_v57, %v413_v15  ;;  %v5462_v60 = vpop.f32.mrb[43].mxu1 }
 0x88a   :  { %7385 = vtanh.f32 %v1907_v6  ;;  %6838 = vmatpush3.bf16.msra.mxu0 %v7711_v44 }
 0x88b   :  { %6839 = vmatprep.subr.bf16.mxu0 %v7556_v18 }
 0x88e   :  { %6841 = vmatpush3.bf16.msra.mxu0 %v7719_v49 }
 0x88f   :  { %6842 = vmatprep.subr.bf16.mxu0 %v7556_v18 }
 0x892   :  { %6844 = vmatpush3.bf16.msra.mxu0 %v7727_v54 }
 0x893   :  { %6869 = vmatprep.subr.bf16.mxu0 %v7556_v18 }
 0x894   :  { %v8264_v14 = vpop.eup %7385 }
 0x895   :  { %5531 = vmatmul.mubr.f32.vlgmr.msra.gmra.mrb[44].mxu1 %v8264_v14 }
 0x896   :  { %6847 = vmatpush3.bf16.msra.mxu1 %v7670_v17  ;;  %5600 = vmatprep.mubr.msk.f32.mxu1 %vm7557_vm1, %v7558_v63 }
 0x897   :  { %6848 = vmatprep.subr.bf16.mxu1 %v7556_v18 }
 0x89a   :  { %6850 = vmatpush3.bf16.msra.mxu1 %v7678_v24 }
 0x89b   :  { %6851 = vmatprep.subr.bf16.mxu1 %v7556_v18 }
 0x89e   :  { %6853 = vmatpush3.bf16.msra.mxu1 %v7687_v29 }
 0x89f   :  { %6854 = vmatprep.subr.bf16.mxu1 %v7556_v18 }
 0x8a2   :  { %6856 = vmatpush3.bf16.msra.mxu1 %v7695_v34 }
 0x8a3   :  { %6857 = vmatprep.subr.bf16.mxu1 %v7556_v18 }
 0x8a6   :  { %6859 = vmatpush3.bf16.msra.mxu1 %v7703_v39 }
 0x8a7   :  { %6860 = vmatprep.subr.bf16.mxu1 %v7556_v18 }
 0x8aa   :  { %6862 = vmatpush3.bf16.msra.mxu1 %v7711_v44 }
 0x8ab   :  { %6863 = vmatprep.subr.bf16.mxu1 %v7556_v18 }
 0x8ae   :  { %6865 = vmatpush3.bf16.msra.mxu1 %v7719_v49 }
 0x8af   :  { %6866 = vmatprep.subr.bf16.mxu1 %v7556_v18 }
 0x8b2   :  { %6868 = vmatpush3.bf16.msra.mxu1 %v7727_v54 }
 0x8b3   :  { %6893 = vmatprep.subr.bf16.mxu1 %v7556_v18 }
 0x948   :  { %v1983_v10 = vpop.f32.mrb[32].mxu0 }
 0x949   :  { %v1984_v12 = vadd.f32 %v1983_v10, %v418_v0  ;;  %v5497_v4 = vpop.f32.mrb[33].mxu0 }
 0x94a   :  { %v438_v4 = vadd.f32 %v8349_v23, %v7815_v26  ;;  %v443_v26 = vadd.f32 %v8349_v23, %v7813_v25 }
 0x94b   :  { %7387 = vtanh.f32 %v1984_v12 }
 0x955   :  { %v8287_v16 = vpop.eup %7387 }
 0x956   :  { %5566 = vmatmul.mubr.f32.vlgmr.msra.gmra.mrb[34].mxu0 %v8287_v16 }
 0x957   :  { %6871 = vmatpush3.bf16.msra.mxu0 %v7670_v17  ;;  %5635 = vmatprep.mubr.msk.f32.mxu0 %vm7557_vm1, %v7558_v63 }
 0x958   :  { %6872 = vmatprep.subr.bf16.mxu0 %v7556_v18 }
 0x95b   :  { %6874 = vmatpush3.bf16.msra.mxu0 %v7678_v24 }
 0x95c   :  { %6875 = vmatprep.subr.bf16.mxu0 %v7556_v18 }
 0x95f   :  { %6877 = vmatpush3.bf16.msra.mxu0 %v7687_v29 }
 0x960   :  { %6878 = vmatprep.subr.bf16.mxu0 %v7556_v18 }
 0x963   :  { %6880 = vmatpush3.bf16.msra.mxu0 %v7695_v34 }
 0x964   :  { %6881 = vmatprep.subr.bf16.mxu0 %v7556_v18 }
 0x967   :  { %6883 = vmatpush3.bf16.msra.mxu0 %v7703_v39 }
 0x968   :  { %v2054_v48 = vpop.f32.mrb[44].mxu1  ;;  %6884 = vmatprep.subr.bf16.mxu0 %v7556_v18 }
 0x969   :  { %v2055_v8 = vadd.f32 %v2054_v48, %v423_v21  ;;  %v5532_v51 = vpop.f32.mrb[45].mxu1 }
 0x96b   :  { %7389 = vtanh.f32 %v2055_v8  ;;  %6886 = vmatpush3.bf16.msra.mxu0 %v7711_v44 }
 0x96c   :  { %6887 = vmatprep.subr.bf16.mxu0 %v7556_v18 }
 0x96f   :  { %6889 = vmatpush3.bf16.msra.mxu0 %v7719_v49 }
 0x970   :  { %6890 = vmatprep.subr.bf16.mxu0 %v7556_v18 }
 0x973   :  { %6892 = vmatpush3.bf16.msra.mxu0 %v7727_v54 }
 0x974   :  { %6917 = vmatprep.subr.bf16.mxu0 %v7556_v18 }
 0x975   :  { %v8310_v20 = vpop.eup %7389 }
 0x976   :  { %5601 = vmatmul.mubr.f32.vlgmr.msra.gmra.mrb[46].mxu1 %v8310_v20 }
 0x977   :  { %6895 = vmatpush3.bf16.msra.mxu1 %v7670_v17  ;;  %5670 = vmatprep.mubr.msk.f32.mxu1 %vm7557_vm1, %v7558_v63 }
 0x978   :  { %6896 = vmatprep.subr.bf16.mxu1 %v7556_v18 }
 0x97b   :  { %6898 = vmatpush3.bf16.msra.mxu1 %v7678_v24 }
 0x97c   :  { %6899 = vmatprep.subr.bf16.mxu1 %v7556_v18 }
 0x97f   :  { %6901 = vmatpush3.bf16.msra.mxu1 %v7687_v29 }
 0x980   :  { %6902 = vmatprep.subr.bf16.mxu1 %v7556_v18 }
 0x983   :  { %6904 = vmatpush3.bf16.msra.mxu1 %v7695_v34 }
 0x984   :  { %6905 = vmatprep.subr.bf16.mxu1 %v7556_v18 }
 0x987   :  { %6907 = vmatpush3.bf16.msra.mxu1 %v7703_v39 }
 0x988   :  { %6908 = vmatprep.subr.bf16.mxu1 %v7556_v18 }
 0x98b   :  { %6910 = vmatpush3.bf16.msra.mxu1 %v7711_v44 }
 0x98c   :  { %6911 = vmatprep.subr.bf16.mxu1 %v7556_v18 }
 0x98f   :  { %6913 = vmatpush3.bf16.msra.mxu1 %v7719_v49 }
 0x990   :  { %6914 = vmatprep.subr.bf16.mxu1 %v7556_v18 }
 0x993   :  { %6916 = vmatpush3.bf16.msra.mxu1 %v7727_v54 }
 0x994   :  { %6941 = vmatprep.subr.bf16.mxu1 %v7556_v18 }
 0xa29   :  { %v2131_v15 = vpop.f32.mrb[34].mxu0 }
 0xa2a   :  { %v2132_v57 = vadd.f32 %v2131_v15, %v428_v2  ;;  %v5567_v6 = vpop.f32.mrb[35].mxu0 }
 0xa2b   :  { %v448_v6 = vadd.f32 %v8349_v23, %v7819_v28  ;;  %v453_v28 = vadd.f32 %v8349_v23, %v7817_v27 }
 0xa2c   :  { %7391 = vtanh.f32 %v2132_v57 }
 0xa36   :  { %v8333_v60 = vpop.eup %7391 }
 0xa37   :  { %5636 = vmatmul.mubr.f32.vlgmr.msra.gmra.mrb[36].mxu0 %v8333_v60 }
 0xa38   :  { %6919 = vmatpush3.bf16.msra.mxu0 %v7670_v17  ;;  %5705 = vmatprep.mubr.msk.f32.mxu0 %vm7557_vm1, %v7558_v63 }
 0xa39   :  { %6920 = vmatprep.subr.bf16.mxu0 %v7556_v18 }
 0xa3c   :  { %6922 = vmatpush3.bf16.msra.mxu0 %v7678_v24 }
 0xa3d   :  { %6923 = vmatprep.subr.bf16.mxu0 %v7556_v18 }
 0xa40   :  { %6925 = vmatpush3.bf16.msra.mxu0 %v7687_v29 }
 0xa41   :  { %6926 = vmatprep.subr.bf16.mxu0 %v7556_v18 }
 0xa44   :  { %6928 = vmatpush3.bf16.msra.mxu0 %v7695_v34 }
 0xa45   :  { %6929 = vmatprep.subr.bf16.mxu0 %v7556_v18 }
 0xa48   :  { %6931 = vmatpush3.bf16.msra.mxu0 %v7703_v39 }
 0xa49   :  { %v2202_v0 = vpop.f32.mrb[46].mxu1  ;;  %6932 = vmatprep.subr.bf16.mxu0 %v7556_v18 }
 0xa4a   :  { %v2203_v10 = vadd.f32 %v2202_v0, %v433_v45  ;;  %v5602_v12 = vpop.f32.mrb[47].mxu1 }
 0xa4c   :  { %7393 = vtanh.f32 %v2203_v10  ;;  %6934 = vmatpush3.bf16.msra.mxu0 %v7711_v44 }
 0xa4d   :  { %6935 = vmatprep.subr.bf16.mxu0 %v7556_v18 }
 0xa50   :  { %6937 = vmatpush3.bf16.msra.mxu0 %v7719_v49 }
 0xa51   :  { %6938 = vmatprep.subr.bf16.mxu0 %v7556_v18 }
 0xa54   :  { %6940 = vmatpush3.bf16.msra.mxu0 %v7727_v54 }
 0xa55   :  { %6965 = vmatprep.subr.bf16.mxu0 %v7556_v18 }
 0xa56   :  { %v8361_v22 = vpop.eup %7393 }
 0xa57   :  { %5671 = vmatmul.mubr.f32.vlgmr.msra.gmra.mrb[48].mxu1 %v8361_v22 }
 0xa58   :  { %6943 = vmatpush3.bf16.msra.mxu1 %v7670_v17  ;;  %5740 = vmatprep.mubr.msk.f32.mxu1 %vm7557_vm1, %v7558_v63 }
 0xa59   :  { %6944 = vmatprep.subr.bf16.mxu1 %v7556_v18 }
 0xa5c   :  { %6946 = vmatpush3.bf16.msra.mxu1 %v7678_v24 }
 0xa5d   :  { %6947 = vmatprep.subr.bf16.mxu1 %v7556_v18 }
 0xa60   :  { %6949 = vmatpush3.bf16.msra.mxu1 %v7687_v29 }
 0xa61   :  { %6950 = vmatprep.subr.bf16.mxu1 %v7556_v18 }
 0xa64   :  { %6952 = vmatpush3.bf16.msra.mxu1 %v7695_v34 }
 0xa65   :  { %6953 = vmatprep.subr.bf16.mxu1 %v7556_v18 }
 0xa68   :  { %6955 = vmatpush3.bf16.msra.mxu1 %v7703_v39 }
 0xa69   :  { %6956 = vmatprep.subr.bf16.mxu1 %v7556_v18 }
 0xa6c   :  { %6958 = vmatpush3.bf16.msra.mxu1 %v7711_v44 }
 0xa6d   :  { %6959 = vmatprep.subr.bf16.mxu1 %v7556_v18 }
 0xa70   :  { %6961 = vmatpush3.bf16.msra.mxu1 %v7719_v49 }
 0xa71   :  { %6962 = vmatprep.subr.bf16.mxu1 %v7556_v18 }
 0xa74   :  { %6964 = vmatpush3.bf16.msra.mxu1 %v7727_v54 }
 0xa75   :  { %6989 = vmatprep.subr.bf16.mxu1 %v7556_v18 }
 0xb0a   :  { %v2279_v21 = vpop.f32.mrb[36].mxu0 }
 0xb0b   :  { %v2280_v48 = vadd.f32 %v2279_v21, %v438_v4  ;;  %v5637_v8 = vpop.f32.mrb[37].mxu0 }
 0xb0c   :  { %v458_v8 = vadd.f32 %v8349_v23, %v7823_v31  ;;  %v463_v31 = vadd.f32 %v8349_v23, %v7821_v30 }
 0xb0d   :  { %7395 = vtanh.f32 %v2280_v48 }
 0xb17   :  { %v8384_v51 = vpop.eup %7395 }
 0xb18   :  { %5706 = vmatmul.mubr.f32.vlgmr.msra.gmra.mrb[38].mxu0 %v8384_v51 }
 0xb19   :  { %6967 = vmatpush3.bf16.msra.mxu0 %v7670_v17  ;;  %5775 = vmatprep.mubr.msk.f32.mxu0 %vm7557_vm1, %v7558_v63 }
 0xb1a   :  { %6968 = vmatprep.subr.bf16.mxu0 %v7556_v18 }
 0xb1d   :  { %6970 = vmatpush3.bf16.msra.mxu0 %v7678_v24 }
 0xb1e   :  { %6971 = vmatprep.subr.bf16.mxu0 %v7556_v18 }
 0xb21   :  { %6973 = vmatpush3.bf16.msra.mxu0 %v7687_v29 }
 0xb22   :  { %6974 = vmatprep.subr.bf16.mxu0 %v7556_v18 }
 0xb25   :  { %6976 = vmatpush3.bf16.msra.mxu0 %v7695_v34 }
 0xb26   :  { %6977 = vmatprep.subr.bf16.mxu0 %v7556_v18 }
 0xb29   :  { %6979 = vmatpush3.bf16.msra.mxu0 %v7703_v39 }
 0xb2a   :  { %v2350_v2 = vpop.f32.mrb[48].mxu1  ;;  %6980 = vmatprep.subr.bf16.mxu0 %v7556_v18 }
 0xb2b   :  { %v2351_v15 = vadd.f32 %v2350_v2, %v443_v26  ;;  %v5672_v57 = vpop.f32.mrb[49].mxu1 }
 0xb2d   :  { %7397 = vtanh.f32 %v2351_v15  ;;  %6982 = vmatpush3.bf16.msra.mxu0 %v7711_v44 }
 0xb2e   :  { %6983 = vmatprep.subr.bf16.mxu0 %v7556_v18 }
 0xb31   :  { %6985 = vmatpush3.bf16.msra.mxu0 %v7719_v49 }
 0xb32   :  { %6986 = vmatprep.subr.bf16.mxu0 %v7556_v18 }
 0xb35   :  { %6988 = vmatpush3.bf16.msra.mxu0 %v7727_v54 }
 0xb36   :  { %7013 = vmatprep.subr.bf16.mxu0 %v7556_v18 }
 0xb37   :  { %v8407_v25 = vpop.eup %7397 }
 0xb38   :  { %5741 = vmatmul.mubr.f32.vlgmr.msra.gmra.mrb[50].mxu1 %v8407_v25 }
 0xb39   :  { %6991 = vmatpush3.bf16.msra.mxu1 %v7670_v17  ;;  %5810 = vmatprep.mubr.msk.f32.mxu1 %vm7557_vm1, %v7558_v63 }
 0xb3a   :  { %6992 = vmatprep.subr.bf16.mxu1 %v7556_v18 }
 0xb3d   :  { %6994 = vmatpush3.bf16.msra.mxu1 %v7678_v24 }
 0xb3e   :  { %6995 = vmatprep.subr.bf16.mxu1 %v7556_v18 }
 0xb41   :  { %6997 = vmatpush3.bf16.msra.mxu1 %v7687_v29 }
 0xb42   :  { %6998 = vmatprep.subr.bf16.mxu1 %v7556_v18 }
 0xb45   :  { %7000 = vmatpush3.bf16.msra.mxu1 %v7695_v34 }
 0xb46   :  { %7001 = vmatprep.subr.bf16.mxu1 %v7556_v18 }
 0xb49   :  { %7003 = vmatpush3.bf16.msra.mxu1 %v7703_v39 }
 0xb4a   :  { %7004 = vmatprep.subr.bf16.mxu1 %v7556_v18 }
 0xb4d   :  { %7006 = vmatpush3.bf16.msra.mxu1 %v7711_v44 }
 0xb4e   :  { %7007 = vmatprep.subr.bf16.mxu1 %v7556_v18 }
 0xb51   :  { %7009 = vmatpush3.bf16.msra.mxu1 %v7719_v49 }
 0xb52   :  { %7010 = vmatprep.subr.bf16.mxu1 %v7556_v18 }
 0xb55   :  { %7012 = vmatpush3.bf16.msra.mxu1 %v7727_v54 }
 0xb56   :  { %7037 = vmatprep.subr.bf16.mxu1 %v7556_v18 }
 0xbeb   :  { %v2427_v45 = vpop.f32.mrb[38].mxu0 }
 0xbec   :  { %v2428_v0 = vadd.f32 %v2427_v45, %v448_v6  ;;  %v5707_v10 = vpop.f32.mrb[39].mxu0 }
 0xbed   :  { %v468_v10 = vadd.f32 %v8349_v23, %v7827_v33  ;;  %v473_v33 = vadd.f32 %v8349_v23, %v7825_v32 }
 0xbee   :  { %7399 = vtanh.f32 %v2428_v0 }
 0xbf8   :  { %v8430_v12 = vpop.eup %7399 }
 0xbf9   :  { %5776 = vmatmul.mubr.f32.vlgmr.msra.gmra.mrb[40].mxu0 %v8430_v12 }
 0xbfa   :  { %7015 = vmatpush3.bf16.msra.mxu0 %v7670_v17  ;;  %5845 = vmatprep.mubr.msk.f32.mxu0 %vm7557_vm1, %v7558_v63 }
 0xbfb   :  { %7016 = vmatprep.subr.bf16.mxu0 %v7556_v18 }
 0xbfe   :  { %7018 = vmatpush3.bf16.msra.mxu0 %v7678_v24 }
 0xbff   :  { %7019 = vmatprep.subr.bf16.mxu0 %v7556_v18 }
 0xc02   :  { %7021 = vmatpush3.bf16.msra.mxu0 %v7687_v29 }
 0xc03   :  { %7022 = vmatprep.subr.bf16.mxu0 %v7556_v18 }
 0xc06   :  { %7024 = vmatpush3.bf16.msra.mxu0 %v7695_v34 }
 0xc07   :  { %7025 = vmatprep.subr.bf16.mxu0 %v7556_v18 }
 0xc0a   :  { %7027 = vmatpush3.bf16.msra.mxu0 %v7703_v39 }
 0xc0b   :  { %v2498_v4 = vpop.f32.mrb[50].mxu1  ;;  %7028 = vmatprep.subr.bf16.mxu0 %v7556_v18 }
 0xc0c   :  { %v2499_v21 = vadd.f32 %v2498_v4, %v453_v28  ;;  %v5742_v48 = vpop.f32.mrb[51].mxu1 }
 0xc0e   :  { %7401 = vtanh.f32 %v2499_v21  ;;  %7030 = vmatpush3.bf16.msra.mxu0 %v7711_v44 }
 0xc0f   :  { %7031 = vmatprep.subr.bf16.mxu0 %v7556_v18 }
 0xc12   :  { %7033 = vmatpush3.bf16.msra.mxu0 %v7719_v49 }
 0xc13   :  { %7034 = vmatprep.subr.bf16.mxu0 %v7556_v18 }
 0xc16   :  { %7036 = vmatpush3.bf16.msra.mxu0 %v7727_v54 }
 0xc17   :  { %7061 = vmatprep.subr.bf16.mxu0 %v7556_v18 }
 0xc18   :  { %v8453_v27 = vpop.eup %7401 }
 0xc19   :  { %5811 = vmatmul.mubr.f32.vlgmr.msra.gmra.mrb[52].mxu1 %v8453_v27 }
 0xc1a   :  { %7039 = vmatpush3.bf16.msra.mxu1 %v7670_v17  ;;  %5880 = vmatprep.mubr.msk.f32.mxu1 %vm7557_vm1, %v7558_v63 }
 0xc1b   :  { %7040 = vmatprep.subr.bf16.mxu1 %v7556_v18 }
 0xc1e   :  { %7042 = vmatpush3.bf16.msra.mxu1 %v7678_v24 }
 0xc1f   :  { %7043 = vmatprep.subr.bf16.mxu1 %v7556_v18 }
 0xc22   :  { %7045 = vmatpush3.bf16.msra.mxu1 %v7687_v29 }
 0xc23   :  { %7046 = vmatprep.subr.bf16.mxu1 %v7556_v18 }
 0xc26   :  { %7048 = vmatpush3.bf16.msra.mxu1 %v7695_v34 }
 0xc27   :  { %7049 = vmatprep.subr.bf16.mxu1 %v7556_v18 }
 0xc2a   :  { %7051 = vmatpush3.bf16.msra.mxu1 %v7703_v39 }
 0xc2b   :  { %7052 = vmatprep.subr.bf16.mxu1 %v7556_v18 }
 0xc2e   :  { %7054 = vmatpush3.bf16.msra.mxu1 %v7711_v44 }
 0xc2f   :  { %7055 = vmatprep.subr.bf16.mxu1 %v7556_v18 }
 0xc32   :  { %7057 = vmatpush3.bf16.msra.mxu1 %v7719_v49 }
 0xc33   :  { %7058 = vmatprep.subr.bf16.mxu1 %v7556_v18 }
 0xc36   :  { %7060 = vmatpush3.bf16.msra.mxu1 %v7727_v54 }
 0xc37   :  { %7085 = vmatprep.subr.bf16.mxu1 %v7556_v18 }
 0xccc   :  { %v2575_v26 = vpop.f32.mrb[40].mxu0 }
 0xccd   :  { %v2576_v2 = vadd.f32 %v2575_v26, %v458_v8  ;;  %v5777_v15 = vpop.f32.mrb[41].mxu0 }
 0xcce   :  { %v478_v15 = vadd.f32 %v8349_v23, %v7831_v36  ;;  %v483_v36 = vadd.f32 %v8349_v23, %v7829_v35 }
 0xccf   :  { %7403 = vtanh.f32 %v2576_v2 }
 0xcd9   :  { %v8476_v57 = vpop.eup %7403 }
 0xcda   :  { %5846 = vmatmul.mubr.f32.vlgmr.msra.gmra.mrb[42].mxu0 %v8476_v57 }
 0xcdb   :  { %7063 = vmatpush3.bf16.msra.mxu0 %v7670_v17  ;;  %5915 = vmatprep.mubr.msk.f32.mxu0 %vm7557_vm1, %v7558_v63 }
 0xcdc   :  { %7064 = vmatprep.subr.bf16.mxu0 %v7556_v18 }
 0xcdf   :  { %7066 = vmatpush3.bf16.msra.mxu0 %v7678_v24 }
 0xce0   :  { %7067 = vmatprep.subr.bf16.mxu0 %v7556_v18 }
 0xce3   :  { %7069 = vmatpush3.bf16.msra.mxu0 %v7687_v29 }
 0xce4   :  { %7070 = vmatprep.subr.bf16.mxu0 %v7556_v18 }
 0xce7   :  { %7072 = vmatpush3.bf16.msra.mxu0 %v7695_v34 }
 0xce8   :  { %7073 = vmatprep.subr.bf16.mxu0 %v7556_v18 }
 0xceb   :  { %7075 = vmatpush3.bf16.msra.mxu0 %v7703_v39 }
 0xcec   :  { %v2646_v6 = vpop.f32.mrb[52].mxu1  ;;  %7076 = vmatprep.subr.bf16.mxu0 %v7556_v18 }
 0xced   :  { %v2647_v45 = vadd.f32 %v2646_v6, %v463_v31  ;;  %v5812_v0 = vpop.f32.mrb[53].mxu1 }
 0xcef   :  { %7405 = vtanh.f32 %v2647_v45  ;;  %7078 = vmatpush3.bf16.msra.mxu0 %v7711_v44 }
 0xcf0   :  { %7079 = vmatprep.subr.bf16.mxu0 %v7556_v18 }
 0xcf3   :  { %7081 = vmatpush3.bf16.msra.mxu0 %v7719_v49 }
 0xcf4   :  { %7082 = vmatprep.subr.bf16.mxu0 %v7556_v18 }
 0xcf7   :  { %7084 = vmatpush3.bf16.msra.mxu0 %v7727_v54 }
 0xcf8   :  { %7109 = vmatprep.subr.bf16.mxu0 %v7556_v18 }
 0xcf9   :  { %v8499_v30 = vpop.eup %7405 }
 0xcfa   :  { %5881 = vmatmul.mubr.f32.vlgmr.msra.gmra.mrb[54].mxu1 %v8499_v30 }
 0xcfb   :  { %7087 = vmatpush3.bf16.msra.mxu1 %v7670_v17  ;;  %5950 = vmatprep.mubr.msk.f32.mxu1 %vm7557_vm1, %v7558_v63 }
 0xcfc   :  { %7088 = vmatprep.subr.bf16.mxu1 %v7556_v18 }
 0xcff   :  { %7090 = vmatpush3.bf16.msra.mxu1 %v7678_v24 }
 0xd00   :  { %7091 = vmatprep.subr.bf16.mxu1 %v7556_v18 }
 0xd03   :  { %7093 = vmatpush3.bf16.msra.mxu1 %v7687_v29 }
 0xd04   :  { %7094 = vmatprep.subr.bf16.mxu1 %v7556_v18 }
 0xd07   :  { %7096 = vmatpush3.bf16.msra.mxu1 %v7695_v34 }
 0xd08   :  { %7097 = vmatprep.subr.bf16.mxu1 %v7556_v18 }
 0xd0b   :  { %7099 = vmatpush3.bf16.msra.mxu1 %v7703_v39 }
 0xd0c   :  { %7100 = vmatprep.subr.bf16.mxu1 %v7556_v18 }
 0xd0f   :  { %7102 = vmatpush3.bf16.msra.mxu1 %v7711_v44 }
 0xd10   :  { %7103 = vmatprep.subr.bf16.mxu1 %v7556_v18 }
 0xd13   :  { %7105 = vmatpush3.bf16.msra.mxu1 %v7719_v49 }
 0xd14   :  { %7106 = vmatprep.subr.bf16.mxu1 %v7556_v18 }
 0xd17   :  { %7108 = vmatpush3.bf16.msra.mxu1 %v7727_v54 }
 0xd18   :  { %7133 = vmatprep.subr.bf16.mxu1 %v7556_v18 }
 0xdad   :  { %v2723_v28 = vpop.f32.mrb[42].mxu0 }
 0xdae   :  { %v2724_v4 = vadd.f32 %v2723_v28, %v468_v10  ;;  %v5847_v21 = vpop.f32.mrb[43].mxu0 }
 0xdaf   :  { %v488_v21 = vadd.f32 %v8349_v23, %v7835_v38  ;;  %v493_v38 = vadd.f32 %v8349_v23, %v7833_v37 }
 0xdb0   :  { %7407 = vtanh.f32 %v2724_v4 }
 0xdba   :  { %v8522_v48 = vpop.eup %7407 }
 0xdbb   :  { %5916 = vmatmul.mubr.f32.vlgmr.msra.gmra.mrb[44].mxu0 %v8522_v48 }
 0xdbc   :  { %7111 = vmatpush3.bf16.msra.mxu0 %v7670_v17  ;;  %5985 = vmatprep.mubr.msk.f32.mxu0 %vm7557_vm1, %v7558_v63 }
 0xdbd   :  { %7112 = vmatprep.subr.bf16.mxu0 %v7556_v18 }
 0xdc0   :  { %7114 = vmatpush3.bf16.msra.mxu0 %v7678_v24 }
 0xdc1   :  { %7115 = vmatprep.subr.bf16.mxu0 %v7556_v18 }
 0xdc4   :  { %7117 = vmatpush3.bf16.msra.mxu0 %v7687_v29 }
 0xdc5   :  { %7118 = vmatprep.subr.bf16.mxu0 %v7556_v18 }
 0xdc8   :  { %7120 = vmatpush3.bf16.msra.mxu0 %v7695_v34 }
 0xdc9   :  { %7121 = vmatprep.subr.bf16.mxu0 %v7556_v18 }
 0xdcc   :  { %7123 = vmatpush3.bf16.msra.mxu0 %v7703_v39 }
 0xdcd   :  { %v2794_v8 = vpop.f32.mrb[54].mxu1  ;;  %7124 = vmatprep.subr.bf16.mxu0 %v7556_v18 }
 0xdce   :  { %v2795_v26 = vadd.f32 %v2794_v8, %v473_v33  ;;  %v5882_v2 = vpop.f32.mrb[55].mxu1 }
 0xdd0   :  { %7409 = vtanh.f32 %v2795_v26  ;;  %7126 = vmatpush3.bf16.msra.mxu0 %v7711_v44 }
 0xdd1   :  { %7127 = vmatprep.subr.bf16.mxu0 %v7556_v18 }
 0xdd4   :  { %7129 = vmatpush3.bf16.msra.mxu0 %v7719_v49 }
 0xdd5   :  { %7130 = vmatprep.subr.bf16.mxu0 %v7556_v18 }
 0xdd8   :  { %7132 = vmatpush3.bf16.msra.mxu0 %v7727_v54 }
 0xdd9   :  { %7157 = vmatprep.subr.bf16.mxu0 %v7556_v18 }
 0xdda   :  { %v8545_v32 = vpop.eup %7409 }
 0xddb   :  { %5951 = vmatmul.mubr.f32.vlgmr.msra.gmra.mrb[56].mxu1 %v8545_v32 }
 0xddc   :  { %7135 = vmatpush3.bf16.msra.mxu1 %v7670_v17  ;;  %6020 = vmatprep.mubr.msk.f32.mxu1 %vm7557_vm1, %v7558_v63 }
 0xddd   :  { %7136 = vmatprep.subr.bf16.mxu1 %v7556_v18 }
 0xde0   :  { %7138 = vmatpush3.bf16.msra.mxu1 %v7678_v24 }
 0xde1   :  { %7139 = vmatprep.subr.bf16.mxu1 %v7556_v18 }
 0xde4   :  { %7141 = vmatpush3.bf16.msra.mxu1 %v7687_v29 }
 0xde5   :  { %7142 = vmatprep.subr.bf16.mxu1 %v7556_v18 }
 0xde8   :  { %7144 = vmatpush3.bf16.msra.mxu1 %v7695_v34 }
 0xde9   :  { %7145 = vmatprep.subr.bf16.mxu1 %v7556_v18 }
 0xdec   :  { %7147 = vmatpush3.bf16.msra.mxu1 %v7703_v39 }
 0xded   :  { %7148 = vmatprep.subr.bf16.mxu1 %v7556_v18 }
 0xdf0   :  { %7150 = vmatpush3.bf16.msra.mxu1 %v7711_v44 }
 0xdf1   :  { %7151 = vmatprep.subr.bf16.mxu1 %v7556_v18 }
 0xdf4   :  { %7153 = vmatpush3.bf16.msra.mxu1 %v7719_v49 }
 0xdf5   :  { %7154 = vmatprep.subr.bf16.mxu1 %v7556_v18 }
 0xdf8   :  { %7156 = vmatpush3.bf16.msra.mxu1 %v7727_v54 }
 0xdf9   :  { %7181 = vmatprep.subr.bf16.mxu1 %v7556_v18 }
 0xe8e   :  { %v2871_v31 = vpop.f32.mrb[44].mxu0 }
 0xe8f   :  { %v2872_v6 = vadd.f32 %v2871_v31, %v478_v15  ;;  %v5917_v45 = vpop.f32.mrb[45].mxu0 }
 0xe90   :  { %v498_v45 = vadd.f32 %v8349_v23, %v7839_v41  ;;  %v503_v41 = vadd.f32 %v8349_v23, %v7837_v40 }
 0xe91   :  { %7411 = vtanh.f32 %v2872_v6 }
 0xe9b   :  { %v8568_v0 = vpop.eup %7411 }
 0xe9c   :  { %5986 = vmatmul.mubr.f32.vlgmr.msra.gmra.mrb[46].mxu0 %v8568_v0 }
 0xe9d   :  { %7159 = vmatpush3.bf16.msra.mxu0 %v7670_v17  ;;  %6055 = vmatprep.mubr.msk.f32.mxu0 %vm7557_vm1, %v7558_v63 }
 0xe9e   :  { %7160 = vmatprep.subr.bf16.mxu0 %v7556_v18 }
 0xea1   :  { %7162 = vmatpush3.bf16.msra.mxu0 %v7678_v24 }
 0xea2   :  { %7163 = vmatprep.subr.bf16.mxu0 %v7556_v18 }
 0xea5   :  { %7165 = vmatpush3.bf16.msra.mxu0 %v7687_v29 }
 0xea6   :  { %7166 = vmatprep.subr.bf16.mxu0 %v7556_v18 }
 0xea9   :  { %7168 = vmatpush3.bf16.msra.mxu0 %v7695_v34 }
 0xeaa   :  { %7169 = vmatprep.subr.bf16.mxu0 %v7556_v18 }
 0xead   :  { %7171 = vmatpush3.bf16.msra.mxu0 %v7703_v39 }
 0xeae   :  { %v2942_v10 = vpop.f32.mrb[56].mxu1  ;;  %7172 = vmatprep.subr.bf16.mxu0 %v7556_v18 }
 0xeaf   :  { %v2943_v28 = vadd.f32 %v2942_v10, %v483_v36  ;;  %v5952_v4 = vpop.f32.mrb[57].mxu1 }
 0xeb1   :  { %7413 = vtanh.f32 %v2943_v28  ;;  %7174 = vmatpush3.bf16.msra.mxu0 %v7711_v44 }
 0xeb2   :  { %7175 = vmatprep.subr.bf16.mxu0 %v7556_v18 }
 0xeb5   :  { %7177 = vmatpush3.bf16.msra.mxu0 %v7719_v49 }
 0xeb6   :  { %7178 = vmatprep.subr.bf16.mxu0 %v7556_v18 }
 0xeb9   :  { %7180 = vmatpush3.bf16.msra.mxu0 %v7727_v54 }
 0xeba   :  { %7205 = vmatprep.subr.bf16.mxu0 %v7556_v18 }
 0xebb   :  { %v8591_v35 = vpop.eup %7413 }
 0xebc   :  { %6021 = vmatmul.mubr.f32.vlgmr.msra.gmra.mrb[58].mxu1 %v8591_v35 }
 0xebd   :  { %7183 = vmatpush3.bf16.msra.mxu1 %v7670_v17  ;;  %6090 = vmatprep.mubr.msk.f32.mxu1 %vm7557_vm1, %v7558_v63 }
 0xebe   :  { %7184 = vmatprep.subr.bf16.mxu1 %v7556_v18 }
 0xec1   :  { %7186 = vmatpush3.bf16.msra.mxu1 %v7678_v24 }
 0xec2   :  { %7187 = vmatprep.subr.bf16.mxu1 %v7556_v18 }
 0xec5   :  { %7189 = vmatpush3.bf16.msra.mxu1 %v7687_v29 }
 0xec6   :  { %7190 = vmatprep.subr.bf16.mxu1 %v7556_v18 }
 0xec9   :  { %7192 = vmatpush3.bf16.msra.mxu1 %v7695_v34 }
 0xeca   :  { %7193 = vmatprep.subr.bf16.mxu1 %v7556_v18 }
 0xecd   :  { %7195 = vmatpush3.bf16.msra.mxu1 %v7703_v39 }
 0xece   :  { %7196 = vmatprep.subr.bf16.mxu1 %v7556_v18 }
 0xed1   :  { %7198 = vmatpush3.bf16.msra.mxu1 %v7711_v44 }
 0xed2   :  { %7199 = vmatprep.subr.bf16.mxu1 %v7556_v18 }
 0xed5   :  { %7201 = vmatpush3.bf16.msra.mxu1 %v7719_v49 }
 0xed6   :  { %7202 = vmatprep.subr.bf16.mxu1 %v7556_v18 }
 0xed9   :  { %7204 = vmatpush3.bf16.msra.mxu1 %v7727_v54 }
 0xeda   :  { %7229 = vmatprep.subr.bf16.mxu1 %v7556_v18 }
 0xf6f   :  { %v3019_v33 = vpop.f32.mrb[46].mxu0 }
 0xf70   :  { %v3020_v8 = vadd.f32 %v3019_v33, %v488_v21  ;;  %v5987_v26 = vpop.f32.mrb[47].mxu0 }
 0xf72   :  { %7415 = vtanh.f32 %v3020_v8 }
 0xf7c   :  { %v8614_v2 = vpop.eup %7415 }
 0xf7d   :  { %6056 = vmatmul.mubr.f32.vlgmr.msra.gmra.mrb[48].mxu0 %v8614_v2 }
 0xf7e   :  { %7207 = vmatpush3.bf16.msra.mxu0 %v7670_v17  ;;  %6125 = vmatprep.mubr.msk.f32.mxu0 %vm7557_vm1, %v7558_v63 }
 0xf7f   :  { %7208 = vmatprep.subr.bf16.mxu0 %v7556_v18 }
 0xf82   :  { %7210 = vmatpush3.bf16.msra.mxu0 %v7678_v24 }
 0xf83   :  { %7211 = vmatprep.subr.bf16.mxu0 %v7556_v18 }
 0xf86   :  { %7213 = vmatpush3.bf16.msra.mxu0 %v7687_v29 }
 0xf87   :  { %7214 = vmatprep.subr.bf16.mxu0 %v7556_v18 }
 0xf8a   :  { %7216 = vmatpush3.bf16.msra.mxu0 %v7695_v34 }
 0xf8b   :  { %7217 = vmatprep.subr.bf16.mxu0 %v7556_v18 }
 0xf8e   :  { %7219 = vmatpush3.bf16.msra.mxu0 %v7703_v39 }
 0xf8f   :  { %v3090_v15 = vpop.f32.mrb[58].mxu1  ;;  %7220 = vmatprep.subr.bf16.mxu0 %v7556_v18 }
 0xf90   :  { %v3091_v31 = vadd.f32 %v3090_v15, %v493_v38  ;;  %v6022_v6 = vpop.f32.mrb[59].mxu1  ;;  %v3587_v38 = vld [vmem:[#allocation11 + $0x18] sm:$0xff] }
 0xf91   :  { %v3590_v6 = vld [vmem:[#allocation11 + $0x30] sm:$0xff] }
 0xf92   :  { %7417 = vtanh.f32 %v3091_v31  ;;  %7222 = vmatpush3.bf16.msra.mxu0 %v7711_v44 }
 0xf93   :  { %7223 = vmatprep.subr.bf16.mxu0 %v7556_v18 }
 0xf96   :  { %7225 = vmatpush3.bf16.msra.mxu0 %v7719_v49 }
 0xf97   :  { %7226 = vmatprep.subr.bf16.mxu0 %v7556_v18 }
 0xf9a   :  { %7228 = vmatpush3.bf16.msra.mxu0 %v7727_v54 }
 0xf9b   :  { %7253 = vmatprep.subr.bf16.mxu0 %v7556_v18 }
 0xf9c   :  { %v8637_v37 = vpop.eup %7417 }
 0xf9d   :  { %6091 = vmatmul.mubr.f32.vlgmr.msra.gmra.mrb[60].mxu1 %v8637_v37 }
 0xf9e   :  { %7231 = vmatpush3.bf16.msra.mxu1 %v7670_v17  ;;  %6160 = vmatprep.mubr.msk.f32.mxu1 %vm7557_vm1, %v7558_v63 }
 0xf9f   :  { %7232 = vmatprep.subr.bf16.mxu1 %v7556_v18 }
 0xfa2   :  { %7234 = vmatpush3.bf16.msra.mxu1 %v7678_v24 }
 0xfa3   :  { %7235 = vmatprep.subr.bf16.mxu1 %v7556_v18 }
 0xfa6   :  { %7237 = vmatpush3.bf16.msra.mxu1 %v7687_v29 }
 0xfa7   :  { %7238 = vmatprep.subr.bf16.mxu1 %v7556_v18 }
 0xfaa   :  { %7240 = vmatpush3.bf16.msra.mxu1 %v7695_v34 }
 0xfab   :  { %7241 = vmatprep.subr.bf16.mxu1 %v7556_v18 }
 0xfae   :  { %7243 = vmatpush3.bf16.msra.mxu1 %v7703_v39 }
 0xfaf   :  { %7244 = vmatprep.subr.bf16.mxu1 %v7556_v18 }
 0xfb2   :  { %7246 = vmatpush3.bf16.msra.mxu1 %v7711_v44 }
 0xfb3   :  { %7247 = vmatprep.subr.bf16.mxu1 %v7556_v18 }
 0xfb6   :  { %7249 = vmatpush3.bf16.msra.mxu1 %v7719_v49 }
 0xfb7   :  { %7250 = vmatprep.subr.bf16.mxu1 %v7556_v18 }
 0xfba   :  { %7252 = vmatpush3.bf16.msra.mxu1 %v7727_v54 }
 0xfbb   :  { %7277 = vmatprep.subr.bf16.mxu1 %v7556_v18 }
0x1050   :  { %v3167_v36 = vpop.f32.mrb[48].mxu0 }
0x1051   :  { %v3168_v10 = vadd.f32 %v3167_v36, %v498_v45  ;;  %v6057_v28 = vpop.f32.mrb[49].mxu0  ;;  %v3592_v36 = vld [vmem:[#allocation11 + $0x40] sm:$0xff] }
0x1053   :  { %7419 = vtanh.f32 %v3168_v10  ;;  %v3593_v10 = vld [vmem:[#allocation11 + $0x48] sm:$0xff] }
0x1054   :  { %v7317_v28 = vpack.c.bf16 %v3593_v10, %v3592_v36 }
0x105d   :  { %v8660_v4 = vpop.eup %7419 }
0x105e   :  { %6126 = vmatmul.mubr.f32.vlgmr.msra.gmra.mrb[50].mxu0 %v8660_v4 }
0x105f   :  { %7255 = vmatpush3.bf16.msra.mxu0 %v7670_v17  ;;  %6195 = vmatprep.mubr.msk.f32.mxu0 %vm7557_vm1, %v7558_v63 }
0x1060   :  { %7256 = vmatprep.subr.bf16.mxu0 %v7556_v18 }
0x1063   :  { %7258 = vmatpush3.bf16.msra.mxu0 %v7678_v24 }
0x1064   :  { %7259 = vmatprep.subr.bf16.mxu0 %v7556_v18 }
0x1067   :  { %7261 = vmatpush3.bf16.msra.mxu0 %v7687_v29 }
0x1068   :  { %7262 = vmatprep.subr.bf16.mxu0 %v7556_v18 }
0x106b   :  { %7264 = vmatpush3.bf16.msra.mxu0 %v7695_v34 }
0x106c   :  { %7265 = vmatprep.subr.bf16.mxu0 %v7556_v18 }
0x106f   :  { %7267 = vmatpush3.bf16.msra.mxu0 %v7703_v39 }
0x1070   :  { %v3238_v21 = vpop.f32.mrb[60].mxu1  ;;  %7268 = vmatprep.subr.bf16.mxu0 %v7556_v18 }
0x1071   :  { %v3239_v33 = vadd.f32 %v3238_v21, %v503_v41  ;;  %v6092_v8 = vpop.f32.mrb[61].mxu1  ;;  %v3594_v41 = vld [vmem:[#allocation11 + $0x50] sm:$0xff]  ;;  %v3595_v21 = vld [vmem:[#allocation11 + $0x58] sm:$0xff] }
0x1072   :  { %v3596_v8 = vld [vmem:[#allocation11 + $0x60] sm:$0xff] }
0x1073   :  { %7421 = vtanh.f32 %v3239_v33  ;;  %7270 = vmatpush3.bf16.msra.mxu0 %v7711_v44  ;;  %v7321_v33 = vpack.c.bf16 %v3595_v21, %v3594_v41 }
0x1074   :  { %7271 = vmatprep.subr.bf16.mxu0 %v7556_v18 }
0x1077   :  { %7273 = vmatpush3.bf16.msra.mxu0 %v7719_v49 }
0x1078   :  { %7274 = vmatprep.subr.bf16.mxu0 %v7556_v18 }
0x107b   :  { %7276 = vmatpush3.bf16.msra.mxu0 %v7727_v54 }
0x107d   :  { %v8682_v26 = vpop.eup %7421 }
0x107e   :  { %6161 = vmatmul.mubr.f32.vlgmr.msra.gmra.mrb[62].mxu1 %v8682_v26 }
0x107f   :  { %7279 = vmatpush3.bf16.msra.mxu1 %v7670_v17  ;;  %6230 = vmatprep.mubr.msk.f32.mxu1 %vm7557_vm1, %v7558_v63  ;;  %v3584_v17 = vld [vmem:[#allocation11] sm:$0xff] }
0x1080   :  { %7280 = vmatprep.subr.bf16.mxu1 %v7556_v18 }
0x1083   :  { %7282 = vmatpush3.bf16.msra.mxu1 %v7678_v24  ;;  %v3585_v24 = vld [vmem:[#allocation11 + $0x8] sm:$0xff] }
0x1084   :  { %7283 = vmatprep.subr.bf16.mxu1 %v7556_v18 }
0x1087   :  { %7285 = vmatpush3.bf16.msra.mxu1 %v7687_v29  ;;  %v7301_v29 = vpack.c.bf16 %v3585_v24, %v3584_v17  ;;  %v3597_v17 = vld [vmem:[#allocation11 + $0x68] sm:$0xff] }
0x1088   :  { %7286 = vmatprep.subr.bf16.mxu1 %v7556_v18 }
0x1089   :  { %7302 = vmatprep.subr.bf16.mxu0 %v7301_v29 }
0x108b   :  { %7288 = vmatpush3.bf16.msra.mxu1 %v7695_v34  ;;  %v508_v34 = vadd.f32 %v8349_v23, %v7843_v43  ;;  %v3591_v43 = vld [vmem:[#allocation11 + $0x38] sm:$0xff] }
0x108c   :  { %7289 = vmatprep.subr.bf16.mxu1 %v7556_v18  ;;  %v7313_v45 = vpack.c.bf16 %v3591_v43, %v3590_v6 }
0x108f   :  { %7291 = vmatpush3.bf16.msra.mxu1 %v7703_v39 }
0x1090   :  { %7292 = vmatprep.subr.bf16.mxu1 %v7556_v18 }
0x1093   :  { %7294 = vmatpush3.bf16.msra.mxu1 %v7711_v44  ;;  %v3586_v44 = vld [vmem:[#allocation11 + $0x10] sm:$0xff] }
0x1094   :  { %7295 = vmatprep.subr.bf16.mxu1 %v7556_v18  ;;  %v7305_v15 = vpack.c.bf16 %v3587_v38, %v3586_v44 }
0x1097   :  { %7297 = vmatpush3.bf16.msra.mxu1 %v7719_v49  ;;  %v3588_v49 = vld [vmem:[#allocation11 + $0x20] sm:$0xff] }
0x1098   :  { %7298 = vmatprep.subr.bf16.mxu1 %v7556_v18  ;;  %v3589_v18 = vld [vmem:[#allocation11 + $0x28] sm:$0xff] }
0x109b   :  { %7300 = vmatpush3.bf16.msra.mxu1 %v7727_v54  ;;  %v7309_v54 = vpack.c.bf16 %v3589_v18, %v3588_v49 }
0x1131   :  { %v3315_v39 = vpop.f32.mrb[50].mxu0 }
0x1132   :  { %v3316_v63 = vadd.f32 %v3315_v39, %v508_v34  ;;  %v6127_v40 = vpop.f32.mrb[51].mxu0 }
0x1133   :  { %v3599_v40 = vld [vmem:[#allocation11 + $0x78] sm:$0xff] }
0x1134   :  { %7423 = vtanh.f32 %v3316_v63  ;;  %v3598_v63 = vld [vmem:[#allocation11 + $0x70] sm:$0xff] }
0x1135   :  { %v7329_v44 = vpack.c.bf16 %v3599_v40, %v3598_v63 }
0x113e   :  { %v8704_v31 = vpop.eup %7423 }
0x113f   :  { %6196 = vmatmul.mubr.f32.vlgmr.msra.gmra.mrb[52].mxu0 %v8704_v31 }
0x1140   :  { %7304 = vmatpush3.bf16.msra.mxu0 %v7301_v29  ;;  %6265 = vmatprep.mubr.f32.mxu0 %v7855_v53  ;;  %v513_v53 = vadd.f32 %v8349_v23, %v7841_v42  ;;  %v7325_v29 = vpack.c.bf16 %v3597_v17, %v3596_v8  ;;  %v518_v42 = vadd.f32 %v8349_v23, %v7852_v47 }
0x1141   :  { %7306 = vmatprep.subr.bf16.mxu0 %v7305_v15 }
0x1144   :  { %7308 = vmatpush3.bf16.msra.mxu0 %v7305_v15 }
0x1145   :  { %7310 = vmatprep.subr.bf16.mxu0 %v7309_v54 }
0x1148   :  { %7312 = vmatpush3.bf16.msra.mxu0 %v7309_v54 }
0x1149   :  { %7314 = vmatprep.subr.bf16.mxu0 %v7313_v45 }
0x114c   :  { %7316 = vmatpush3.bf16.msra.mxu0 %v7313_v45 }
0x114d   :  { %7318 = vmatprep.subr.bf16.mxu0 %v7317_v28 }
0x1150   :  { %7320 = vmatpush3.bf16.msra.mxu0 %v7317_v28 }
0x1151   :  { %v3386_v24 = vpop.f32.mrb[62].mxu1  ;;  %7322 = vmatprep.subr.bf16.mxu0 %v7321_v33 }
0x1152   :  { %v3387_v34 = vadd.f32 %v3386_v24, %v513_v53  ;;  %v6162_v39 = vpop.f32.mrb[63].mxu1 }
0x1154   :  { %7425 = vtanh.f32 %v3387_v34  ;;  %7324 = vmatpush3.bf16.msra.mxu0 %v7321_v33 }
0x1155   :  { %7326 = vmatprep.subr.bf16.mxu0 %v7325_v29 }
0x1158   :  { %7328 = vmatpush3.bf16.msra.mxu0 %v7325_v29 }
0x1159   :  { %7330 = vmatprep.subr.bf16.mxu0 %v7329_v44 }
0x115c   :  { %7332 = vmatpush3.bf16.msra.mxu0 %v7329_v44 }
0x115e   :  { %v7426_v38 = vpop.eup %7425 }
0x115f   :  { %6231 = vmatmul.mubr.f32.vlgmr.msra.gmra.mrb[64].mxu1 %v7426_v38  ;;  %6266 = vmatmul.mubr.f32.vlgmr.msra.gmra.mrb[54].mxu0 %v7877_v59 }
0x1160   :  { %6268 = vmatprep.mubr.f32.mxu0 %v7921_v19 }
0x1163   :  { %6269 = vmatmul.mubr.f32.gmra.mrb[56].mxu0 %v7943_v55 }
0x1164   :  { %6271 = vmatprep.mubr.f32.mxu0 %v7965_v61 }
0x1167   :  { %6272 = vmatmul.mubr.f32.gmra.mrb[58].mxu0 %v7988_v62  ;;  %v8751_v62 = vld [vmem:[%s8815_s5] ss:$0 sm:$0xff]  ;;  %s7559_s5 = smov [#allocation13]  }
0x1168   :  { %6274 = vmatprep.mubr.f32.mxu0 %v8011_v52  ;;  %v523_v52 = vadd.f32 %v8349_v23, %v7850_v46  ;;  %s3917_s26 = sshll.u32 %s7559_s5, 4  ;;  %s3918_s26 = int_to_ptr.vmem [resolvable:$true] %s3917_s26 }
0x1169   :  { %s7520_s27 = scalar_lea.vmem %s3918_s26, 5120  ;;  %p7525_p5 = scmp.lt.s32.totalorder %s3918_s26, %s3918_s26 }
0x116a   :  { %p7521_p4 = scmp.ne.s32.totalorder %s3918_s26, %s7520_s27  ;;  %p7526_p6 = scmp.lt.s32.totalorder %s7520_s27, %s7520_s27 }
0x116b   :  { %6275 = vmatmul.mubr.f32.gmra.mrb[60].mxu0 %v8034_v1 }
0x116c   :  { %6277 = vmatprep.mubr.f32.mxu0 %v8057_v13  ;;  %p7527_p7 = por %p7526_p6, %p7525_p5 }
0x116e   :  { %p7528_p8 = pnand %p7527_p7, %p7521_p4 }
0x116f   :  { %6278 = vmatmul.mubr.f32.gmra.mrb[62].mxu0 %v8080_v3 }
0x1170   :  { %6280 = vmatprep.mubr.f32.mxu0 %v8103_v58 }
0x1173   :  { %6281 = vmatmul.mubr.f32.gmra.mrb[64].mxu0 %v8126_v5 }
0x1174   :  { %6283 = vmatprep.mubr.f32.mxu0 %v8149_v50 }
0x1177   :  { %6284 = vmatmul.mubr.f32.gmra.mrb[66].mxu0 %v8172_v7 }
0x1178   :  { %6286 = vmatprep.mubr.f32.mxu0 %v8195_v11 }
0x117b   :  { %6287 = vmatmul.mubr.f32.gmra.mrb[68].mxu0 %v8218_v9 }
0x117c   :  { %6289 = vmatprep.mubr.f32.mxu0 %v8241_v56 }
0x117f   :  { %6290 = vmatmul.mubr.f32.gmra.mrb[70].mxu0 %v8264_v14 }
0x1180   :  { %6292 = vmatprep.mubr.f32.mxu0 %v8287_v16 }
0x1183   :  { %6293 = vmatmul.mubr.f32.gmra.mrb[72].mxu0 %v8310_v20 }
0x1184   :  { %6295 = vmatprep.mubr.f32.mxu0 %v8333_v60 }
0x1187   :  { %6296 = vmatmul.mubr.f32.gmra.mrb[74].mxu0 %v8361_v22 }
0x1188   :  { %6298 = vmatprep.mubr.f32.mxu0 %v8384_v51 }
0x118b   :  { %6299 = vmatmul.mubr.f32.gmra.mrb[76].mxu0 %v8407_v25 }
0x118c   :  { %6301 = vmatprep.mubr.f32.mxu0 %v8430_v12 }
0x118f   :  { %6302 = vmatmul.mubr.f32.gmra.mrb[78].mxu0 %v8453_v27 }
0x1190   :  { %6304 = vmatprep.mubr.f32.mxu0 %v8476_v57 }
0x1193   :  { %6305 = vmatmul.mubr.f32.gmra.mrb[80].mxu0 %v8499_v30 }
0x1194   :  { %6307 = vmatprep.mubr.f32.mxu0 %v8522_v48 }
0x1197   :  { %6308 = vmatmul.mubr.f32.gmra.mrb[82].mxu0 %v8545_v32 }
0x1198   :  { %6310 = vmatprep.mubr.f32.mxu0 %v8568_v0 }
0x119b   :  { %6311 = vmatmul.mubr.f32.gmra.mrb[84].mxu0 %v8591_v35 }
0x119c   :  { %6313 = vmatprep.mubr.f32.mxu0 %v8614_v2 }
0x119f   :  { %6314 = vmatmul.mubr.f32.gmra.mrb[86].mxu0 %v8637_v37 }
0x11a0   :  { %6316 = vmatprep.mubr.f32.mxu0 %v8660_v4 }
0x11a3   :  { %6317 = vmatmul.mubr.f32.gmra.mrb[88].mxu0 %v8682_v26 }
0x11a4   :  { %6319 = vmatprep.mubr.f32.mxu0 %v8704_v31 }
0x11a7   :  { %6320 = vmatmul.mubr.f32.gmra.mrb[90].mxu0 %v7426_v38 }
0x1212   :  { %v3463_v59 = vpop.f32.mrb[52].mxu0 }
0x1213   :  { %v3464_v19 = vadd.f32 %v3463_v59, %v518_v42  ;;  %v6197_v55 = vpop.f32.mrb[53].mxu0 }
0x1215   :  { %7427 = vtanh.f32 %v3464_v19 }
0x121f   :  { %v7428_v61 = vpop.eup %7427 }
0x1220   :  { %6322 = vmatprep.mubr.f32.mxu0 %v7428_v61 }
0x1232   :  { %v3534_v1 = vpop.f32.mrb[64].mxu1  ;;  %v6267_v13 = vpop.f32.mrb[54].mxu0 }
0x1233   :  { %v3535_v3 = vadd.f32 %v3534_v1, %v523_v52  ;;  %v3679_v58 = vadd.f32 %v6267_v13, %v8751_v62  ;;  %v6232_v47 = vpop.f32.mrb[65].mxu1  ;;  %v3673_v5 = vpop.f32.mrb[55].mxu0 }
0x1234   :  { %v3674_v50 = vadd.f32 %v8751_v62, %v3673_v5 }
0x1235   :  { %7429 = vtanh.f32 %v3535_v3  ;;  %3873 = vst [vmem:[#allocation13 + $0x8] sm:$0xff] %v3679_v58 }
0x1236   :  { %3872 = vst [vmem:[#allocation13] sm:$0xff] %v3674_v50  ;;  %v6270_v7 = vpop.f32.mrb[56].mxu0 }
0x1237   :  { %v3689_v11 = vadd.f32 %v6270_v7, %v8751_v62  ;;  %v3683_v9 = vpop.f32.mrb[57].mxu0 }
0x1238   :  { %v3684_v56 = vadd.f32 %v8751_v62, %v3683_v9 }
0x1239   :  { %3875 = vst [vmem:[#allocation13 + $0x18] sm:$0xff] %v3689_v11 }
0x123a   :  { %3874 = vst [vmem:[#allocation13 + $0x10] sm:$0xff] %v3684_v56  ;;  %v6273_v46 = vpop.f32.mrb[58].mxu0 }
0x123b   :  { %v3699_v14 = vadd.f32 %v6273_v46, %v8751_v62  ;;  %v3693_v16 = vpop.f32.mrb[59].mxu0 }
0x123c   :  { %v3694_v20 = vadd.f32 %v8751_v62, %v3693_v16 }
0x123d   :  { %3877 = vst [vmem:[#allocation13 + $0x28] sm:$0xff] %v3699_v14 }
0x123e   :  { %3876 = vst [vmem:[#allocation13 + $0x20] sm:$0xff] %v3694_v20  ;;  %v6276_v60 = vpop.f32.mrb[60].mxu0 }
0x123f   :  { %v7430_v23 = vpop.eup %7429  ;;  %v3709_v22 = vadd.f32 %v6276_v60, %v8751_v62  ;;  %v3703_v51 = vpop.f32.mrb[61].mxu0 }
0x1240   :  { %v3704_v25 = vadd.f32 %v8751_v62, %v3703_v51  ;;  %6323 = vmatmul.mubr.f32.gmra.mrb[92].mxu0 %v7430_v23 }
0x1241   :  { %3879 = vst [vmem:[#allocation13 + $0x38] sm:$0xff] %v3709_v22 }
0x1242   :  { %3878 = vst [vmem:[#allocation13 + $0x30] sm:$0xff] %v3704_v25  ;;  %v6279_v12 = vpop.f32.mrb[62].mxu0 }
0x1243   :  { %v3719_v27 = vadd.f32 %v6279_v12, %v8751_v62  ;;  %v3713_v57 = vpop.f32.mrb[63].mxu0 }
0x1244   :  { %v3714_v30 = vadd.f32 %v8751_v62, %v3713_v57 }
0x1245   :  { %3881 = vst [vmem:[#allocation13 + $0x48] sm:$0xff] %v3719_v27 }
0x1246   :  { %3880 = vst [vmem:[#allocation13 + $0x40] sm:$0xff] %v3714_v30  ;;  %v6282_v48 = vpop.f32.mrb[64].mxu0 }
0x1247   :  { %v3729_v32 = vadd.f32 %v6282_v48, %v8751_v62  ;;  %v3723_v0 = vpop.f32.mrb[65].mxu0 }
0x1248   :  { %v3724_v35 = vadd.f32 %v8751_v62, %v3723_v0 }
0x1249   :  { %3883 = vst [vmem:[#allocation13 + $0x58] sm:$0xff] %v3729_v32 }
0x124a   :  { %3882 = vst [vmem:[#allocation13 + $0x50] sm:$0xff] %v3724_v35  ;;  %v6285_v2 = vpop.f32.mrb[66].mxu0 }
0x124b   :  { %v3739_v37 = vadd.f32 %v6285_v2, %v8751_v62  ;;  %v3733_v4 = vpop.f32.mrb[67].mxu0 }
0x124c   :  { %v3734_v26 = vadd.f32 %v8751_v62, %v3733_v4 }
0x124d   :  { %3885 = vst [vmem:[#allocation13 + $0x68] sm:$0xff] %v3739_v37 }
0x124e   :  { %3884 = vst [vmem:[#allocation13 + $0x60] sm:$0xff] %v3734_v26  ;;  %v6288_v15 = vpop.f32.mrb[68].mxu0 }
0x124f   :  { %v3749_v31 = vadd.f32 %v6288_v15, %v8751_v62  ;;  %v3743_v49 = vpop.f32.mrb[69].mxu0 }
0x1250   :  { %v3744_v18 = vadd.f32 %v8751_v62, %v3743_v49 }
0x1251   :  { %3887 = vst [vmem:[#allocation13 + $0x78] sm:$0xff] %v3749_v31 }
0x1252   :  { %3886 = vst [vmem:[#allocation13 + $0x70] sm:$0xff] %v3744_v18  ;;  %v6291_v54 = vpop.f32.mrb[70].mxu0 }
0x1253   :  { %v3759_v6 = vadd.f32 %v6291_v54, %v8751_v62  ;;  %v3753_v43 = vpop.f32.mrb[71].mxu0 }
0x1254   :  { %v3754_v45 = vadd.f32 %v8751_v62, %v3753_v43 }
0x1255   :  { %3889 = vst [vmem:[#allocation13 + $0x88] sm:$0xff] %v3759_v6 }
0x1256   :  { %3888 = vst [vmem:[#allocation13 + $0x80] sm:$0xff] %v3754_v45  ;;  %v6294_v36 = vpop.f32.mrb[72].mxu0 }
0x1257   :  { %v3769_v10 = vadd.f32 %v6294_v36, %v8751_v62  ;;  %v3763_v28 = vpop.f32.mrb[73].mxu0 }
0x1258   :  { %v3764_v41 = vadd.f32 %v8751_v62, %v3763_v28 }
0x1259   :  { %3891 = vst [vmem:[#allocation13 + $0x98] sm:$0xff] %v3769_v10 }
0x125a   :  { %3890 = vst [vmem:[#allocation13 + $0x90] sm:$0xff] %v3764_v41  ;;  %v6297_v21 = vpop.f32.mrb[74].mxu0 }
0x125b   :  { %v3779_v33 = vadd.f32 %v6297_v21, %v8751_v62  ;;  %v3773_v8 = vpop.f32.mrb[75].mxu0 }
0x125c   :  { %v3774_v17 = vadd.f32 %v8751_v62, %v3773_v8 }
0x125d   :  { %3893 = vst [vmem:[#allocation13 + $0xa8] sm:$0xff] %v3779_v33 }
0x125e   :  { %3892 = vst [vmem:[#allocation13 + $0xa0] sm:$0xff] %v3774_v17  ;;  %v6300_v53 = vpop.f32.mrb[76].mxu0 }
0x125f   :  { %v3789_v24 = vadd.f32 %v6300_v53, %v8751_v62  ;;  %v3783_v29 = vpop.f32.mrb[77].mxu0 }
0x1260   :  { %v3784_v34 = vadd.f32 %v8751_v62, %v3783_v29 }
0x1261   :  { %3895 = vst [vmem:[#allocation13 + $0xb8] sm:$0xff] %v3789_v24 }
0x1262   :  { %3894 = vst [vmem:[#allocation13 + $0xb0] sm:$0xff] %v3784_v34  ;;  %v6303_v39 = vpop.f32.mrb[78].mxu0 }
0x1263   :  { %v3799_v63 = vadd.f32 %v6303_v39, %v8751_v62  ;;  %v3793_v40 = vpop.f32.mrb[79].mxu0 }
0x1264   :  { %v3794_v44 = vadd.f32 %v8751_v62, %v3793_v40 }
0x1265   :  { %3897 = vst [vmem:[#allocation13 + $0xc8] sm:$0xff] %v3799_v63 }
0x1266   :  { %3896 = vst [vmem:[#allocation13 + $0xc0] sm:$0xff] %v3794_v44  ;;  %v6306_v38 = vpop.f32.mrb[80].mxu0 }
0x1267   :  { %v3809_v42 = vadd.f32 %v6306_v38, %v8751_v62  ;;  %v3803_v59 = vpop.f32.mrb[81].mxu0 }
0x1268   :  { %v3804_v19 = vadd.f32 %v8751_v62, %v3803_v59 }
0x1269   :  { %3899 = vst [vmem:[#allocation13 + $0xd8] sm:$0xff] %v3809_v42 }
0x126a   :  { %3898 = vst [vmem:[#allocation13 + $0xd0] sm:$0xff] %v3804_v19  ;;  %v6309_v55 = vpop.f32.mrb[82].mxu0 }
0x126b   :  { %v3819_v61 = vadd.f32 %v6309_v55, %v8751_v62  ;;  %v3813_v52 = vpop.f32.mrb[83].mxu0 }
0x126c   :  { %v3814_v1 = vadd.f32 %v8751_v62, %v3813_v52 }
0x126d   :  { %3901 = vst [vmem:[#allocation13 + $0xe8] sm:$0xff] %v3819_v61 }
0x126e   :  { %3900 = vst [vmem:[#allocation13 + $0xe0] sm:$0xff] %v3814_v1  ;;  %v6312_v13 = vpop.f32.mrb[84].mxu0 }
0x126f   :  { %v3829_v3 = vadd.f32 %v6312_v13, %v8751_v62  ;;  %v3823_v58 = vpop.f32.mrb[85].mxu0 }
0x1270   :  { %v3824_v47 = vadd.f32 %v8751_v62, %v3823_v58 }
0x1271   :  { %3903 = vst [vmem:[#allocation13 + $0xf8] sm:$0xff] %v3829_v3 }
0x1272   :  { %3902 = vst [vmem:[#allocation13 + $0xf0] sm:$0xff] %v3824_v47  ;;  %v6315_v5 = vpop.f32.mrb[86].mxu0 }
0x1273   :  { %v3839_v50 = vadd.f32 %v6315_v5, %v8751_v62  ;;  %v3833_v7 = vpop.f32.mrb[87].mxu0 }
0x1274   :  { %v3834_v11 = vadd.f32 %v8751_v62, %v3833_v7 }
0x1275   :  { %3905 = vst [vmem:[#allocation13 + $0x108] sm:$0xff] %v3839_v50 }
0x1276   :  { %3904 = vst [vmem:[#allocation13 + $0x100] sm:$0xff] %v3834_v11  ;;  %v6318_v9 = vpop.f32.mrb[88].mxu0 }
0x1277   :  { %v3849_v56 = vadd.f32 %v6318_v9, %v8751_v62  ;;  %v3843_v46 = vpop.f32.mrb[89].mxu0 }
0x1278   :  { %v3844_v14 = vadd.f32 %v8751_v62, %v3843_v46 }
0x1279   :  { %3907 = vst [vmem:[#allocation13 + $0x118] sm:$0xff] %v3849_v56 }
0x127a   :  { %3906 = vst [vmem:[#allocation13 + $0x110] sm:$0xff] %v3844_v14  ;;  %v6321_v16 = vpop.f32.mrb[90].mxu0 }
0x127b   :  { %v3859_v20 = vadd.f32 %v6321_v16, %v8751_v62  ;;  %v3853_v60 = vpop.f32.mrb[91].mxu0 }
0x127c   :  { %v3854_v23 = vadd.f32 %v8751_v62, %v3853_v60 }
0x127d   :  { %3909 = vst [vmem:[#allocation13 + $0x128] sm:$0xff] %v3859_v20 }
0x127e   :  { %3908 = vst [vmem:[#allocation13 + $0x120] sm:$0xff] %v3854_v23 }
0x1313   :  { %v6324_v22 = vpop.f32.mrb[92].mxu0 }
0x1314   :  { %v3869_v51 = vadd.f32 %v6324_v22, %v8751_v62  ;;  %v3863_v25 = vpop.f32.mrb[93].mxu0 }
0x1315   :  { %v3864_v12 = vadd.f32 %v8751_v62, %v3863_v25 }
0x1316   :  { %3911 = vst [vmem:[#allocation13 + $0x138] sm:$0xff] %v3869_v51 }
0x1317   :  { %3910 = vst [vmem:[#allocation13 + $0x130] sm:$0xff] %v3864_v12 }
0x1318   :  { %7531 = shalt.err (!%p7528_p8)
}
0x1319   :  { %s7532_s30 = scalar_lea.hbm %s8816_s6, 5120 }
0x131a   :  { %p7533_p9 = scmp.ne.s32.totalorder %s8816_s6, %s7532_s30  ;;  %p7536_p10 = scmp.lt.u32.totalorder %s7532_s30, %s8816_s6 }
0x131c   :  { %p7538_p11 = pnand %p7536_p10, %p7533_p9 }
0x131e   :  { %7541 = shalt.err (!%p7538_p11)
}
0x131f   :  { %3923 = dma.vmem_to_hbm [thread:$0]  %s3918_s26, 5120, %s8816_s6, [#allocation7], %s7552_s9, %s7552_s9, %s7553_s10  }
0x1320   :  { %7548 = dma.done.wait [#allocation7], 5120  }
0x1321   :  { %7549 = vsyncadd [#allocation7], 4294962176 }
0x1322   :  { %3927 = vsyncpa [#allocation6], 1 }
0x1323   :  { %3928 = vsyncpa [#allocation9], 1 }
0x1324   :  { %3929 = vsyncpa [#allocation12], 1 }
0x1325   :  { %3930 = vsyncpa [#allocation7], 1 }

</bundles_post_ra>
